<compile_context>
chip_gen: v7x
topology: tpu7x:2x2x1
jax: 0.10.0
libtpu: 0.0.40
codegen_flags: <defaults>
</compile_context>

<pallas_src>
import functools

import jax
import jax.numpy as jnp
from jax.experimental import pallas as pl

# ---- synthetic cfg.model ----
B = 2              # batch
N = 8              # max entity num (entities per sample)
E = 16             # entity_embedding_dim
K = 32             # key_dim
D = 32             # input_dim
F = 32             # func_dim
H = 32             # lstm_hidden_dim (model requires H == key_dim: (queries * key).sum(-1))
L = 1              # lstm_num_layers
HV = 32            # value-net hidden dim
MAX_SELECTED = 8   # max_selected_units_num (small synthetic value)
NEG = -1e9         # masked_fill value (matches -1000000000.0)
# entity_reduce_type == 'entity_num', activation == relu

assert K == H, "pointer dot-product requires lstm_hidden_dim == key_dim"
assert K == F == D == HV, "bias packing below assumes equal small feature dims"


def _ln(x, eps=1e-5):
    mu = jnp.mean(x, axis=-1, keepdims=True)
    var = jnp.mean((x - mu) ** 2, axis=-1, keepdims=True)
    return (x - mu) * jax.lax.rsqrt(var + eps)


def pointer_kernel(emb_ref, ent_emb_ref, ent_mask_ref, gumbel_ref,
                   wk_ref, we1_ref, we2_ref, wq1_ref, wq2_ref,
                   w_lstm_ref, ln_gb_ref, ln_c_ref,
                   wv1_ref, w_head_ref, bias_ref, b_head_ref,
                   logits_ref, units_ref, ae_out_ref, vlogit_ref, value_ref,
                   *, temperature):
    inv_temp = 1.0 / float(temperature)      # folded at trace time (multiply, not divide)

    # ---- loop-invariant loads (hoisted; everything stays register/VMEM resident) ----
    bp = bias_ref[...]                       # (6, K) rows: bk, be1, be2, bq1, bq2, bv1
    bk, be1, be2 = bp[0:1], bp[1:2], bp[2:3]
    bq1, bq2, bv1 = bp[3:4], bp[4:5], bp[5:6]
    wq1 = wq1_ref[...]
    wq2 = wq2_ref[...]
    wl = w_lstm_ref[...]                     # (L, 2, H, 4H): [l,0]=W_ih, [l,1]=W_hh
    lngb = ln_gb_ref[...]                    # (L, 4, 4H)   : gi, bi, gh, bh
    lnc = ln_c_ref[...]                      # (L, 2, H)    : gc, bc
    gumbel = gumbel_ref[...]                 # (B, MAX_SELECTED, N)
    mask0 = ent_mask_ref[...]                # (B, N) float (1.0 = valid)

    # ---- _get_key_mask: key_fc + 'entity_num' reduce + embed_mlp ----
    ent = ent_emb_ref[...].reshape(B * N, E)
    key3 = (jnp.dot(ent, wk_ref[...], preferred_element_type=jnp.float32)
            + bk).reshape(B, N, K)
    cnt = jnp.maximum(jnp.sum(mask0, axis=-1, keepdims=True), 1.0)      # (B,1), clamp >=1
    key_red = (key3 * (1.0 / cnt)[:, :, None]).reshape(B * N, K)
    h1 = jnp.maximum(jnp.dot(key_red, we1_ref[...],
                             preferred_element_type=jnp.float32) + be1, 0.0)
    kemb = (jnp.dot(h1, we2_ref[...], preferred_element_type=jnp.float32)
            + be2).reshape(B, N, D)

    # ---- autoregressive state lives in values (vregs), not VMEM scratch ----
    ae = emb_ref[...]
    h = [jnp.zeros((B, H), jnp.float32) for _ in range(L)]
    c = [jnp.zeros((B, H), jnp.float32) for _ in range(L)]
    mask = mask0

    lane_iota = jax.lax.broadcasted_iota(jnp.int32, (B, N), 1)
    sel_iota2 = jax.lax.broadcasted_iota(jnp.int32, (B, MAX_SELECTED), 1)
    sel_iota3 = jax.lax.broadcasted_iota(jnp.int32, (B, MAX_SELECTED, N), 1)
    logits_acc = jnp.zeros((B, MAX_SELECTED, N), jnp.float32)
    units_acc = jnp.zeros((B, MAX_SELECTED), jnp.int32)

    # ---- fully unrolled autoregressive pointer loop (no grid overhead) ----
    for s in range(MAX_SELECTED):
        # query_mlp
        q1 = jnp.maximum(jnp.dot(ae, wq1, preferred_element_type=jnp.float32) + bq1, 0.0)
        x = jnp.dot(q1, wq2, preferred_element_type=jnp.float32) + bq2   # (B, K)

        # script_lnlstm (layer-norm LSTM)
        for l in range(L):
            ig = _ln(jnp.dot(x, wl[l, 0], preferred_element_type=jnp.float32)) \
                * lngb[l, 0] + lngb[l, 1]
            hg = _ln(jnp.dot(h[l], wl[l, 1], preferred_element_type=jnp.float32)) \
                * lngb[l, 2] + lngb[l, 3]
            gates = ig + hg                                              # (B, 4H)
            i_g = jax.nn.sigmoid(gates[:, 0:H])
            f_g = jax.nn.sigmoid(gates[:, H:2 * H])
            g_g = jnp.tanh(gates[:, 2 * H:3 * H])
            o_g = jax.nn.sigmoid(gates[:, 3 * H:4 * H])
            c_new = _ln(f_g * c[l] + i_g * g_g) * lnc[l, 0] + lnc[l, 1]
            h_new = o_g * jnp.tanh(c_new)
            h[l], c[l] = h_new, c_new
            x = h_new
        queries = x                                                      # (B, H)

        # pointer logits: batched MXU contraction (queries . key), / temperature, mask
        step_logits = jnp.einsum('bqk,bnk->bqn', queries[:, None, :], key3,
                                 preferred_element_type=jnp.float32)[:, 0, :] * inv_temp
        step_logits = jnp.where(mask > 0.5, step_logits, NEG)
        logits_acc = jnp.where(sel_iota3 == s, step_logits[:, None, :], logits_acc)

        # Categorical(logits).sample() via Gumbel-max; noise precomputed host-side.
        # TODO(synk): same distribution as torch.distributions.Categorical.sample(),
        #             but a different RNG stream than torch (won't bit-match).
        perturbed = step_logits + gumbel[:, s, :]
        mx = jnp.max(perturbed, axis=-1, keepdims=True)
        result = jnp.min(jnp.where(perturbed >= mx, lane_iota, N), axis=-1)  # (B,) int32
        units_acc = jnp.where(sel_iota2 == s, result[:, None], units_acc)

        # mask out the selected entity; autoregressive embedding update ('entity_num')
        oh = (lane_iota == result[:, None]).astype(jnp.float32)          # (B, N) one-hot
        mask = mask * (1.0 - oh)
        sel_emb = jnp.einsum('bqn,bnd->bqd', oh[:, None, :], kemb,
                             preferred_element_type=jnp.float32)[:, 0, :]
        ae = ae + sel_emb

    # single full-ref stores, already in consumer layout
    logits_ref[...] = logits_acc
    units_ref[...] = units_acc
    ae_out_ref[...] = ae

    # value_net (compute_actor_critic) on the final embedding
    # TODO(synk): value_net is DI-engine VAC; approximated as a 1-hidden-layer shared
    #             encoder with fused actor(->1) / critic(->1) linear heads.
    enc = jnp.maximum(jnp.dot(ae, wv1_ref[...],
                              preferred_element_type=jnp.float32) + bv1, 0.0)
    heads = jnp.dot(enc, w_head_ref[...],
                    preferred_element_type=jnp.float32) + b_head_ref[...]   # (B, 2)
    vlogit_ref[...] = heads[:, 0:1]
    value_ref[...] = heads[:, 1:2]


@functools.partial(jax.jit, static_argnames=('temperature',))
def pointer_network_forward(params, embedding, entity_embedding, entity_mask, rng_key,
                            temperature=1.0):
    bsz, n_ent = entity_mask.shape
    # Gumbel noise generated outside the kernel (pltpu PRNG has no interpret lowering).
    gumbel = jax.random.gumbel(rng_key, (bsz, MAX_SELECTED, n_ent), jnp.float32)

    kernel = functools.partial(pointer_kernel, temperature=float(temperature))
    out_shape = (
        jax.ShapeDtypeStruct((bsz, MAX_SELECTED, n_ent), jnp.float32),   # logits
        jax.ShapeDtypeStruct((bsz, MAX_SELECTED), jnp.int32),            # units
        jax.ShapeDtypeStruct((bsz, D), jnp.float32),                     # final embedding
        jax.ShapeDtypeStruct((bsz, 1), jnp.float32),                     # value logit
        jax.ShapeDtypeStruct((bsz, 1), jnp.float32),                     # value
    )
    # Grid-less call: every operand is a full-array VMEM block; no per-step pipeline.
    logits, units, ae, vlogit, value = pl.pallas_call(kernel, out_shape=out_shape)(
        embedding, entity_embedding, entity_mask, gumbel,
        params['wk'], params['we1'], params['we2'],
        params['wq1'], params['wq2'],
        params['w_lstm'], params['ln_gb'], params['ln_c'],
        params['wv1'], params['w_head'],
        params['bias_pack'], params['b_head'],
    )
    return logits, units, ae, vlogit, value[:, 0]


def make_params():
    keys = jax.random.split(jax.random.PRNGKey(0), 12)

    def w(k, shape, scale=0.1):
        return (scale * jax.random.normal(k, shape)).astype(jnp.float32)

    wih = w(keys[5], (L, H, 4 * H))          # layer-0 input dim == K == H
    whh = w(keys[6], (L, H, 4 * H))
    ones4h = jnp.ones((L, 4 * H), jnp.float32)
    zeros4h = jnp.zeros((L, 4 * H), jnp.float32)
    return {
        'wk': w(keys[0], (E, K)),                                        # key_fc
        'we1': w(keys[1], (K, F)), 'we2': w(keys[2], (F, D)),            # embed_mlp
        'wq1': w(keys[3], (D, F)), 'wq2': w(keys[4], (F, K)),            # query_mlp
        'w_lstm': jnp.stack([wih, whh], axis=1),                         # (L,2,H,4H)
        'ln_gb': jnp.stack([ones4h, zeros4h, ones4h, zeros4h], axis=1),  # (L,4,4H): gi,bi,gh,bh
        'ln_c': jnp.stack([jnp.ones((L, H), jnp.float32),
                           jnp.zeros((L, H), jnp.float32)], axis=1),     # (L,2,H): gc,bc
        'wv1': w(keys[7], (D, HV)),                                      # value-net encoder
        'w_head': jnp.concatenate([w(keys[8], (HV, 1)),
                                   w(keys[9], (HV, 1))], axis=1),        # (HV,2): actor,critic
        'bias_pack': w(keys[10], (6, K), 0.01),   # rows: bk, be1, be2, bq1, bq2, bv1
        'b_head': jnp.zeros((1, 2), jnp.float32),
    }


if __name__ == "__main__":
    params = make_params()
    dkeys = jax.random.split(jax.random.PRNGKey(0), 4)
    embedding = jax.random.normal(dkeys[0], (B, D), jnp.float32)
    entity_embedding = jax.random.normal(dkeys[1], (B, N, E), jnp.float32)
    entity_mask = jnp.ones((B, N), jnp.float32).at[1, N - 1].set(0.0)

    logits, units, emb_out, value_logit, value = pointer_network_forward(
        params, embedding, entity_embedding, entity_mask, dkeys[2], temperature=1.0)
    jax.block_until_ready((logits, units, emb_out, value_logit, value))

    assert logits.shape == (B, MAX_SELECTED, N)
    assert units.shape == (B, MAX_SELECTED)
    assert emb_out.shape == (B, D)
    assert value_logit.shape == (B, 1)
    assert value.shape == (B,)
    assert bool(jnp.all(jnp.isfinite(logits)))
    print("KERNEL_OK")
</pallas_src>

<mosaic_0001>
module attributes {stable_mosaic.version = 11 : i64} {
  func.func @pointer_kernel(%arg0: memref<2x32xf32, #tpu.memory_space<vmem>>, %arg1: memref<2x8x16xf32, #tpu.memory_space<vmem>>, %arg2: memref<2x8xf32, #tpu.memory_space<vmem>>, %arg3: memref<2x8x8xf32, #tpu.memory_space<vmem>>, %arg4: memref<16x32xf32, #tpu.memory_space<vmem>>, %arg5: memref<32x32xf32, #tpu.memory_space<vmem>>, %arg6: memref<32x32xf32, #tpu.memory_space<vmem>>, %arg7: memref<32x32xf32, #tpu.memory_space<vmem>>, %arg8: memref<32x32xf32, #tpu.memory_space<vmem>>, %arg9: memref<1x2x32x128xf32, #tpu.memory_space<vmem>>, %arg10: memref<1x4x128xf32, #tpu.memory_space<vmem>>, %arg11: memref<1x2x32xf32, #tpu.memory_space<vmem>>, %arg12: memref<32x32xf32, #tpu.memory_space<vmem>>, %arg13: memref<32x2xf32, #tpu.memory_space<vmem>>, %arg14: memref<6x32xf32, #tpu.memory_space<vmem>>, %arg15: memref<1x2xf32, #tpu.memory_space<vmem>>, %arg16: memref<2x8x8xf32, #tpu.memory_space<vmem>>, %arg17: memref<2x8xi32, #tpu.memory_space<vmem>>, %arg18: memref<2x32xf32, #tpu.memory_space<vmem>>, %arg19: memref<2x1xf32, #tpu.memory_space<vmem>>, %arg20: memref<2x1xf32, #tpu.memory_space<vmem>>) attributes {dimension_semantics = [], scalar_prefetch = 0 : i64, scratch_operands = 0 : i64, tpu.core_type = #tpu.core_type<tc>} {
    %c0 = arith.constant 0 : index
    %c0_0 = arith.constant 0 : index
    %0 = vector.load %arg14[%c0, %c0_0] : memref<6x32xf32, #tpu.memory_space<vmem>>, vector<6x32xf32>
    %1 = vector.extract_strided_slice %0 {offsets = [0, 0], sizes = [1, 32], strides = [1, 1]} : vector<6x32xf32> to vector<1x32xf32>
    %2 = vector.extract_strided_slice %0 {offsets = [1, 0], sizes = [1, 32], strides = [1, 1]} : vector<6x32xf32> to vector<1x32xf32>
    %3 = vector.extract_strided_slice %0 {offsets = [2, 0], sizes = [1, 32], strides = [1, 1]} : vector<6x32xf32> to vector<1x32xf32>
    %4 = vector.extract_strided_slice %0 {offsets = [3, 0], sizes = [1, 32], strides = [1, 1]} : vector<6x32xf32> to vector<1x32xf32>
    %5 = vector.extract_strided_slice %0 {offsets = [4, 0], sizes = [1, 32], strides = [1, 1]} : vector<6x32xf32> to vector<1x32xf32>
    %6 = vector.extract_strided_slice %0 {offsets = [5, 0], sizes = [1, 32], strides = [1, 1]} : vector<6x32xf32> to vector<1x32xf32>
    %c0_1 = arith.constant 0 : index
    %c0_2 = arith.constant 0 : index
    %7 = vector.load %arg7[%c0_1, %c0_2] : memref<32x32xf32, #tpu.memory_space<vmem>>, vector<32x32xf32>
    %c0_3 = arith.constant 0 : index
    %c0_4 = arith.constant 0 : index
    %8 = vector.load %arg8[%c0_3, %c0_4] : memref<32x32xf32, #tpu.memory_space<vmem>>, vector<32x32xf32>
    %c0_5 = arith.constant 0 : index
    %c0_6 = arith.constant 0 : index
    %c0_7 = arith.constant 0 : index
    %c0_8 = arith.constant 0 : index
    %9 = vector.load %arg9[%c0_5, %c0_6, %c0_7, %c0_8] : memref<1x2x32x128xf32, #tpu.memory_space<vmem>>, vector<1x2x32x128xf32>
    %c0_9 = arith.constant 0 : index
    %c0_10 = arith.constant 0 : index
    %c0_11 = arith.constant 0 : index
    %10 = vector.load %arg10[%c0_9, %c0_10, %c0_11] : memref<1x4x128xf32, #tpu.memory_space<vmem>>, vector<1x4x128xf32>
    %c0_12 = arith.constant 0 : index
    %c0_13 = arith.constant 0 : index
    %c0_14 = arith.constant 0 : index
    %11 = vector.load %arg11[%c0_12, %c0_13, %c0_14] : memref<1x2x32xf32, #tpu.memory_space<vmem>>, vector<1x2x32xf32>
    %c0_15 = arith.constant 0 : index
    %c0_16 = arith.constant 0 : index
    %c0_17 = arith.constant 0 : index
    %12 = vector.load %arg3[%c0_15, %c0_16, %c0_17] : memref<2x8x8xf32, #tpu.memory_space<vmem>>, vector<2x8x8xf32>
    %c0_18 = arith.constant 0 : index
    %c0_19 = arith.constant 0 : index
    %13 = vector.load %arg2[%c0_18, %c0_19] : memref<2x8xf32, #tpu.memory_space<vmem>>, vector<2x8xf32>
    %c0_20 = arith.constant 0 : index
    %c0_21 = arith.constant 0 : index
    %c0_22 = arith.constant 0 : index
    %14 = vector.load %arg1[%c0_20, %c0_21, %c0_22] : memref<2x8x16xf32, #tpu.memory_space<vmem>>, vector<2x8x16xf32>
    %15 = vector.shape_cast %14 : vector<2x8x16xf32> to vector<16x16xf32>
    %c0_23 = arith.constant 0 : index
    %c0_24 = arith.constant 0 : index
    %16 = vector.load %arg4[%c0_23, %c0_24] : memref<16x32xf32, #tpu.memory_space<vmem>>, vector<16x32xf32>
    %cst = arith.constant dense<0.000000e+00> : vector<16x32xf32>
    %17 = tpu.matmul %15, %16, %cst {dimension_numbers = #tpu.dot_dimension_numbers<[1], [0], [0], [1], [0, 0, 1, 1], [], []>} : vector<16x16xf32>, vector<16x32xf32>, vector<16x32xf32> -> vector<16x32xf32>
    %18 = vector.broadcast %1 : vector<1x32xf32> to vector<16x32xf32>
    %19 = arith.addf %17, %18 : vector<16x32xf32>
    %20 = vector.shape_cast %19 : vector<16x32xf32> to vector<2x8x32xf32>
    %cst_25 = arith.constant dense<0.000000e+00> : vector<2xf32>
    %21 = vector.multi_reduction <add>, %13, %cst_25 [1] : vector<2x8xf32> to vector<2xf32>
    %22 = vector.shape_cast %21 : vector<2xf32> to vector<2x1xf32>
    %cst_26 = arith.constant 1.000000e+00 : f32
    %23 = vector.broadcast %cst_26 : f32 to vector<2x1xf32>
    %24 = arith.maximumf %22, %23 : vector<2x1xf32>
    %cst_27 = arith.constant 1.000000e+00 : f32
    %25 = vector.broadcast %cst_27 : f32 to vector<2x1xf32>
    %26 = arith.divf %25, %24 : vector<2x1xf32>
    %27 = vector.shape_cast %26 : vector<2x1xf32> to vector<2x1x1xf32>
    %28 = vector.broadcast %27 : vector<2x1x1xf32> to vector<2x8x32xf32>
    %29 = arith.mulf %20, %28 : vector<2x8x32xf32>
    %30 = vector.shape_cast %29 : vector<2x8x32xf32> to vector<16x32xf32>
    %c0_28 = arith.constant 0 : index
    %c0_29 = arith.constant 0 : index
    %31 = vector.load %arg5[%c0_28, %c0_29] : memref<32x32xf32, #tpu.memory_space<vmem>>, vector<32x32xf32>
    %cst_30 = arith.constant dense<0.000000e+00> : vector<16x32xf32>
    %32 = tpu.matmul %30, %31, %cst_30 {dimension_numbers = #tpu.dot_dimension_numbers<[1], [0], [0], [1], [0, 0, 1, 1], [], []>} : vector<16x32xf32>, vector<32x32xf32>, vector<16x32xf32> -> vector<16x32xf32>
    %33 = vector.broadcast %2 : vector<1x32xf32> to vector<16x32xf32>
    %34 = arith.addf %32, %33 : vector<16x32xf32>
    %cst_31 = arith.constant 0.000000e+00 : f32
    %35 = vector.broadcast %cst_31 : f32 to vector<16x32xf32>
    %36 = arith.maximumf %34, %35 : vector<16x32xf32>
    %c0_32 = arith.constant 0 : index
    %c0_33 = arith.constant 0 : index
    %37 = vector.load %arg6[%c0_32, %c0_33] : memref<32x32xf32, #tpu.memory_space<vmem>>, vector<32x32xf32>
    %cst_34 = arith.constant dense<0.000000e+00> : vector<16x32xf32>
    %38 = tpu.matmul %36, %37, %cst_34 {dimension_numbers = #tpu.dot_dimension_numbers<[1], [0], [0], [1], [0, 0, 1, 1], [], []>} : vector<16x32xf32>, vector<32x32xf32>, vector<16x32xf32> -> vector<16x32xf32>
    %39 = vector.broadcast %3 : vector<1x32xf32> to vector<16x32xf32>
    %40 = arith.addf %38, %39 : vector<16x32xf32>
    %41 = vector.shape_cast %40 : vector<16x32xf32> to vector<2x8x32xf32>
    %c0_35 = arith.constant 0 : index
    %c0_36 = arith.constant 0 : index
    %42 = vector.load %arg0[%c0_35, %c0_36] : memref<2x32xf32, #tpu.memory_space<vmem>>, vector<2x32xf32>
    %cst_37 = arith.constant 0.000000e+00 : f32
    %43 = vector.broadcast %cst_37 : f32 to vector<2x32xf32>
    %cst_38 = arith.constant 0.000000e+00 : f32
    %44 = vector.broadcast %cst_38 : f32 to vector<2x32xf32>
    %45 = tpu.iota {dimensions = array<i32: 1>} : vector<2x8xi32>
    %46 = tpu.iota {dimensions = array<i32: 1>} : vector<2x8xi32>
    %47 = tpu.iota {dimensions = array<i32: 1>} : vector<2x8x8xi32>
    %cst_39 = arith.constant 0.000000e+00 : f32
    %48 = vector.broadcast %cst_39 : f32 to vector<2x8x8xf32>
    %c0_i32 = arith.constant 0 : i32
    %49 = vector.broadcast %c0_i32 : i32 to vector<2x8xi32>
    %cst_40 = arith.constant dense<0.000000e+00> : vector<2x32xf32>
    %50 = tpu.matmul %42, %7, %cst_40 {dimension_numbers = #tpu.dot_dimension_numbers<[1], [0], [0], [1], [0, 0, 1, 1], [], []>} : vector<2x32xf32>, vector<32x32xf32>, vector<2x32xf32> -> vector<2x32xf32>
    %51 = vector.broadcast %4 : vector<1x32xf32> to vector<2x32xf32>
    %52 = arith.addf %50, %51 : vector<2x32xf32>
    %cst_41 = arith.constant 0.000000e+00 : f32
    %53 = vector.broadcast %cst_41 : f32 to vector<2x32xf32>
    %54 = arith.maximumf %52, %53 : vector<2x32xf32>
    %cst_42 = arith.constant dense<0.000000e+00> : vector<2x32xf32>
    %55 = tpu.matmul %54, %8, %cst_42 {dimension_numbers = #tpu.dot_dimension_numbers<[1], [0], [0], [1], [0, 0, 1, 1], [], []>} : vector<2x32xf32>, vector<32x32xf32>, vector<2x32xf32> -> vector<2x32xf32>
    %56 = vector.broadcast %5 : vector<1x32xf32> to vector<2x32xf32>
    %57 = arith.addf %55, %56 : vector<2x32xf32>
    %58 = vector.extract_strided_slice %9 {offsets = [0, 0, 0, 0], sizes = [1, 1, 32, 128], strides = [1, 1, 1, 1]} : vector<1x2x32x128xf32> to vector<1x1x32x128xf32>
    %59 = vector.shape_cast %58 : vector<1x1x32x128xf32> to vector<32x128xf32>
    %cst_43 = arith.constant dense<0.000000e+00> : vector<2x128xf32>
    %60 = tpu.matmul %57, %59, %cst_43 {dimension_numbers = #tpu.dot_dimension_numbers<[1], [0], [0], [1], [0, 0, 1, 1], [], []>} : vector<2x32xf32>, vector<32x128xf32>, vector<2x128xf32> -> vector<2x128xf32>
    %cst_44 = arith.constant dense<0.000000e+00> : vector<2xf32>
    %61 = vector.multi_reduction <add>, %60, %cst_44 [1] : vector<2x128xf32> to vector<2xf32>
    %62 = vector.shape_cast %61 : vector<2xf32> to vector<2x1xf32>
    %cst_45 = arith.constant 1.280000e+02 : f32
    %63 = vector.broadcast %cst_45 : f32 to vector<2x1xf32>
    %64 = arith.divf %62, %63 : vector<2x1xf32>
    %65 = vector.broadcast %64 : vector<2x1xf32> to vector<2x128xf32>
    %66 = arith.subf %60, %65 : vector<2x128xf32>
    %67 = arith.mulf %66, %66 : vector<2x128xf32>
    %cst_46 = arith.constant dense<0.000000e+00> : vector<2xf32>
    %68 = vector.multi_reduction <add>, %67, %cst_46 [1] : vector<2x128xf32> to vector<2xf32>
    %69 = vector.shape_cast %68 : vector<2xf32> to vector<2x1xf32>
    %cst_47 = arith.constant 1.280000e+02 : f32
    %70 = vector.broadcast %cst_47 : f32 to vector<2x1xf32>
    %71 = arith.divf %69, %70 : vector<2x1xf32>
    %72 = vector.broadcast %64 : vector<2x1xf32> to vector<2x128xf32>
    %73 = arith.subf %60, %72 : vector<2x128xf32>
    %cst_48 = arith.constant 9.99999974E-6 : f32
    %74 = vector.broadcast %cst_48 : f32 to vector<2x1xf32>
    %75 = arith.addf %71, %74 : vector<2x1xf32>
    %76 = math.rsqrt %75 : vector<2x1xf32>
    %77 = vector.broadcast %76 : vector<2x1xf32> to vector<2x128xf32>
    %78 = arith.mulf %73, %77 : vector<2x128xf32>
    %79 = vector.extract_strided_slice %10 {offsets = [0, 0, 0], sizes = [1, 1, 128], strides = [1, 1, 1]} : vector<1x4x128xf32> to vector<1x1x128xf32>
    %80 = vector.shape_cast %79 : vector<1x1x128xf32> to vector<128xf32>
    %81 = vector.shape_cast %80 : vector<128xf32> to vector<1x128xf32>
    %82 = vector.broadcast %81 : vector<1x128xf32> to vector<2x128xf32>
    %83 = arith.mulf %78, %82 : vector<2x128xf32>
    %84 = vector.extract_strided_slice %10 {offsets = [0, 1, 0], sizes = [1, 1, 128], strides = [1, 1, 1]} : vector<1x4x128xf32> to vector<1x1x128xf32>
    %85 = vector.shape_cast %84 : vector<1x1x128xf32> to vector<128xf32>
    %86 = vector.shape_cast %85 : vector<128xf32> to vector<1x128xf32>
    %87 = vector.broadcast %86 : vector<1x128xf32> to vector<2x128xf32>
    %88 = arith.addf %83, %87 : vector<2x128xf32>
    %89 = vector.extract_strided_slice %9 {offsets = [0, 1, 0, 0], sizes = [1, 1, 32, 128], strides = [1, 1, 1, 1]} : vector<1x2x32x128xf32> to vector<1x1x32x128xf32>
    %90 = vector.shape_cast %89 : vector<1x1x32x128xf32> to vector<32x128xf32>
    %cst_49 = arith.constant dense<0.000000e+00> : vector<2x128xf32>
    %91 = tpu.matmul %43, %90, %cst_49 {dimension_numbers = #tpu.dot_dimension_numbers<[1], [0], [0], [1], [0, 0, 1, 1], [], []>} : vector<2x32xf32>, vector<32x128xf32>, vector<2x128xf32> -> vector<2x128xf32>
    %cst_50 = arith.constant dense<0.000000e+00> : vector<2xf32>
    %92 = vector.multi_reduction <add>, %91, %cst_50 [1] : vector<2x128xf32> to vector<2xf32>
    %93 = vector.shape_cast %92 : vector<2xf32> to vector<2x1xf32>
    %cst_51 = arith.constant 1.280000e+02 : f32
    %94 = vector.broadcast %cst_51 : f32 to vector<2x1xf32>
    %95 = arith.divf %93, %94 : vector<2x1xf32>
    %96 = vector.broadcast %95 : vector<2x1xf32> to vector<2x128xf32>
    %97 = arith.subf %91, %96 : vector<2x128xf32>
    %98 = arith.mulf %97, %97 : vector<2x128xf32>
    %cst_52 = arith.constant dense<0.000000e+00> : vector<2xf32>
    %99 = vector.multi_reduction <add>, %98, %cst_52 [1] : vector<2x128xf32> to vector<2xf32>
    %100 = vector.shape_cast %99 : vector<2xf32> to vector<2x1xf32>
    %cst_53 = arith.constant 1.280000e+02 : f32
    %101 = vector.broadcast %cst_53 : f32 to vector<2x1xf32>
    %102 = arith.divf %100, %101 : vector<2x1xf32>
    %103 = vector.broadcast %95 : vector<2x1xf32> to vector<2x128xf32>
    %104 = arith.subf %91, %103 : vector<2x128xf32>
    %cst_54 = arith.constant 9.99999974E-6 : f32
    %105 = vector.broadcast %cst_54 : f32 to vector<2x1xf32>
    %106 = arith.addf %102, %105 : vector<2x1xf32>
    %107 = math.rsqrt %106 : vector<2x1xf32>
    %108 = vector.broadcast %107 : vector<2x1xf32> to vector<2x128xf32>
    %109 = arith.mulf %104, %108 : vector<2x128xf32>
    %110 = vector.extract_strided_slice %10 {offsets = [0, 2, 0], sizes = [1, 1, 128], strides = [1, 1, 1]} : vector<1x4x128xf32> to vector<1x1x128xf32>
    %111 = vector.shape_cast %110 : vector<1x1x128xf32> to vector<128xf32>
    %112 = vector.shape_cast %111 : vector<128xf32> to vector<1x128xf32>
    %113 = vector.broadcast %112 : vector<1x128xf32> to vector<2x128xf32>
    %114 = arith.mulf %109, %113 : vector<2x128xf32>
    %115 = vector.extract_strided_slice %10 {offsets = [0, 3, 0], sizes = [1, 1, 128], strides = [1, 1, 1]} : vector<1x4x128xf32> to vector<1x1x128xf32>
    %116 = vector.shape_cast %115 : vector<1x1x128xf32> to vector<128xf32>
    %117 = vector.shape_cast %116 : vector<128xf32> to vector<1x128xf32>
    %118 = vector.broadcast %117 : vector<1x128xf32> to vector<2x128xf32>
    %119 = arith.addf %114, %118 : vector<2x128xf32>
    %120 = arith.addf %88, %119 : vector<2x128xf32>
    %121 = vector.extract_strided_slice %120 {offsets = [0, 0], sizes = [2, 32], strides = [1, 1]} : vector<2x128xf32> to vector<2x32xf32>
    %122 = arith.negf %121 : vector<2x32xf32>
    %123 = math.exp %122 : vector<2x32xf32>
    %cst_55 = arith.constant 1.000000e+00 : f32
    %124 = vector.broadcast %cst_55 : f32 to vector<2x32xf32>
    %125 = arith.addf %124, %123 : vector<2x32xf32>
    %126 = arith.divf %124, %125 : vector<2x32xf32>
    %127 = vector.extract_strided_slice %120 {offsets = [0, 32], sizes = [2, 32], strides = [1, 1]} : vector<2x128xf32> to vector<2x32xf32>
    %128 = arith.negf %127 : vector<2x32xf32>
    %129 = math.exp %128 : vector<2x32xf32>
    %cst_56 = arith.constant 1.000000e+00 : f32
    %130 = vector.broadcast %cst_56 : f32 to vector<2x32xf32>
    %131 = arith.addf %130, %129 : vector<2x32xf32>
    %132 = arith.divf %130, %131 : vector<2x32xf32>
    %133 = vector.extract_strided_slice %120 {offsets = [0, 64], sizes = [2, 32], strides = [1, 1]} : vector<2x128xf32> to vector<2x32xf32>
    %134 = math.tanh %133 : vector<2x32xf32>
    %135 = vector.extract_strided_slice %120 {offsets = [0, 96], sizes = [2, 32], strides = [1, 1]} : vector<2x128xf32> to vector<2x32xf32>
    %136 = arith.negf %135 : vector<2x32xf32>
    %137 = math.exp %136 : vector<2x32xf32>
    %cst_57 = arith.constant 1.000000e+00 : f32
    %138 = vector.broadcast %cst_57 : f32 to vector<2x32xf32>
    %139 = arith.addf %138, %137 : vector<2x32xf32>
    %140 = arith.divf %138, %139 : vector<2x32xf32>
    %141 = arith.mulf %132, %44 : vector<2x32xf32>
    %142 = arith.mulf %126, %134 : vector<2x32xf32>
    %143 = arith.addf %141, %142 : vector<2x32xf32>
    %cst_58 = arith.constant dense<0.000000e+00> : vector<2xf32>
    %144 = vector.multi_reduction <add>, %143, %cst_58 [1] : vector<2x32xf32> to vector<2xf32>
    %145 = vector.shape_cast %144 : vector<2xf32> to vector<2x1xf32>
    %cst_59 = arith.constant 3.200000e+01 : f32
    %146 = vector.broadcast %cst_59 : f32 to vector<2x1xf32>
    %147 = arith.divf %145, %146 : vector<2x1xf32>
    %148 = vector.broadcast %147 : vector<2x1xf32> to vector<2x32xf32>
    %149 = arith.subf %143, %148 : vector<2x32xf32>
    %150 = arith.mulf %149, %149 : vector<2x32xf32>
    %cst_60 = arith.constant dense<0.000000e+00> : vector<2xf32>
    %151 = vector.multi_reduction <add>, %150, %cst_60 [1] : vector<2x32xf32> to vector<2xf32>
    %152 = vector.shape_cast %151 : vector<2xf32> to vector<2x1xf32>
    %cst_61 = arith.constant 3.200000e+01 : f32
    %153 = vector.broadcast %cst_61 : f32 to vector<2x1xf32>
    %154 = arith.divf %152, %153 : vector<2x1xf32>
    %155 = vector.broadcast %147 : vector<2x1xf32> to vector<2x32xf32>
    %156 = arith.subf %143, %155 : vector<2x32xf32>
    %cst_62 = arith.constant 9.99999974E-6 : f32
    %157 = vector.broadcast %cst_62 : f32 to vector<2x1xf32>
    %158 = arith.addf %154, %157 : vector<2x1xf32>
    %159 = math.rsqrt %158 : vector<2x1xf32>
    %160 = vector.broadcast %159 : vector<2x1xf32> to vector<2x32xf32>
    %161 = arith.mulf %156, %160 : vector<2x32xf32>
    %162 = vector.extract_strided_slice %11 {offsets = [0, 0, 0], sizes = [1, 1, 32], strides = [1, 1, 1]} : vector<1x2x32xf32> to vector<1x1x32xf32>
    %163 = vector.shape_cast %162 : vector<1x1x32xf32> to vector<32xf32>
    %164 = vector.shape_cast %163 : vector<32xf32> to vector<1x32xf32>
    %165 = vector.broadcast %164 : vector<1x32xf32> to vector<2x32xf32>
    %166 = arith.mulf %161, %165 : vector<2x32xf32>
    %167 = vector.extract_strided_slice %11 {offsets = [0, 1, 0], sizes = [1, 1, 32], strides = [1, 1, 1]} : vector<1x2x32xf32> to vector<1x1x32xf32>
    %168 = vector.shape_cast %167 : vector<1x1x32xf32> to vector<32xf32>
    %169 = vector.shape_cast %168 : vector<32xf32> to vector<1x32xf32>
    %170 = vector.broadcast %169 : vector<1x32xf32> to vector<2x32xf32>
    %171 = arith.addf %166, %170 : vector<2x32xf32>
    %172 = math.tanh %171 : vector<2x32xf32>
    %173 = arith.mulf %140, %172 : vector<2x32xf32>
    %174 = vector.shape_cast %173 : vector<2x32xf32> to vector<2x1x32xf32>
    "tpu.trace_start"() <{level = 10 : i32, message = "bqk,bnk->bqn"}> : () -> ()
    %cst_63 = arith.constant dense<0.000000e+00> : vector<2x1x8xf32>
    %175 = tpu.matmul %174, %20, %cst_63 {dimension_numbers = #tpu.dot_dimension_numbers<[2], [2], [1], [1], [0, 0, 0, 1, 1, 1], [0], [0]>} : vector<2x1x32xf32>, vector<2x8x32xf32>, vector<2x1x8xf32> -> vector<2x1x8xf32>
    "tpu.trace_stop"() : () -> ()
    %176 = vector.shape_cast %175 : vector<2x1x8xf32> to vector<2x8xf32>
    %cst_64 = arith.constant 1.000000e+00 : f32
    %177 = vector.broadcast %cst_64 : f32 to vector<2x8xf32>
    %178 = arith.mulf %176, %177 : vector<2x8xf32>
    %cst_65 = arith.constant 5.000000e-01 : f32
    %179 = vector.broadcast %cst_65 : f32 to vector<2x8xf32>
    %180 = arith.cmpf ogt, %13, %179 : vector<2x8xf32>
    %cst_66 = arith.constant -1.000000e+09 : f32
    %181 = vector.broadcast %cst_66 : f32 to vector<2x8xf32>
    %182 = arith.select %180, %178, %181 : vector<2x8xi1>, vector<2x8xf32>
    %c0_i32_67 = arith.constant 0 : i32
    %183 = vector.broadcast %c0_i32_67 : i32 to vector<2x8x8xi32>
    %184 = arith.cmpi eq, %47, %183 : vector<2x8x8xi32>
    %185 = vector.shape_cast %182 : vector<2x8xf32> to vector<2x1x8xf32>
    %186 = vector.shape_cast %185 : vector<2x1x8xf32> to vector<2x1x8xf32>
    %187 = vector.broadcast %186 : vector<2x1x8xf32> to vector<2x8x8xf32>
    %188 = arith.select %184, %187, %48 : vector<2x8x8xi1>, vector<2x8x8xf32>
    %189 = vector.extract_strided_slice %12 {offsets = [0, 0, 0], sizes = [2, 1, 8], strides = [1, 1, 1]} : vector<2x8x8xf32> to vector<2x1x8xf32>
    %190 = vector.shape_cast %189 : vector<2x1x8xf32> to vector<2x8xf32>
    %191 = arith.addf %182, %190 : vector<2x8xf32>
    %cst_68 = arith.constant dense<0xFF800000> : vector<2xf32>
    %192 = vector.multi_reduction <maximumf>, %191, %cst_68 [1] : vector<2x8xf32> to vector<2xf32>
    %193 = vector.shape_cast %192 : vector<2xf32> to vector<2x1xf32>
    %194 = vector.broadcast %193 : vector<2x1xf32> to vector<2x8xf32>
    %195 = arith.cmpf oge, %191, %194 : vector<2x8xf32>
    %c8_i32 = arith.constant 8 : i32
    %196 = vector.broadcast %c8_i32 : i32 to vector<2x8xi32>
    %197 = arith.select %195, %45, %196 : vector<2x8xi1>, vector<2x8xi32>
    %cst_69 = arith.constant dense<2147483647> : vector<2xi32>
    %198 = vector.multi_reduction <minsi>, %197, %cst_69 [1] : vector<2x8xi32> to vector<2xi32>
    %c0_i32_70 = arith.constant 0 : i32
    %199 = vector.broadcast %c0_i32_70 : i32 to vector<2x8xi32>
    %200 = arith.cmpi eq, %46, %199 : vector<2x8xi32>
    %201 = vector.shape_cast %198 : vector<2xi32> to vector<2x1xi32>
    %202 = vector.shape_cast %201 : vector<2x1xi32> to vector<2x1xi32>
    %203 = vector.broadcast %202 : vector<2x1xi32> to vector<2x8xi32>
    %204 = arith.select %200, %203, %49 : vector<2x8xi1>, vector<2x8xi32>
    %205 = vector.shape_cast %198 : vector<2xi32> to vector<2x1xi32>
    %206 = vector.broadcast %205 : vector<2x1xi32> to vector<2x8xi32>
    %207 = arith.cmpi eq, %45, %206 : vector<2x8xi32>
    %208 = arith.extui %207 : vector<2x8xi1> to vector<2x8xi32>
    %209 = arith.sitofp %208 : vector<2x8xi32> to vector<2x8xf32>
    %cst_71 = arith.constant 1.000000e+00 : f32
    %210 = vector.broadcast %cst_71 : f32 to vector<2x8xf32>
    %211 = arith.subf %210, %209 : vector<2x8xf32>
    %212 = arith.mulf %13, %211 : vector<2x8xf32>
    %213 = vector.shape_cast %209 : vector<2x8xf32> to vector<2x1x8xf32>
    "tpu.trace_start"() <{level = 10 : i32, message = "bqn,bnd->bqd"}> : () -> ()
    %cst_72 = arith.constant dense<0.000000e+00> : vector<2x1x32xf32>
    %214 = tpu.matmul %213, %41, %cst_72 {dimension_numbers = #tpu.dot_dimension_numbers<[2], [1], [1], [2], [0, 0, 0, 1, 1, 2], [0], [0]>} : vector<2x1x8xf32>, vector<2x8x32xf32>, vector<2x1x32xf32> -> vector<2x1x32xf32>
    "tpu.trace_stop"() : () -> ()
    %215 = vector.shape_cast %214 : vector<2x1x32xf32> to vector<2x32xf32>
    %216 = arith.addf %42, %215 : vector<2x32xf32>
    %cst_73 = arith.constant dense<0.000000e+00> : vector<2x32xf32>
    %217 = tpu.matmul %216, %7, %cst_73 {dimension_numbers = #tpu.dot_dimension_numbers<[1], [0], [0], [1], [0, 0, 1, 1], [], []>} : vector<2x32xf32>, vector<32x32xf32>, vector<2x32xf32> -> vector<2x32xf32>
    %218 = vector.broadcast %4 : vector<1x32xf32> to vector<2x32xf32>
    %219 = arith.addf %217, %218 : vector<2x32xf32>
    %cst_74 = arith.constant 0.000000e+00 : f32
    %220 = vector.broadcast %cst_74 : f32 to vector<2x32xf32>
    %221 = arith.maximumf %219, %220 : vector<2x32xf32>
    %cst_75 = arith.constant dense<0.000000e+00> : vector<2x32xf32>
    %222 = tpu.matmul %221, %8, %cst_75 {dimension_numbers = #tpu.dot_dimension_numbers<[1], [0], [0], [1], [0, 0, 1, 1], [], []>} : vector<2x32xf32>, vector<32x32xf32>, vector<2x32xf32> -> vector<2x32xf32>
    %223 = vector.broadcast %5 : vector<1x32xf32> to vector<2x32xf32>
    %224 = arith.addf %222, %223 : vector<2x32xf32>
    %225 = vector.extract_strided_slice %9 {offsets = [0, 0, 0, 0], sizes = [1, 1, 32, 128], strides = [1, 1, 1, 1]} : vector<1x2x32x128xf32> to vector<1x1x32x128xf32>
    %226 = vector.shape_cast %225 : vector<1x1x32x128xf32> to vector<32x128xf32>
    %cst_76 = arith.constant dense<0.000000e+00> : vector<2x128xf32>
    %227 = tpu.matmul %224, %226, %cst_76 {dimension_numbers = #tpu.dot_dimension_numbers<[1], [0], [0], [1], [0, 0, 1, 1], [], []>} : vector<2x32xf32>, vector<32x128xf32>, vector<2x128xf32> -> vector<2x128xf32>
    %cst_77 = arith.constant dense<0.000000e+00> : vector<2xf32>
    %228 = vector.multi_reduction <add>, %227, %cst_77 [1] : vector<2x128xf32> to vector<2xf32>
    %229 = vector.shape_cast %228 : vector<2xf32> to vector<2x1xf32>
    %cst_78 = arith.constant 1.280000e+02 : f32
    %230 = vector.broadcast %cst_78 : f32 to vector<2x1xf32>
    %231 = arith.divf %229, %230 : vector<2x1xf32>
    %232 = vector.broadcast %231 : vector<2x1xf32> to vector<2x128xf32>
    %233 = arith.subf %227, %232 : vector<2x128xf32>
    %234 = arith.mulf %233, %233 : vector<2x128xf32>
    %cst_79 = arith.constant dense<0.000000e+00> : vector<2xf32>
    %235 = vector.multi_reduction <add>, %234, %cst_79 [1] : vector<2x128xf32> to vector<2xf32>
    %236 = vector.shape_cast %235 : vector<2xf32> to vector<2x1xf32>
    %cst_80 = arith.constant 1.280000e+02 : f32
    %237 = vector.broadcast %cst_80 : f32 to vector<2x1xf32>
    %238 = arith.divf %236, %237 : vector<2x1xf32>
    %239 = vector.broadcast %231 : vector<2x1xf32> to vector<2x128xf32>
    %240 = arith.subf %227, %239 : vector<2x128xf32>
    %cst_81 = arith.constant 9.99999974E-6 : f32
    %241 = vector.broadcast %cst_81 : f32 to vector<2x1xf32>
    %242 = arith.addf %238, %241 : vector<2x1xf32>
    %243 = math.rsqrt %242 : vector<2x1xf32>
    %244 = vector.broadcast %243 : vector<2x1xf32> to vector<2x128xf32>
    %245 = arith.mulf %240, %244 : vector<2x128xf32>
    %246 = vector.extract_strided_slice %10 {offsets = [0, 0, 0], sizes = [1, 1, 128], strides = [1, 1, 1]} : vector<1x4x128xf32> to vector<1x1x128xf32>
    %247 = vector.shape_cast %246 : vector<1x1x128xf32> to vector<128xf32>
    %248 = vector.shape_cast %247 : vector<128xf32> to vector<1x128xf32>
    %249 = vector.broadcast %248 : vector<1x128xf32> to vector<2x128xf32>
    %250 = arith.mulf %245, %249 : vector<2x128xf32>
    %251 = vector.extract_strided_slice %10 {offsets = [0, 1, 0], sizes = [1, 1, 128], strides = [1, 1, 1]} : vector<1x4x128xf32> to vector<1x1x128xf32>
    %252 = vector.shape_cast %251 : vector<1x1x128xf32> to vector<128xf32>
    %253 = vector.shape_cast %252 : vector<128xf32> to vector<1x128xf32>
    %254 = vector.broadcast %253 : vector<1x128xf32> to vector<2x128xf32>
    %255 = arith.addf %250, %254 : vector<2x128xf32>
    %256 = vector.extract_strided_slice %9 {offsets = [0, 1, 0, 0], sizes = [1, 1, 32, 128], strides = [1, 1, 1, 1]} : vector<1x2x32x128xf32> to vector<1x1x32x128xf32>
    %257 = vector.shape_cast %256 : vector<1x1x32x128xf32> to vector<32x128xf32>
    %cst_82 = arith.constant dense<0.000000e+00> : vector<2x128xf32>
    %258 = tpu.matmul %173, %257, %cst_82 {dimension_numbers = #tpu.dot_dimension_numbers<[1], [0], [0], [1], [0, 0, 1, 1], [], []>} : vector<2x32xf32>, vector<32x128xf32>, vector<2x128xf32> -> vector<2x128xf32>
    %cst_83 = arith.constant dense<0.000000e+00> : vector<2xf32>
    %259 = vector.multi_reduction <add>, %258, %cst_83 [1] : vector<2x128xf32> to vector<2xf32>
    %260 = vector.shape_cast %259 : vector<2xf32> to vector<2x1xf32>
    %cst_84 = arith.constant 1.280000e+02 : f32
    %261 = vector.broadcast %cst_84 : f32 to vector<2x1xf32>
    %262 = arith.divf %260, %261 : vector<2x1xf32>
    %263 = vector.broadcast %262 : vector<2x1xf32> to vector<2x128xf32>
    %264 = arith.subf %258, %263 : vector<2x128xf32>
    %265 = arith.mulf %264, %264 : vector<2x128xf32>
    %cst_85 = arith.constant dense<0.000000e+00> : vector<2xf32>
    %266 = vector.multi_reduction <add>, %265, %cst_85 [1] : vector<2x128xf32> to vector<2xf32>
    %267 = vector.shape_cast %266 : vector<2xf32> to vector<2x1xf32>
    %cst_86 = arith.constant 1.280000e+02 : f32
    %268 = vector.broadcast %cst_86 : f32 to vector<2x1xf32>
    %269 = arith.divf %267, %268 : vector<2x1xf32>
    %270 = vector.broadcast %262 : vector<2x1xf32> to vector<2x128xf32>
    %271 = arith.subf %258, %270 : vector<2x128xf32>
    %cst_87 = arith.constant 9.99999974E-6 : f32
    %272 = vector.broadcast %cst_87 : f32 to vector<2x1xf32>
    %273 = arith.addf %269, %272 : vector<2x1xf32>
    %274 = math.rsqrt %273 : vector<2x1xf32>
    %275 = vector.broadcast %274 : vector<2x1xf32> to vector<2x128xf32>
    %276 = arith.mulf %271, %275 : vector<2x128xf32>
    %277 = vector.extract_strided_slice %10 {offsets = [0, 2, 0], sizes = [1, 1, 128], strides = [1, 1, 1]} : vector<1x4x128xf32> to vector<1x1x128xf32>
    %278 = vector.shape_cast %277 : vector<1x1x128xf32> to vector<128xf32>
    %279 = vector.shape_cast %278 : vector<128xf32> to vector<1x128xf32>
    %280 = vector.broadcast %279 : vector<1x128xf32> to vector<2x128xf32>
    %281 = arith.mulf %276, %280 : vector<2x128xf32>
    %282 = vector.extract_strided_slice %10 {offsets = [0, 3, 0], sizes = [1, 1, 128], strides = [1, 1, 1]} : vector<1x4x128xf32> to vector<1x1x128xf32>
    %283 = vector.shape_cast %282 : vector<1x1x128xf32> to vector<128xf32>
    %284 = vector.shape_cast %283 : vector<128xf32> to vector<1x128xf32>
    %285 = vector.broadcast %284 : vector<1x128xf32> to vector<2x128xf32>
    %286 = arith.addf %281, %285 : vector<2x128xf32>
    %287 = arith.addf %255, %286 : vector<2x128xf32>
    %288 = vector.extract_strided_slice %287 {offsets = [0, 0], sizes = [2, 32], strides = [1, 1]} : vector<2x128xf32> to vector<2x32xf32>
    %289 = arith.negf %288 : vector<2x32xf32>
    %290 = math.exp %289 : vector<2x32xf32>
    %cst_88 = arith.constant 1.000000e+00 : f32
    %291 = vector.broadcast %cst_88 : f32 to vector<2x32xf32>
    %292 = arith.addf %291, %290 : vector<2x32xf32>
    %293 = arith.divf %291, %292 : vector<2x32xf32>
    %294 = vector.extract_strided_slice %287 {offsets = [0, 32], sizes = [2, 32], strides = [1, 1]} : vector<2x128xf32> to vector<2x32xf32>
    %295 = arith.negf %294 : vector<2x32xf32>
    %296 = math.exp %295 : vector<2x32xf32>
    %cst_89 = arith.constant 1.000000e+00 : f32
    %297 = vector.broadcast %cst_89 : f32 to vector<2x32xf32>
    %298 = arith.addf %297, %296 : vector<2x32xf32>
    %299 = arith.divf %297, %298 : vector<2x32xf32>
    %300 = vector.extract_strided_slice %287 {offsets = [0, 64], sizes = [2, 32], strides = [1, 1]} : vector<2x128xf32> to vector<2x32xf32>
    %301 = math.tanh %300 : vector<2x32xf32>
    %302 = vector.extract_strided_slice %287 {offsets = [0, 96], sizes = [2, 32], strides = [1, 1]} : vector<2x128xf32> to vector<2x32xf32>
    %303 = arith.negf %302 : vector<2x32xf32>
    %304 = math.exp %303 : vector<2x32xf32>
    %cst_90 = arith.constant 1.000000e+00 : f32
    %305 = vector.broadcast %cst_90 : f32 to vector<2x32xf32>
    %306 = arith.addf %305, %304 : vector<2x32xf32>
    %307 = arith.divf %305, %306 : vector<2x32xf32>
    %308 = arith.mulf %299, %171 : vector<2x32xf32>
    %309 = arith.mulf %293, %301 : vector<2x32xf32>
    %310 = arith.addf %308, %309 : vector<2x32xf32>
    %cst_91 = arith.constant dense<0.000000e+00> : vector<2xf32>
    %311 = vector.multi_reduction <add>, %310, %cst_91 [1] : vector<2x32xf32> to vector<2xf32>
    %312 = vector.shape_cast %311 : vector<2xf32> to vector<2x1xf32>
    %cst_92 = arith.constant 3.200000e+01 : f32
    %313 = vector.broadcast %cst_92 : f32 to vector<2x1xf32>
    %314 = arith.divf %312, %313 : vector<2x1xf32>
    %315 = vector.broadcast %314 : vector<2x1xf32> to vector<2x32xf32>
    %316 = arith.subf %310, %315 : vector<2x32xf32>
    %317 = arith.mulf %316, %316 : vector<2x32xf32>
    %cst_93 = arith.constant dense<0.000000e+00> : vector<2xf32>
    %318 = vector.multi_reduction <add>, %317, %cst_93 [1] : vector<2x32xf32> to vector<2xf32>
    %319 = vector.shape_cast %318 : vector<2xf32> to vector<2x1xf32>
    %cst_94 = arith.constant 3.200000e+01 : f32
    %320 = vector.broadcast %cst_94 : f32 to vector<2x1xf32>
    %321 = arith.divf %319, %320 : vector<2x1xf32>
    %322 = vector.broadcast %314 : vector<2x1xf32> to vector<2x32xf32>
    %323 = arith.subf %310, %322 : vector<2x32xf32>
    %cst_95 = arith.constant 9.99999974E-6 : f32
    %324 = vector.broadcast %cst_95 : f32 to vector<2x1xf32>
    %325 = arith.addf %321, %324 : vector<2x1xf32>
    %326 = math.rsqrt %325 : vector<2x1xf32>
    %327 = vector.broadcast %326 : vector<2x1xf32> to vector<2x32xf32>
    %328 = arith.mulf %323, %327 : vector<2x32xf32>
    %329 = vector.extract_strided_slice %11 {offsets = [0, 0, 0], sizes = [1, 1, 32], strides = [1, 1, 1]} : vector<1x2x32xf32> to vector<1x1x32xf32>
    %330 = vector.shape_cast %329 : vector<1x1x32xf32> to vector<32xf32>
    %331 = vector.shape_cast %330 : vector<32xf32> to vector<1x32xf32>
    %332 = vector.broadcast %331 : vector<1x32xf32> to vector<2x32xf32>
    %333 = arith.mulf %328, %332 : vector<2x32xf32>
    %334 = vector.extract_strided_slice %11 {offsets = [0, 1, 0], sizes = [1, 1, 32], strides = [1, 1, 1]} : vector<1x2x32xf32> to vector<1x1x32xf32>
    %335 = vector.shape_cast %334 : vector<1x1x32xf32> to vector<32xf32>
    %336 = vector.shape_cast %335 : vector<32xf32> to vector<1x32xf32>
    %337 = vector.broadcast %336 : vector<1x32xf32> to vector<2x32xf32>
    %338 = arith.addf %333, %337 : vector<2x32xf32>
    %339 = math.tanh %338 : vector<2x32xf32>
    %340 = arith.mulf %307, %339 : vector<2x32xf32>
    %341 = vector.shape_cast %340 : vector<2x32xf32> to vector<2x1x32xf32>
    "tpu.trace_start"() <{level = 10 : i32, message = "bqk,bnk->bqn"}> : () -> ()
    %cst_96 = arith.constant dense<0.000000e+00> : vector<2x1x8xf32>
    %342 = tpu.matmul %341, %20, %cst_96 {dimension_numbers = #tpu.dot_dimension_numbers<[2], [2], [1], [1], [0, 0, 0, 1, 1, 1], [0], [0]>} : vector<2x1x32xf32>, vector<2x8x32xf32>, vector<2x1x8xf32> -> vector<2x1x8xf32>
    "tpu.trace_stop"() : () -> ()
    %343 = vector.shape_cast %342 : vector<2x1x8xf32> to vector<2x8xf32>
    %cst_97 = arith.constant 1.000000e+00 : f32
    %344 = vector.broadcast %cst_97 : f32 to vector<2x8xf32>
    %345 = arith.mulf %343, %344 : vector<2x8xf32>
    %cst_98 = arith.constant 5.000000e-01 : f32
    %346 = vector.broadcast %cst_98 : f32 to vector<2x8xf32>
    %347 = arith.cmpf ogt, %212, %346 : vector<2x8xf32>
    %cst_99 = arith.constant -1.000000e+09 : f32
    %348 = vector.broadcast %cst_99 : f32 to vector<2x8xf32>
    %349 = arith.select %347, %345, %348 : vector<2x8xi1>, vector<2x8xf32>
    %c1_i32 = arith.constant 1 : i32
    %350 = vector.broadcast %c1_i32 : i32 to vector<2x8x8xi32>
    %351 = arith.cmpi eq, %47, %350 : vector<2x8x8xi32>
    %352 = vector.shape_cast %349 : vector<2x8xf32> to vector<2x1x8xf32>
    %353 = vector.shape_cast %352 : vector<2x1x8xf32> to vector<2x1x8xf32>
    %354 = vector.broadcast %353 : vector<2x1x8xf32> to vector<2x8x8xf32>
    %355 = arith.select %351, %354, %188 : vector<2x8x8xi1>, vector<2x8x8xf32>
    %356 = vector.extract_strided_slice %12 {offsets = [0, 1, 0], sizes = [2, 1, 8], strides = [1, 1, 1]} : vector<2x8x8xf32> to vector<2x1x8xf32>
    %357 = vector.shape_cast %356 : vector<2x1x8xf32> to vector<2x8xf32>
    %358 = arith.addf %349, %357 : vector<2x8xf32>
    %cst_100 = arith.constant dense<0xFF800000> : vector<2xf32>
    %359 = vector.multi_reduction <maximumf>, %358, %cst_100 [1] : vector<2x8xf32> to vector<2xf32>
    %360 = vector.shape_cast %359 : vector<2xf32> to vector<2x1xf32>
    %361 = vector.broadcast %360 : vector<2x1xf32> to vector<2x8xf32>
    %362 = arith.cmpf oge, %358, %361 : vector<2x8xf32>
    %c8_i32_101 = arith.constant 8 : i32
    %363 = vector.broadcast %c8_i32_101 : i32 to vector<2x8xi32>
    %364 = arith.select %362, %45, %363 : vector<2x8xi1>, vector<2x8xi32>
    %cst_102 = arith.constant dense<2147483647> : vector<2xi32>
    %365 = vector.multi_reduction <minsi>, %364, %cst_102 [1] : vector<2x8xi32> to vector<2xi32>
    %c1_i32_103 = arith.constant 1 : i32
    %366 = vector.broadcast %c1_i32_103 : i32 to vector<2x8xi32>
    %367 = arith.cmpi eq, %46, %366 : vector<2x8xi32>
    %368 = vector.shape_cast %365 : vector<2xi32> to vector<2x1xi32>
    %369 = vector.shape_cast %368 : vector<2x1xi32> to vector<2x1xi32>
    %370 = vector.broadcast %369 : vector<2x1xi32> to vector<2x8xi32>
    %371 = arith.select %367, %370, %204 : vector<2x8xi1>, vector<2x8xi32>
    %372 = vector.shape_cast %365 : vector<2xi32> to vector<2x1xi32>
    %373 = vector.broadcast %372 : vector<2x1xi32> to vector<2x8xi32>
    %374 = arith.cmpi eq, %45, %373 : vector<2x8xi32>
    %375 = arith.extui %374 : vector<2x8xi1> to vector<2x8xi32>
    %376 = arith.sitofp %375 : vector<2x8xi32> to vector<2x8xf32>
    %cst_104 = arith.constant 1.000000e+00 : f32
    %377 = vector.broadcast %cst_104 : f32 to vector<2x8xf32>
    %378 = arith.subf %377, %376 : vector<2x8xf32>
    %379 = arith.mulf %212, %378 : vector<2x8xf32>
    %380 = vector.shape_cast %376 : vector<2x8xf32> to vector<2x1x8xf32>
    "tpu.trace_start"() <{level = 10 : i32, message = "bqn,bnd->bqd"}> : () -> ()
    %cst_105 = arith.constant dense<0.000000e+00> : vector<2x1x32xf32>
    %381 = tpu.matmul %380, %41, %cst_105 {dimension_numbers = #tpu.dot_dimension_numbers<[2], [1], [1], [2], [0, 0, 0, 1, 1, 2], [0], [0]>} : vector<2x1x8xf32>, vector<2x8x32xf32>, vector<2x1x32xf32> -> vector<2x1x32xf32>
    "tpu.trace_stop"() : () -> ()
    %382 = vector.shape_cast %381 : vector<2x1x32xf32> to vector<2x32xf32>
    %383 = arith.addf %216, %382 : vector<2x32xf32>
    %cst_106 = arith.constant dense<0.000000e+00> : vector<2x32xf32>
    %384 = tpu.matmul %383, %7, %cst_106 {dimension_numbers = #tpu.dot_dimension_numbers<[1], [0], [0], [1], [0, 0, 1, 1], [], []>} : vector<2x32xf32>, vector<32x32xf32>, vector<2x32xf32> -> vector<2x32xf32>
    %385 = vector.broadcast %4 : vector<1x32xf32> to vector<2x32xf32>
    %386 = arith.addf %384, %385 : vector<2x32xf32>
    %cst_107 = arith.constant 0.000000e+00 : f32
    %387 = vector.broadcast %cst_107 : f32 to vector<2x32xf32>
    %388 = arith.maximumf %386, %387 : vector<2x32xf32>
    %cst_108 = arith.constant dense<0.000000e+00> : vector<2x32xf32>
    %389 = tpu.matmul %388, %8, %cst_108 {dimension_numbers = #tpu.dot_dimension_numbers<[1], [0], [0], [1], [0, 0, 1, 1], [], []>} : vector<2x32xf32>, vector<32x32xf32>, vector<2x32xf32> -> vector<2x32xf32>
    %390 = vector.broadcast %5 : vector<1x32xf32> to vector<2x32xf32>
    %391 = arith.addf %389, %390 : vector<2x32xf32>
    %392 = vector.extract_strided_slice %9 {offsets = [0, 0, 0, 0], sizes = [1, 1, 32, 128], strides = [1, 1, 1, 1]} : vector<1x2x32x128xf32> to vector<1x1x32x128xf32>
    %393 = vector.shape_cast %392 : vector<1x1x32x128xf32> to vector<32x128xf32>
    %cst_109 = arith.constant dense<0.000000e+00> : vector<2x128xf32>
    %394 = tpu.matmul %391, %393, %cst_109 {dimension_numbers = #tpu.dot_dimension_numbers<[1], [0], [0], [1], [0, 0, 1, 1], [], []>} : vector<2x32xf32>, vector<32x128xf32>, vector<2x128xf32> -> vector<2x128xf32>
    %cst_110 = arith.constant dense<0.000000e+00> : vector<2xf32>
    %395 = vector.multi_reduction <add>, %394, %cst_110 [1] : vector<2x128xf32> to vector<2xf32>
    %396 = vector.shape_cast %395 : vector<2xf32> to vector<2x1xf32>
    %cst_111 = arith.constant 1.280000e+02 : f32
    %397 = vector.broadcast %cst_111 : f32 to vector<2x1xf32>
    %398 = arith.divf %396, %397 : vector<2x1xf32>
    %399 = vector.broadcast %398 : vector<2x1xf32> to vector<2x128xf32>
    %400 = arith.subf %394, %399 : vector<2x128xf32>
    %401 = arith.mulf %400, %400 : vector<2x128xf32>
    %cst_112 = arith.constant dense<0.000000e+00> : vector<2xf32>
    %402 = vector.multi_reduction <add>, %401, %cst_112 [1] : vector<2x128xf32> to vector<2xf32>
    %403 = vector.shape_cast %402 : vector<2xf32> to vector<2x1xf32>
    %cst_113 = arith.constant 1.280000e+02 : f32
    %404 = vector.broadcast %cst_113 : f32 to vector<2x1xf32>
    %405 = arith.divf %403, %404 : vector<2x1xf32>
    %406 = vector.broadcast %398 : vector<2x1xf32> to vector<2x128xf32>
    %407 = arith.subf %394, %406 : vector<2x128xf32>
    %cst_114 = arith.constant 9.99999974E-6 : f32
    %408 = vector.broadcast %cst_114 : f32 to vector<2x1xf32>
    %409 = arith.addf %405, %408 : vector<2x1xf32>
    %410 = math.rsqrt %409 : vector<2x1xf32>
    %411 = vector.broadcast %410 : vector<2x1xf32> to vector<2x128xf32>
    %412 = arith.mulf %407, %411 : vector<2x128xf32>
    %413 = vector.extract_strided_slice %10 {offsets = [0, 0, 0], sizes = [1, 1, 128], strides = [1, 1, 1]} : vector<1x4x128xf32> to vector<1x1x128xf32>
    %414 = vector.shape_cast %413 : vector<1x1x128xf32> to vector<128xf32>
    %415 = vector.shape_cast %414 : vector<128xf32> to vector<1x128xf32>
    %416 = vector.broadcast %415 : vector<1x128xf32> to vector<2x128xf32>
    %417 = arith.mulf %412, %416 : vector<2x128xf32>
    %418 = vector.extract_strided_slice %10 {offsets = [0, 1, 0], sizes = [1, 1, 128], strides = [1, 1, 1]} : vector<1x4x128xf32> to vector<1x1x128xf32>
    %419 = vector.shape_cast %418 : vector<1x1x128xf32> to vector<128xf32>
    %420 = vector.shape_cast %419 : vector<128xf32> to vector<1x128xf32>
    %421 = vector.broadcast %420 : vector<1x128xf32> to vector<2x128xf32>
    %422 = arith.addf %417, %421 : vector<2x128xf32>
    %423 = vector.extract_strided_slice %9 {offsets = [0, 1, 0, 0], sizes = [1, 1, 32, 128], strides = [1, 1, 1, 1]} : vector<1x2x32x128xf32> to vector<1x1x32x128xf32>
    %424 = vector.shape_cast %423 : vector<1x1x32x128xf32> to vector<32x128xf32>
    %cst_115 = arith.constant dense<0.000000e+00> : vector<2x128xf32>
    %425 = tpu.matmul %340, %424, %cst_115 {dimension_numbers = #tpu.dot_dimension_numbers<[1], [0], [0], [1], [0, 0, 1, 1], [], []>} : vector<2x32xf32>, vector<32x128xf32>, vector<2x128xf32> -> vector<2x128xf32>
    %cst_116 = arith.constant dense<0.000000e+00> : vector<2xf32>
    %426 = vector.multi_reduction <add>, %425, %cst_116 [1] : vector<2x128xf32> to vector<2xf32>
    %427 = vector.shape_cast %426 : vector<2xf32> to vector<2x1xf32>
    %cst_117 = arith.constant 1.280000e+02 : f32
    %428 = vector.broadcast %cst_117 : f32 to vector<2x1xf32>
    %429 = arith.divf %427, %428 : vector<2x1xf32>
    %430 = vector.broadcast %429 : vector<2x1xf32> to vector<2x128xf32>
    %431 = arith.subf %425, %430 : vector<2x128xf32>
    %432 = arith.mulf %431, %431 : vector<2x128xf32>
    %cst_118 = arith.constant dense<0.000000e+00> : vector<2xf32>
    %433 = vector.multi_reduction <add>, %432, %cst_118 [1] : vector<2x128xf32> to vector<2xf32>
    %434 = vector.shape_cast %433 : vector<2xf32> to vector<2x1xf32>
    %cst_119 = arith.constant 1.280000e+02 : f32
    %435 = vector.broadcast %cst_119 : f32 to vector<2x1xf32>
    %436 = arith.divf %434, %435 : vector<2x1xf32>
    %437 = vector.broadcast %429 : vector<2x1xf32> to vector<2x128xf32>
    %438 = arith.subf %425, %437 : vector<2x128xf32>
    %cst_120 = arith.constant 9.99999974E-6 : f32
    %439 = vector.broadcast %cst_120 : f32 to vector<2x1xf32>
    %440 = arith.addf %436, %439 : vector<2x1xf32>
    %441 = math.rsqrt %440 : vector<2x1xf32>
    %442 = vector.broadcast %441 : vector<2x1xf32> to vector<2x128xf32>
    %443 = arith.mulf %438, %442 : vector<2x128xf32>
    %444 = vector.extract_strided_slice %10 {offsets = [0, 2, 0], sizes = [1, 1, 128], strides = [1, 1, 1]} : vector<1x4x128xf32> to vector<1x1x128xf32>
    %445 = vector.shape_cast %444 : vector<1x1x128xf32> to vector<128xf32>
    %446 = vector.shape_cast %445 : vector<128xf32> to vector<1x128xf32>
    %447 = vector.broadcast %446 : vector<1x128xf32> to vector<2x128xf32>
    %448 = arith.mulf %443, %447 : vector<2x128xf32>
    %449 = vector.extract_strided_slice %10 {offsets = [0, 3, 0], sizes = [1, 1, 128], strides = [1, 1, 1]} : vector<1x4x128xf32> to vector<1x1x128xf32>
    %450 = vector.shape_cast %449 : vector<1x1x128xf32> to vector<128xf32>
    %451 = vector.shape_cast %450 : vector<128xf32> to vector<1x128xf32>
    %452 = vector.broadcast %451 : vector<1x128xf32> to vector<2x128xf32>
    %453 = arith.addf %448, %452 : vector<2x128xf32>
    %454 = arith.addf %422, %453 : vector<2x128xf32>
    %455 = vector.extract_strided_slice %454 {offsets = [0, 0], sizes = [2, 32], strides = [1, 1]} : vector<2x128xf32> to vector<2x32xf32>
    %456 = arith.negf %455 : vector<2x32xf32>
    %457 = math.exp %456 : vector<2x32xf32>
    %cst_121 = arith.constant 1.000000e+00 : f32
    %458 = vector.broadcast %cst_121 : f32 to vector<2x32xf32>
    %459 = arith.addf %458, %457 : vector<2x32xf32>
    %460 = arith.divf %458, %459 : vector<2x32xf32>
    %461 = vector.extract_strided_slice %454 {offsets = [0, 32], sizes = [2, 32], strides = [1, 1]} : vector<2x128xf32> to vector<2x32xf32>
    %462 = arith.negf %461 : vector<2x32xf32>
    %463 = math.exp %462 : vector<2x32xf32>
    %cst_122 = arith.constant 1.000000e+00 : f32
    %464 = vector.broadcast %cst_122 : f32 to vector<2x32xf32>
    %465 = arith.addf %464, %463 : vector<2x32xf32>
    %466 = arith.divf %464, %465 : vector<2x32xf32>
    %467 = vector.extract_strided_slice %454 {offsets = [0, 64], sizes = [2, 32], strides = [1, 1]} : vector<2x128xf32> to vector<2x32xf32>
    %468 = math.tanh %467 : vector<2x32xf32>
    %469 = vector.extract_strided_slice %454 {offsets = [0, 96], sizes = [2, 32], strides = [1, 1]} : vector<2x128xf32> to vector<2x32xf32>
    %470 = arith.negf %469 : vector<2x32xf32>
    %471 = math.exp %470 : vector<2x32xf32>
    %cst_123 = arith.constant 1.000000e+00 : f32
    %472 = vector.broadcast %cst_123 : f32 to vector<2x32xf32>
    %473 = arith.addf %472, %471 : vector<2x32xf32>
    %474 = arith.divf %472, %473 : vector<2x32xf32>
    %475 = arith.mulf %466, %338 : vector<2x32xf32>
    %476 = arith.mulf %460, %468 : vector<2x32xf32>
    %477 = arith.addf %475, %476 : vector<2x32xf32>
    %cst_124 = arith.constant dense<0.000000e+00> : vector<2xf32>
    %478 = vector.multi_reduction <add>, %477, %cst_124 [1] : vector<2x32xf32> to vector<2xf32>
    %479 = vector.shape_cast %478 : vector<2xf32> to vector<2x1xf32>
    %cst_125 = arith.constant 3.200000e+01 : f32
    %480 = vector.broadcast %cst_125 : f32 to vector<2x1xf32>
    %481 = arith.divf %479, %480 : vector<2x1xf32>
    %482 = vector.broadcast %481 : vector<2x1xf32> to vector<2x32xf32>
    %483 = arith.subf %477, %482 : vector<2x32xf32>
    %484 = arith.mulf %483, %483 : vector<2x32xf32>
    %cst_126 = arith.constant dense<0.000000e+00> : vector<2xf32>
    %485 = vector.multi_reduction <add>, %484, %cst_126 [1] : vector<2x32xf32> to vector<2xf32>
    %486 = vector.shape_cast %485 : vector<2xf32> to vector<2x1xf32>
    %cst_127 = arith.constant 3.200000e+01 : f32
    %487 = vector.broadcast %cst_127 : f32 to vector<2x1xf32>
    %488 = arith.divf %486, %487 : vector<2x1xf32>
    %489 = vector.broadcast %481 : vector<2x1xf32> to vector<2x32xf32>
    %490 = arith.subf %477, %489 : vector<2x32xf32>
    %cst_128 = arith.constant 9.99999974E-6 : f32
    %491 = vector.broadcast %cst_128 : f32 to vector<2x1xf32>
    %492 = arith.addf %488, %491 : vector<2x1xf32>
    %493 = math.rsqrt %492 : vector<2x1xf32>
    %494 = vector.broadcast %493 : vector<2x1xf32> to vector<2x32xf32>
    %495 = arith.mulf %490, %494 : vector<2x32xf32>
    %496 = vector.extract_strided_slice %11 {offsets = [0, 0, 0], sizes = [1, 1, 32], strides = [1, 1, 1]} : vector<1x2x32xf32> to vector<1x1x32xf32>
    %497 = vector.shape_cast %496 : vector<1x1x32xf32> to vector<32xf32>
    %498 = vector.shape_cast %497 : vector<32xf32> to vector<1x32xf32>
    %499 = vector.broadcast %498 : vector<1x32xf32> to vector<2x32xf32>
    %500 = arith.mulf %495, %499 : vector<2x32xf32>
    %501 = vector.extract_strided_slice %11 {offsets = [0, 1, 0], sizes = [1, 1, 32], strides = [1, 1, 1]} : vector<1x2x32xf32> to vector<1x1x32xf32>
    %502 = vector.shape_cast %501 : vector<1x1x32xf32> to vector<32xf32>
    %503 = vector.shape_cast %502 : vector<32xf32> to vector<1x32xf32>
    %504 = vector.broadcast %503 : vector<1x32xf32> to vector<2x32xf32>
    %505 = arith.addf %500, %504 : vector<2x32xf32>
    %506 = math.tanh %505 : vector<2x32xf32>
    %507 = arith.mulf %474, %506 : vector<2x32xf32>
    %508 = vector.shape_cast %507 : vector<2x32xf32> to vector<2x1x32xf32>
    "tpu.trace_start"() <{level = 10 : i32, message = "bqk,bnk->bqn"}> : () -> ()
    %cst_129 = arith.constant dense<0.000000e+00> : vector<2x1x8xf32>
    %509 = tpu.matmul %508, %20, %cst_129 {dimension_numbers = #tpu.dot_dimension_numbers<[2], [2], [1], [1], [0, 0, 0, 1, 1, 1], [0], [0]>} : vector<2x1x32xf32>, vector<2x8x32xf32>, vector<2x1x8xf32> -> vector<2x1x8xf32>
    "tpu.trace_stop"() : () -> ()
    %510 = vector.shape_cast %509 : vector<2x1x8xf32> to vector<2x8xf32>
    %cst_130 = arith.constant 1.000000e+00 : f32
    %511 = vector.broadcast %cst_130 : f32 to vector<2x8xf32>
    %512 = arith.mulf %510, %511 : vector<2x8xf32>
    %cst_131 = arith.constant 5.000000e-01 : f32
    %513 = vector.broadcast %cst_131 : f32 to vector<2x8xf32>
    %514 = arith.cmpf ogt, %379, %513 : vector<2x8xf32>
    %cst_132 = arith.constant -1.000000e+09 : f32
    %515 = vector.broadcast %cst_132 : f32 to vector<2x8xf32>
    %516 = arith.select %514, %512, %515 : vector<2x8xi1>, vector<2x8xf32>
    %c2_i32 = arith.constant 2 : i32
    %517 = vector.broadcast %c2_i32 : i32 to vector<2x8x8xi32>
    %518 = arith.cmpi eq, %47, %517 : vector<2x8x8xi32>
    %519 = vector.shape_cast %516 : vector<2x8xf32> to vector<2x1x8xf32>
    %520 = vector.shape_cast %519 : vector<2x1x8xf32> to vector<2x1x8xf32>
    %521 = vector.broadcast %520 : vector<2x1x8xf32> to vector<2x8x8xf32>
    %522 = arith.select %518, %521, %355 : vector<2x8x8xi1>, vector<2x8x8xf32>
    %523 = vector.extract_strided_slice %12 {offsets = [0, 2, 0], sizes = [2, 1, 8], strides = [1, 1, 1]} : vector<2x8x8xf32> to vector<2x1x8xf32>
    %524 = vector.shape_cast %523 : vector<2x1x8xf32> to vector<2x8xf32>
    %525 = arith.addf %516, %524 : vector<2x8xf32>
    %cst_133 = arith.constant dense<0xFF800000> : vector<2xf32>
    %526 = vector.multi_reduction <maximumf>, %525, %cst_133 [1] : vector<2x8xf32> to vector<2xf32>
    %527 = vector.shape_cast %526 : vector<2xf32> to vector<2x1xf32>
    %528 = vector.broadcast %527 : vector<2x1xf32> to vector<2x8xf32>
    %529 = arith.cmpf oge, %525, %528 : vector<2x8xf32>
    %c8_i32_134 = arith.constant 8 : i32
    %530 = vector.broadcast %c8_i32_134 : i32 to vector<2x8xi32>
    %531 = arith.select %529, %45, %530 : vector<2x8xi1>, vector<2x8xi32>
    %cst_135 = arith.constant dense<2147483647> : vector<2xi32>
    %532 = vector.multi_reduction <minsi>, %531, %cst_135 [1] : vector<2x8xi32> to vector<2xi32>
    %c2_i32_136 = arith.constant 2 : i32
    %533 = vector.broadcast %c2_i32_136 : i32 to vector<2x8xi32>
    %534 = arith.cmpi eq, %46, %533 : vector<2x8xi32>
    %535 = vector.shape_cast %532 : vector<2xi32> to vector<2x1xi32>
    %536 = vector.shape_cast %535 : vector<2x1xi32> to vector<2x1xi32>
    %537 = vector.broadcast %536 : vector<2x1xi32> to vector<2x8xi32>
    %538 = arith.select %534, %537, %371 : vector<2x8xi1>, vector<2x8xi32>
    %539 = vector.shape_cast %532 : vector<2xi32> to vector<2x1xi32>
    %540 = vector.broadcast %539 : vector<2x1xi32> to vector<2x8xi32>
    %541 = arith.cmpi eq, %45, %540 : vector<2x8xi32>
    %542 = arith.extui %541 : vector<2x8xi1> to vector<2x8xi32>
    %543 = arith.sitofp %542 : vector<2x8xi32> to vector<2x8xf32>
    %cst_137 = arith.constant 1.000000e+00 : f32
    %544 = vector.broadcast %cst_137 : f32 to vector<2x8xf32>
    %545 = arith.subf %544, %543 : vector<2x8xf32>
    %546 = arith.mulf %379, %545 : vector<2x8xf32>
    %547 = vector.shape_cast %543 : vector<2x8xf32> to vector<2x1x8xf32>
    "tpu.trace_start"() <{level = 10 : i32, message = "bqn,bnd->bqd"}> : () -> ()
    %cst_138 = arith.constant dense<0.000000e+00> : vector<2x1x32xf32>
    %548 = tpu.matmul %547, %41, %cst_138 {dimension_numbers = #tpu.dot_dimension_numbers<[2], [1], [1], [2], [0, 0, 0, 1, 1, 2], [0], [0]>} : vector<2x1x8xf32>, vector<2x8x32xf32>, vector<2x1x32xf32> -> vector<2x1x32xf32>
    "tpu.trace_stop"() : () -> ()
    %549 = vector.shape_cast %548 : vector<2x1x32xf32> to vector<2x32xf32>
    %550 = arith.addf %383, %549 : vector<2x32xf32>
    %cst_139 = arith.constant dense<0.000000e+00> : vector<2x32xf32>
    %551 = tpu.matmul %550, %7, %cst_139 {dimension_numbers = #tpu.dot_dimension_numbers<[1], [0], [0], [1], [0, 0, 1, 1], [], []>} : vector<2x32xf32>, vector<32x32xf32>, vector<2x32xf32> -> vector<2x32xf32>
    %552 = vector.broadcast %4 : vector<1x32xf32> to vector<2x32xf32>
    %553 = arith.addf %551, %552 : vector<2x32xf32>
    %cst_140 = arith.constant 0.000000e+00 : f32
    %554 = vector.broadcast %cst_140 : f32 to vector<2x32xf32>
    %555 = arith.maximumf %553, %554 : vector<2x32xf32>
    %cst_141 = arith.constant dense<0.000000e+00> : vector<2x32xf32>
    %556 = tpu.matmul %555, %8, %cst_141 {dimension_numbers = #tpu.dot_dimension_numbers<[1], [0], [0], [1], [0, 0, 1, 1], [], []>} : vector<2x32xf32>, vector<32x32xf32>, vector<2x32xf32> -> vector<2x32xf32>
    %557 = vector.broadcast %5 : vector<1x32xf32> to vector<2x32xf32>
    %558 = arith.addf %556, %557 : vector<2x32xf32>
    %559 = vector.extract_strided_slice %9 {offsets = [0, 0, 0, 0], sizes = [1, 1, 32, 128], strides = [1, 1, 1, 1]} : vector<1x2x32x128xf32> to vector<1x1x32x128xf32>
    %560 = vector.shape_cast %559 : vector<1x1x32x128xf32> to vector<32x128xf32>
    %cst_142 = arith.constant dense<0.000000e+00> : vector<2x128xf32>
    %561 = tpu.matmul %558, %560, %cst_142 {dimension_numbers = #tpu.dot_dimension_numbers<[1], [0], [0], [1], [0, 0, 1, 1], [], []>} : vector<2x32xf32>, vector<32x128xf32>, vector<2x128xf32> -> vector<2x128xf32>
    %cst_143 = arith.constant dense<0.000000e+00> : vector<2xf32>
    %562 = vector.multi_reduction <add>, %561, %cst_143 [1] : vector<2x128xf32> to vector<2xf32>
    %563 = vector.shape_cast %562 : vector<2xf32> to vector<2x1xf32>
    %cst_144 = arith.constant 1.280000e+02 : f32
    %564 = vector.broadcast %cst_144 : f32 to vector<2x1xf32>
    %565 = arith.divf %563, %564 : vector<2x1xf32>
    %566 = vector.broadcast %565 : vector<2x1xf32> to vector<2x128xf32>
    %567 = arith.subf %561, %566 : vector<2x128xf32>
    %568 = arith.mulf %567, %567 : vector<2x128xf32>
    %cst_145 = arith.constant dense<0.000000e+00> : vector<2xf32>
    %569 = vector.multi_reduction <add>, %568, %cst_145 [1] : vector<2x128xf32> to vector<2xf32>
    %570 = vector.shape_cast %569 : vector<2xf32> to vector<2x1xf32>
    %cst_146 = arith.constant 1.280000e+02 : f32
    %571 = vector.broadcast %cst_146 : f32 to vector<2x1xf32>
    %572 = arith.divf %570, %571 : vector<2x1xf32>
    %573 = vector.broadcast %565 : vector<2x1xf32> to vector<2x128xf32>
    %574 = arith.subf %561, %573 : vector<2x128xf32>
    %cst_147 = arith.constant 9.99999974E-6 : f32
    %575 = vector.broadcast %cst_147 : f32 to vector<2x1xf32>
    %576 = arith.addf %572, %575 : vector<2x1xf32>
    %577 = math.rsqrt %576 : vector<2x1xf32>
    %578 = vector.broadcast %577 : vector<2x1xf32> to vector<2x128xf32>
    %579 = arith.mulf %574, %578 : vector<2x128xf32>
    %580 = vector.extract_strided_slice %10 {offsets = [0, 0, 0], sizes = [1, 1, 128], strides = [1, 1, 1]} : vector<1x4x128xf32> to vector<1x1x128xf32>
    %581 = vector.shape_cast %580 : vector<1x1x128xf32> to vector<128xf32>
    %582 = vector.shape_cast %581 : vector<128xf32> to vector<1x128xf32>
    %583 = vector.broadcast %582 : vector<1x128xf32> to vector<2x128xf32>
    %584 = arith.mulf %579, %583 : vector<2x128xf32>
    %585 = vector.extract_strided_slice %10 {offsets = [0, 1, 0], sizes = [1, 1, 128], strides = [1, 1, 1]} : vector<1x4x128xf32> to vector<1x1x128xf32>
    %586 = vector.shape_cast %585 : vector<1x1x128xf32> to vector<128xf32>
    %587 = vector.shape_cast %586 : vector<128xf32> to vector<1x128xf32>
    %588 = vector.broadcast %587 : vector<1x128xf32> to vector<2x128xf32>
    %589 = arith.addf %584, %588 : vector<2x128xf32>
    %590 = vector.extract_strided_slice %9 {offsets = [0, 1, 0, 0], sizes = [1, 1, 32, 128], strides = [1, 1, 1, 1]} : vector<1x2x32x128xf32> to vector<1x1x32x128xf32>
    %591 = vector.shape_cast %590 : vector<1x1x32x128xf32> to vector<32x128xf32>
    %cst_148 = arith.constant dense<0.000000e+00> : vector<2x128xf32>
    %592 = tpu.matmul %507, %591, %cst_148 {dimension_numbers = #tpu.dot_dimension_numbers<[1], [0], [0], [1], [0, 0, 1, 1], [], []>} : vector<2x32xf32>, vector<32x128xf32>, vector<2x128xf32> -> vector<2x128xf32>
    %cst_149 = arith.constant dense<0.000000e+00> : vector<2xf32>
    %593 = vector.multi_reduction <add>, %592, %cst_149 [1] : vector<2x128xf32> to vector<2xf32>
    %594 = vector.shape_cast %593 : vector<2xf32> to vector<2x1xf32>
    %cst_150 = arith.constant 1.280000e+02 : f32
    %595 = vector.broadcast %cst_150 : f32 to vector<2x1xf32>
    %596 = arith.divf %594, %595 : vector<2x1xf32>
    %597 = vector.broadcast %596 : vector<2x1xf32> to vector<2x128xf32>
    %598 = arith.subf %592, %597 : vector<2x128xf32>
    %599 = arith.mulf %598, %598 : vector<2x128xf32>
    %cst_151 = arith.constant dense<0.000000e+00> : vector<2xf32>
    %600 = vector.multi_reduction <add>, %599, %cst_151 [1] : vector<2x128xf32> to vector<2xf32>
    %601 = vector.shape_cast %600 : vector<2xf32> to vector<2x1xf32>
    %cst_152 = arith.constant 1.280000e+02 : f32
    %602 = vector.broadcast %cst_152 : f32 to vector<2x1xf32>
    %603 = arith.divf %601, %602 : vector<2x1xf32>
    %604 = vector.broadcast %596 : vector<2x1xf32> to vector<2x128xf32>
    %605 = arith.subf %592, %604 : vector<2x128xf32>
    %cst_153 = arith.constant 9.99999974E-6 : f32
    %606 = vector.broadcast %cst_153 : f32 to vector<2x1xf32>
    %607 = arith.addf %603, %606 : vector<2x1xf32>
    %608 = math.rsqrt %607 : vector<2x1xf32>
    %609 = vector.broadcast %608 : vector<2x1xf32> to vector<2x128xf32>
    %610 = arith.mulf %605, %609 : vector<2x128xf32>
    %611 = vector.extract_strided_slice %10 {offsets = [0, 2, 0], sizes = [1, 1, 128], strides = [1, 1, 1]} : vector<1x4x128xf32> to vector<1x1x128xf32>
    %612 = vector.shape_cast %611 : vector<1x1x128xf32> to vector<128xf32>
    %613 = vector.shape_cast %612 : vector<128xf32> to vector<1x128xf32>
    %614 = vector.broadcast %613 : vector<1x128xf32> to vector<2x128xf32>
    %615 = arith.mulf %610, %614 : vector<2x128xf32>
    %616 = vector.extract_strided_slice %10 {offsets = [0, 3, 0], sizes = [1, 1, 128], strides = [1, 1, 1]} : vector<1x4x128xf32> to vector<1x1x128xf32>
    %617 = vector.shape_cast %616 : vector<1x1x128xf32> to vector<128xf32>
    %618 = vector.shape_cast %617 : vector<128xf32> to vector<1x128xf32>
    %619 = vector.broadcast %618 : vector<1x128xf32> to vector<2x128xf32>
    %620 = arith.addf %615, %619 : vector<2x128xf32>
    %621 = arith.addf %589, %620 : vector<2x128xf32>
    %622 = vector.extract_strided_slice %621 {offsets = [0, 0], sizes = [2, 32], strides = [1, 1]} : vector<2x128xf32> to vector<2x32xf32>
    %623 = arith.negf %622 : vector<2x32xf32>
    %624 = math.exp %623 : vector<2x32xf32>
    %cst_154 = arith.constant 1.000000e+00 : f32
    %625 = vector.broadcast %cst_154 : f32 to vector<2x32xf32>
    %626 = arith.addf %625, %624 : vector<2x32xf32>
    %627 = arith.divf %625, %626 : vector<2x32xf32>
    %628 = vector.extract_strided_slice %621 {offsets = [0, 32], sizes = [2, 32], strides = [1, 1]} : vector<2x128xf32> to vector<2x32xf32>
    %629 = arith.negf %628 : vector<2x32xf32>
    %630 = math.exp %629 : vector<2x32xf32>
    %cst_155 = arith.constant 1.000000e+00 : f32
    %631 = vector.broadcast %cst_155 : f32 to vector<2x32xf32>
    %632 = arith.addf %631, %630 : vector<2x32xf32>
    %633 = arith.divf %631, %632 : vector<2x32xf32>
    %634 = vector.extract_strided_slice %621 {offsets = [0, 64], sizes = [2, 32], strides = [1, 1]} : vector<2x128xf32> to vector<2x32xf32>
    %635 = math.tanh %634 : vector<2x32xf32>
    %636 = vector.extract_strided_slice %621 {offsets = [0, 96], sizes = [2, 32], strides = [1, 1]} : vector<2x128xf32> to vector<2x32xf32>
    %637 = arith.negf %636 : vector<2x32xf32>
    %638 = math.exp %637 : vector<2x32xf32>
    %cst_156 = arith.constant 1.000000e+00 : f32
    %639 = vector.broadcast %cst_156 : f32 to vector<2x32xf32>
    %640 = arith.addf %639, %638 : vector<2x32xf32>
    %641 = arith.divf %639, %640 : vector<2x32xf32>
    %642 = arith.mulf %633, %505 : vector<2x32xf32>
    %643 = arith.mulf %627, %635 : vector<2x32xf32>
    %644 = arith.addf %642, %643 : vector<2x32xf32>
    %cst_157 = arith.constant dense<0.000000e+00> : vector<2xf32>
    %645 = vector.multi_reduction <add>, %644, %cst_157 [1] : vector<2x32xf32> to vector<2xf32>
    %646 = vector.shape_cast %645 : vector<2xf32> to vector<2x1xf32>
    %cst_158 = arith.constant 3.200000e+01 : f32
    %647 = vector.broadcast %cst_158 : f32 to vector<2x1xf32>
    %648 = arith.divf %646, %647 : vector<2x1xf32>
    %649 = vector.broadcast %648 : vector<2x1xf32> to vector<2x32xf32>
    %650 = arith.subf %644, %649 : vector<2x32xf32>
    %651 = arith.mulf %650, %650 : vector<2x32xf32>
    %cst_159 = arith.constant dense<0.000000e+00> : vector<2xf32>
    %652 = vector.multi_reduction <add>, %651, %cst_159 [1] : vector<2x32xf32> to vector<2xf32>
    %653 = vector.shape_cast %652 : vector<2xf32> to vector<2x1xf32>
    %cst_160 = arith.constant 3.200000e+01 : f32
    %654 = vector.broadcast %cst_160 : f32 to vector<2x1xf32>
    %655 = arith.divf %653, %654 : vector<2x1xf32>
    %656 = vector.broadcast %648 : vector<2x1xf32> to vector<2x32xf32>
    %657 = arith.subf %644, %656 : vector<2x32xf32>
    %cst_161 = arith.constant 9.99999974E-6 : f32
    %658 = vector.broadcast %cst_161 : f32 to vector<2x1xf32>
    %659 = arith.addf %655, %658 : vector<2x1xf32>
    %660 = math.rsqrt %659 : vector<2x1xf32>
    %661 = vector.broadcast %660 : vector<2x1xf32> to vector<2x32xf32>
    %662 = arith.mulf %657, %661 : vector<2x32xf32>
    %663 = vector.extract_strided_slice %11 {offsets = [0, 0, 0], sizes = [1, 1, 32], strides = [1, 1, 1]} : vector<1x2x32xf32> to vector<1x1x32xf32>
    %664 = vector.shape_cast %663 : vector<1x1x32xf32> to vector<32xf32>
    %665 = vector.shape_cast %664 : vector<32xf32> to vector<1x32xf32>
    %666 = vector.broadcast %665 : vector<1x32xf32> to vector<2x32xf32>
    %667 = arith.mulf %662, %666 : vector<2x32xf32>
    %668 = vector.extract_strided_slice %11 {offsets = [0, 1, 0], sizes = [1, 1, 32], strides = [1, 1, 1]} : vector<1x2x32xf32> to vector<1x1x32xf32>
    %669 = vector.shape_cast %668 : vector<1x1x32xf32> to vector<32xf32>
    %670 = vector.shape_cast %669 : vector<32xf32> to vector<1x32xf32>
    %671 = vector.broadcast %670 : vector<1x32xf32> to vector<2x32xf32>
    %672 = arith.addf %667, %671 : vector<2x32xf32>
    %673 = math.tanh %672 : vector<2x32xf32>
    %674 = arith.mulf %641, %673 : vector<2x32xf32>
    %675 = vector.shape_cast %674 : vector<2x32xf32> to vector<2x1x32xf32>
    "tpu.trace_start"() <{level = 10 : i32, message = "bqk,bnk->bqn"}> : () -> ()
    %cst_162 = arith.constant dense<0.000000e+00> : vector<2x1x8xf32>
    %676 = tpu.matmul %675, %20, %cst_162 {dimension_numbers = #tpu.dot_dimension_numbers<[2], [2], [1], [1], [0, 0, 0, 1, 1, 1], [0], [0]>} : vector<2x1x32xf32>, vector<2x8x32xf32>, vector<2x1x8xf32> -> vector<2x1x8xf32>
    "tpu.trace_stop"() : () -> ()
    %677 = vector.shape_cast %676 : vector<2x1x8xf32> to vector<2x8xf32>
    %cst_163 = arith.constant 1.000000e+00 : f32
    %678 = vector.broadcast %cst_163 : f32 to vector<2x8xf32>
    %679 = arith.mulf %677, %678 : vector<2x8xf32>
    %cst_164 = arith.constant 5.000000e-01 : f32
    %680 = vector.broadcast %cst_164 : f32 to vector<2x8xf32>
    %681 = arith.cmpf ogt, %546, %680 : vector<2x8xf32>
    %cst_165 = arith.constant -1.000000e+09 : f32
    %682 = vector.broadcast %cst_165 : f32 to vector<2x8xf32>
    %683 = arith.select %681, %679, %682 : vector<2x8xi1>, vector<2x8xf32>
    %c3_i32 = arith.constant 3 : i32
    %684 = vector.broadcast %c3_i32 : i32 to vector<2x8x8xi32>
    %685 = arith.cmpi eq, %47, %684 : vector<2x8x8xi32>
    %686 = vector.shape_cast %683 : vector<2x8xf32> to vector<2x1x8xf32>
    %687 = vector.shape_cast %686 : vector<2x1x8xf32> to vector<2x1x8xf32>
    %688 = vector.broadcast %687 : vector<2x1x8xf32> to vector<2x8x8xf32>
    %689 = arith.select %685, %688, %522 : vector<2x8x8xi1>, vector<2x8x8xf32>
    %690 = vector.extract_strided_slice %12 {offsets = [0, 3, 0], sizes = [2, 1, 8], strides = [1, 1, 1]} : vector<2x8x8xf32> to vector<2x1x8xf32>
    %691 = vector.shape_cast %690 : vector<2x1x8xf32> to vector<2x8xf32>
    %692 = arith.addf %683, %691 : vector<2x8xf32>
    %cst_166 = arith.constant dense<0xFF800000> : vector<2xf32>
    %693 = vector.multi_reduction <maximumf>, %692, %cst_166 [1] : vector<2x8xf32> to vector<2xf32>
    %694 = vector.shape_cast %693 : vector<2xf32> to vector<2x1xf32>
    %695 = vector.broadcast %694 : vector<2x1xf32> to vector<2x8xf32>
    %696 = arith.cmpf oge, %692, %695 : vector<2x8xf32>
    %c8_i32_167 = arith.constant 8 : i32
    %697 = vector.broadcast %c8_i32_167 : i32 to vector<2x8xi32>
    %698 = arith.select %696, %45, %697 : vector<2x8xi1>, vector<2x8xi32>
    %cst_168 = arith.constant dense<2147483647> : vector<2xi32>
    %699 = vector.multi_reduction <minsi>, %698, %cst_168 [1] : vector<2x8xi32> to vector<2xi32>
    %c3_i32_169 = arith.constant 3 : i32
    %700 = vector.broadcast %c3_i32_169 : i32 to vector<2x8xi32>
    %701 = arith.cmpi eq, %46, %700 : vector<2x8xi32>
    %702 = vector.shape_cast %699 : vector<2xi32> to vector<2x1xi32>
    %703 = vector.shape_cast %702 : vector<2x1xi32> to vector<2x1xi32>
    %704 = vector.broadcast %703 : vector<2x1xi32> to vector<2x8xi32>
    %705 = arith.select %701, %704, %538 : vector<2x8xi1>, vector<2x8xi32>
    %706 = vector.shape_cast %699 : vector<2xi32> to vector<2x1xi32>
    %707 = vector.broadcast %706 : vector<2x1xi32> to vector<2x8xi32>
    %708 = arith.cmpi eq, %45, %707 : vector<2x8xi32>
    %709 = arith.extui %708 : vector<2x8xi1> to vector<2x8xi32>
    %710 = arith.sitofp %709 : vector<2x8xi32> to vector<2x8xf32>
    %cst_170 = arith.constant 1.000000e+00 : f32
    %711 = vector.broadcast %cst_170 : f32 to vector<2x8xf32>
    %712 = arith.subf %711, %710 : vector<2x8xf32>
    %713 = arith.mulf %546, %712 : vector<2x8xf32>
    %714 = vector.shape_cast %710 : vector<2x8xf32> to vector<2x1x8xf32>
    "tpu.trace_start"() <{level = 10 : i32, message = "bqn,bnd->bqd"}> : () -> ()
    %cst_171 = arith.constant dense<0.000000e+00> : vector<2x1x32xf32>
    %715 = tpu.matmul %714, %41, %cst_171 {dimension_numbers = #tpu.dot_dimension_numbers<[2], [1], [1], [2], [0, 0, 0, 1, 1, 2], [0], [0]>} : vector<2x1x8xf32>, vector<2x8x32xf32>, vector<2x1x32xf32> -> vector<2x1x32xf32>
    "tpu.trace_stop"() : () -> ()
    %716 = vector.shape_cast %715 : vector<2x1x32xf32> to vector<2x32xf32>
    %717 = arith.addf %550, %716 : vector<2x32xf32>
    %cst_172 = arith.constant dense<0.000000e+00> : vector<2x32xf32>
    %718 = tpu.matmul %717, %7, %cst_172 {dimension_numbers = #tpu.dot_dimension_numbers<[1], [0], [0], [1], [0, 0, 1, 1], [], []>} : vector<2x32xf32>, vector<32x32xf32>, vector<2x32xf32> -> vector<2x32xf32>
    %719 = vector.broadcast %4 : vector<1x32xf32> to vector<2x32xf32>
    %720 = arith.addf %718, %719 : vector<2x32xf32>
    %cst_173 = arith.constant 0.000000e+00 : f32
    %721 = vector.broadcast %cst_173 : f32 to vector<2x32xf32>
    %722 = arith.maximumf %720, %721 : vector<2x32xf32>
    %cst_174 = arith.constant dense<0.000000e+00> : vector<2x32xf32>
    %723 = tpu.matmul %722, %8, %cst_174 {dimension_numbers = #tpu.dot_dimension_numbers<[1], [0], [0], [1], [0, 0, 1, 1], [], []>} : vector<2x32xf32>, vector<32x32xf32>, vector<2x32xf32> -> vector<2x32xf32>
    %724 = vector.broadcast %5 : vector<1x32xf32> to vector<2x32xf32>
    %725 = arith.addf %723, %724 : vector<2x32xf32>
    %726 = vector.extract_strided_slice %9 {offsets = [0, 0, 0, 0], sizes = [1, 1, 32, 128], strides = [1, 1, 1, 1]} : vector<1x2x32x128xf32> to vector<1x1x32x128xf32>
    %727 = vector.shape_cast %726 : vector<1x1x32x128xf32> to vector<32x128xf32>
    %cst_175 = arith.constant dense<0.000000e+00> : vector<2x128xf32>
    %728 = tpu.matmul %725, %727, %cst_175 {dimension_numbers = #tpu.dot_dimension_numbers<[1], [0], [0], [1], [0, 0, 1, 1], [], []>} : vector<2x32xf32>, vector<32x128xf32>, vector<2x128xf32> -> vector<2x128xf32>
    %cst_176 = arith.constant dense<0.000000e+00> : vector<2xf32>
    %729 = vector.multi_reduction <add>, %728, %cst_176 [1] : vector<2x128xf32> to vector<2xf32>
    %730 = vector.shape_cast %729 : vector<2xf32> to vector<2x1xf32>
    %cst_177 = arith.constant 1.280000e+02 : f32
    %731 = vector.broadcast %cst_177 : f32 to vector<2x1xf32>
    %732 = arith.divf %730, %731 : vector<2x1xf32>
    %733 = vector.broadcast %732 : vector<2x1xf32> to vector<2x128xf32>
    %734 = arith.subf %728, %733 : vector<2x128xf32>
    %735 = arith.mulf %734, %734 : vector<2x128xf32>
    %cst_178 = arith.constant dense<0.000000e+00> : vector<2xf32>
    %736 = vector.multi_reduction <add>, %735, %cst_178 [1] : vector<2x128xf32> to vector<2xf32>
    %737 = vector.shape_cast %736 : vector<2xf32> to vector<2x1xf32>
    %cst_179 = arith.constant 1.280000e+02 : f32
    %738 = vector.broadcast %cst_179 : f32 to vector<2x1xf32>
    %739 = arith.divf %737, %738 : vector<2x1xf32>
    %740 = vector.broadcast %732 : vector<2x1xf32> to vector<2x128xf32>
    %741 = arith.subf %728, %740 : vector<2x128xf32>
    %cst_180 = arith.constant 9.99999974E-6 : f32
    %742 = vector.broadcast %cst_180 : f32 to vector<2x1xf32>
    %743 = arith.addf %739, %742 : vector<2x1xf32>
    %744 = math.rsqrt %743 : vector<2x1xf32>
    %745 = vector.broadcast %744 : vector<2x1xf32> to vector<2x128xf32>
    %746 = arith.mulf %741, %745 : vector<2x128xf32>
    %747 = vector.extract_strided_slice %10 {offsets = [0, 0, 0], sizes = [1, 1, 128], strides = [1, 1, 1]} : vector<1x4x128xf32> to vector<1x1x128xf32>
    %748 = vector.shape_cast %747 : vector<1x1x128xf32> to vector<128xf32>
    %749 = vector.shape_cast %748 : vector<128xf32> to vector<1x128xf32>
    %750 = vector.broadcast %749 : vector<1x128xf32> to vector<2x128xf32>
    %751 = arith.mulf %746, %750 : vector<2x128xf32>
    %752 = vector.extract_strided_slice %10 {offsets = [0, 1, 0], sizes = [1, 1, 128], strides = [1, 1, 1]} : vector<1x4x128xf32> to vector<1x1x128xf32>
    %753 = vector.shape_cast %752 : vector<1x1x128xf32> to vector<128xf32>
    %754 = vector.shape_cast %753 : vector<128xf32> to vector<1x128xf32>
    %755 = vector.broadcast %754 : vector<1x128xf32> to vector<2x128xf32>
    %756 = arith.addf %751, %755 : vector<2x128xf32>
    %757 = vector.extract_strided_slice %9 {offsets = [0, 1, 0, 0], sizes = [1, 1, 32, 128], strides = [1, 1, 1, 1]} : vector<1x2x32x128xf32> to vector<1x1x32x128xf32>
    %758 = vector.shape_cast %757 : vector<1x1x32x128xf32> to vector<32x128xf32>
    %cst_181 = arith.constant dense<0.000000e+00> : vector<2x128xf32>
    %759 = tpu.matmul %674, %758, %cst_181 {dimension_numbers = #tpu.dot_dimension_numbers<[1], [0], [0], [1], [0, 0, 1, 1], [], []>} : vector<2x32xf32>, vector<32x128xf32>, vector<2x128xf32> -> vector<2x128xf32>
    %cst_182 = arith.constant dense<0.000000e+00> : vector<2xf32>
    %760 = vector.multi_reduction <add>, %759, %cst_182 [1] : vector<2x128xf32> to vector<2xf32>
    %761 = vector.shape_cast %760 : vector<2xf32> to vector<2x1xf32>
    %cst_183 = arith.constant 1.280000e+02 : f32
    %762 = vector.broadcast %cst_183 : f32 to vector<2x1xf32>
    %763 = arith.divf %761, %762 : vector<2x1xf32>
    %764 = vector.broadcast %763 : vector<2x1xf32> to vector<2x128xf32>
    %765 = arith.subf %759, %764 : vector<2x128xf32>
    %766 = arith.mulf %765, %765 : vector<2x128xf32>
    %cst_184 = arith.constant dense<0.000000e+00> : vector<2xf32>
    %767 = vector.multi_reduction <add>, %766, %cst_184 [1] : vector<2x128xf32> to vector<2xf32>
    %768 = vector.shape_cast %767 : vector<2xf32> to vector<2x1xf32>
    %cst_185 = arith.constant 1.280000e+02 : f32
    %769 = vector.broadcast %cst_185 : f32 to vector<2x1xf32>
    %770 = arith.divf %768, %769 : vector<2x1xf32>
    %771 = vector.broadcast %763 : vector<2x1xf32> to vector<2x128xf32>
    %772 = arith.subf %759, %771 : vector<2x128xf32>
    %cst_186 = arith.constant 9.99999974E-6 : f32
    %773 = vector.broadcast %cst_186 : f32 to vector<2x1xf32>
    %774 = arith.addf %770, %773 : vector<2x1xf32>
    %775 = math.rsqrt %774 : vector<2x1xf32>
    %776 = vector.broadcast %775 : vector<2x1xf32> to vector<2x128xf32>
    %777 = arith.mulf %772, %776 : vector<2x128xf32>
    %778 = vector.extract_strided_slice %10 {offsets = [0, 2, 0], sizes = [1, 1, 128], strides = [1, 1, 1]} : vector<1x4x128xf32> to vector<1x1x128xf32>
    %779 = vector.shape_cast %778 : vector<1x1x128xf32> to vector<128xf32>
    %780 = vector.shape_cast %779 : vector<128xf32> to vector<1x128xf32>
    %781 = vector.broadcast %780 : vector<1x128xf32> to vector<2x128xf32>
    %782 = arith.mulf %777, %781 : vector<2x128xf32>
    %783 = vector.extract_strided_slice %10 {offsets = [0, 3, 0], sizes = [1, 1, 128], strides = [1, 1, 1]} : vector<1x4x128xf32> to vector<1x1x128xf32>
    %784 = vector.shape_cast %783 : vector<1x1x128xf32> to vector<128xf32>
    %785 = vector.shape_cast %784 : vector<128xf32> to vector<1x128xf32>
    %786 = vector.broadcast %785 : vector<1x128xf32> to vector<2x128xf32>
    %787 = arith.addf %782, %786 : vector<2x128xf32>
    %788 = arith.addf %756, %787 : vector<2x128xf32>
    %789 = vector.extract_strided_slice %788 {offsets = [0, 0], sizes = [2, 32], strides = [1, 1]} : vector<2x128xf32> to vector<2x32xf32>
    %790 = arith.negf %789 : vector<2x32xf32>
    %791 = math.exp %790 : vector<2x32xf32>
    %cst_187 = arith.constant 1.000000e+00 : f32
    %792 = vector.broadcast %cst_187 : f32 to vector<2x32xf32>
    %793 = arith.addf %792, %791 : vector<2x32xf32>
    %794 = arith.divf %792, %793 : vector<2x32xf32>
    %795 = vector.extract_strided_slice %788 {offsets = [0, 32], sizes = [2, 32], strides = [1, 1]} : vector<2x128xf32> to vector<2x32xf32>
    %796 = arith.negf %795 : vector<2x32xf32>
    %797 = math.exp %796 : vector<2x32xf32>
    %cst_188 = arith.constant 1.000000e+00 : f32
    %798 = vector.broadcast %cst_188 : f32 to vector<2x32xf32>
    %799 = arith.addf %798, %797 : vector<2x32xf32>
    %800 = arith.divf %798, %799 : vector<2x32xf32>
    %801 = vector.extract_strided_slice %788 {offsets = [0, 64], sizes = [2, 32], strides = [1, 1]} : vector<2x128xf32> to vector<2x32xf32>
    %802 = math.tanh %801 : vector<2x32xf32>
    %803 = vector.extract_strided_slice %788 {offsets = [0, 96], sizes = [2, 32], strides = [1, 1]} : vector<2x128xf32> to vector<2x32xf32>
    %804 = arith.negf %803 : vector<2x32xf32>
    %805 = math.exp %804 : vector<2x32xf32>
    %cst_189 = arith.constant 1.000000e+00 : f32
    %806 = vector.broadcast %cst_189 : f32 to vector<2x32xf32>
    %807 = arith.addf %806, %805 : vector<2x32xf32>
    %808 = arith.divf %806, %807 : vector<2x32xf32>
    %809 = arith.mulf %800, %672 : vector<2x32xf32>
    %810 = arith.mulf %794, %802 : vector<2x32xf32>
    %811 = arith.addf %809, %810 : vector<2x32xf32>
    %cst_190 = arith.constant dense<0.000000e+00> : vector<2xf32>
    %812 = vector.multi_reduction <add>, %811, %cst_190 [1] : vector<2x32xf32> to vector<2xf32>
    %813 = vector.shape_cast %812 : vector<2xf32> to vector<2x1xf32>
    %cst_191 = arith.constant 3.200000e+01 : f32
    %814 = vector.broadcast %cst_191 : f32 to vector<2x1xf32>
    %815 = arith.divf %813, %814 : vector<2x1xf32>
    %816 = vector.broadcast %815 : vector<2x1xf32> to vector<2x32xf32>
    %817 = arith.subf %811, %816 : vector<2x32xf32>
    %818 = arith.mulf %817, %817 : vector<2x32xf32>
    %cst_192 = arith.constant dense<0.000000e+00> : vector<2xf32>
    %819 = vector.multi_reduction <add>, %818, %cst_192 [1] : vector<2x32xf32> to vector<2xf32>
    %820 = vector.shape_cast %819 : vector<2xf32> to vector<2x1xf32>
    %cst_193 = arith.constant 3.200000e+01 : f32
    %821 = vector.broadcast %cst_193 : f32 to vector<2x1xf32>
    %822 = arith.divf %820, %821 : vector<2x1xf32>
    %823 = vector.broadcast %815 : vector<2x1xf32> to vector<2x32xf32>
    %824 = arith.subf %811, %823 : vector<2x32xf32>
    %cst_194 = arith.constant 9.99999974E-6 : f32
    %825 = vector.broadcast %cst_194 : f32 to vector<2x1xf32>
    %826 = arith.addf %822, %825 : vector<2x1xf32>
    %827 = math.rsqrt %826 : vector<2x1xf32>
    %828 = vector.broadcast %827 : vector<2x1xf32> to vector<2x32xf32>
    %829 = arith.mulf %824, %828 : vector<2x32xf32>
    %830 = vector.extract_strided_slice %11 {offsets = [0, 0, 0], sizes = [1, 1, 32], strides = [1, 1, 1]} : vector<1x2x32xf32> to vector<1x1x32xf32>
    %831 = vector.shape_cast %830 : vector<1x1x32xf32> to vector<32xf32>
    %832 = vector.shape_cast %831 : vector<32xf32> to vector<1x32xf32>
    %833 = vector.broadcast %832 : vector<1x32xf32> to vector<2x32xf32>
    %834 = arith.mulf %829, %833 : vector<2x32xf32>
    %835 = vector.extract_strided_slice %11 {offsets = [0, 1, 0], sizes = [1, 1, 32], strides = [1, 1, 1]} : vector<1x2x32xf32> to vector<1x1x32xf32>
    %836 = vector.shape_cast %835 : vector<1x1x32xf32> to vector<32xf32>
    %837 = vector.shape_cast %836 : vector<32xf32> to vector<1x32xf32>
    %838 = vector.broadcast %837 : vector<1x32xf32> to vector<2x32xf32>
    %839 = arith.addf %834, %838 : vector<2x32xf32>
    %840 = math.tanh %839 : vector<2x32xf32>
    %841 = arith.mulf %808, %840 : vector<2x32xf32>
    %842 = vector.shape_cast %841 : vector<2x32xf32> to vector<2x1x32xf32>
    "tpu.trace_start"() <{level = 10 : i32, message = "bqk,bnk->bqn"}> : () -> ()
    %cst_195 = arith.constant dense<0.000000e+00> : vector<2x1x8xf32>
    %843 = tpu.matmul %842, %20, %cst_195 {dimension_numbers = #tpu.dot_dimension_numbers<[2], [2], [1], [1], [0, 0, 0, 1, 1, 1], [0], [0]>} : vector<2x1x32xf32>, vector<2x8x32xf32>, vector<2x1x8xf32> -> vector<2x1x8xf32>
    "tpu.trace_stop"() : () -> ()
    %844 = vector.shape_cast %843 : vector<2x1x8xf32> to vector<2x8xf32>
    %cst_196 = arith.constant 1.000000e+00 : f32
    %845 = vector.broadcast %cst_196 : f32 to vector<2x8xf32>
    %846 = arith.mulf %844, %845 : vector<2x8xf32>
    %cst_197 = arith.constant 5.000000e-01 : f32
    %847 = vector.broadcast %cst_197 : f32 to vector<2x8xf32>
    %848 = arith.cmpf ogt, %713, %847 : vector<2x8xf32>
    %cst_198 = arith.constant -1.000000e+09 : f32
    %849 = vector.broadcast %cst_198 : f32 to vector<2x8xf32>
    %850 = arith.select %848, %846, %849 : vector<2x8xi1>, vector<2x8xf32>
    %c4_i32 = arith.constant 4 : i32
    %851 = vector.broadcast %c4_i32 : i32 to vector<2x8x8xi32>
    %852 = arith.cmpi eq, %47, %851 : vector<2x8x8xi32>
    %853 = vector.shape_cast %850 : vector<2x8xf32> to vector<2x1x8xf32>
    %854 = vector.shape_cast %853 : vector<2x1x8xf32> to vector<2x1x8xf32>
    %855 = vector.broadcast %854 : vector<2x1x8xf32> to vector<2x8x8xf32>
    %856 = arith.select %852, %855, %689 : vector<2x8x8xi1>, vector<2x8x8xf32>
    %857 = vector.extract_strided_slice %12 {offsets = [0, 4, 0], sizes = [2, 1, 8], strides = [1, 1, 1]} : vector<2x8x8xf32> to vector<2x1x8xf32>
    %858 = vector.shape_cast %857 : vector<2x1x8xf32> to vector<2x8xf32>
    %859 = arith.addf %850, %858 : vector<2x8xf32>
    %cst_199 = arith.constant dense<0xFF800000> : vector<2xf32>
    %860 = vector.multi_reduction <maximumf>, %859, %cst_199 [1] : vector<2x8xf32> to vector<2xf32>
    %861 = vector.shape_cast %860 : vector<2xf32> to vector<2x1xf32>
    %862 = vector.broadcast %861 : vector<2x1xf32> to vector<2x8xf32>
    %863 = arith.cmpf oge, %859, %862 : vector<2x8xf32>
    %c8_i32_200 = arith.constant 8 : i32
    %864 = vector.broadcast %c8_i32_200 : i32 to vector<2x8xi32>
    %865 = arith.select %863, %45, %864 : vector<2x8xi1>, vector<2x8xi32>
    %cst_201 = arith.constant dense<2147483647> : vector<2xi32>
    %866 = vector.multi_reduction <minsi>, %865, %cst_201 [1] : vector<2x8xi32> to vector<2xi32>
    %c4_i32_202 = arith.constant 4 : i32
    %867 = vector.broadcast %c4_i32_202 : i32 to vector<2x8xi32>
    %868 = arith.cmpi eq, %46, %867 : vector<2x8xi32>
    %869 = vector.shape_cast %866 : vector<2xi32> to vector<2x1xi32>
    %870 = vector.shape_cast %869 : vector<2x1xi32> to vector<2x1xi32>
    %871 = vector.broadcast %870 : vector<2x1xi32> to vector<2x8xi32>
    %872 = arith.select %868, %871, %705 : vector<2x8xi1>, vector<2x8xi32>
    %873 = vector.shape_cast %866 : vector<2xi32> to vector<2x1xi32>
    %874 = vector.broadcast %873 : vector<2x1xi32> to vector<2x8xi32>
    %875 = arith.cmpi eq, %45, %874 : vector<2x8xi32>
    %876 = arith.extui %875 : vector<2x8xi1> to vector<2x8xi32>
    %877 = arith.sitofp %876 : vector<2x8xi32> to vector<2x8xf32>
    %cst_203 = arith.constant 1.000000e+00 : f32
    %878 = vector.broadcast %cst_203 : f32 to vector<2x8xf32>
    %879 = arith.subf %878, %877 : vector<2x8xf32>
    %880 = arith.mulf %713, %879 : vector<2x8xf32>
    %881 = vector.shape_cast %877 : vector<2x8xf32> to vector<2x1x8xf32>
    "tpu.trace_start"() <{level = 10 : i32, message = "bqn,bnd->bqd"}> : () -> ()
    %cst_204 = arith.constant dense<0.000000e+00> : vector<2x1x32xf32>
    %882 = tpu.matmul %881, %41, %cst_204 {dimension_numbers = #tpu.dot_dimension_numbers<[2], [1], [1], [2], [0, 0, 0, 1, 1, 2], [0], [0]>} : vector<2x1x8xf32>, vector<2x8x32xf32>, vector<2x1x32xf32> -> vector<2x1x32xf32>
    "tpu.trace_stop"() : () -> ()
    %883 = vector.shape_cast %882 : vector<2x1x32xf32> to vector<2x32xf32>
    %884 = arith.addf %717, %883 : vector<2x32xf32>
    %cst_205 = arith.constant dense<0.000000e+00> : vector<2x32xf32>
    %885 = tpu.matmul %884, %7, %cst_205 {dimension_numbers = #tpu.dot_dimension_numbers<[1], [0], [0], [1], [0, 0, 1, 1], [], []>} : vector<2x32xf32>, vector<32x32xf32>, vector<2x32xf32> -> vector<2x32xf32>
    %886 = vector.broadcast %4 : vector<1x32xf32> to vector<2x32xf32>
    %887 = arith.addf %885, %886 : vector<2x32xf32>
    %cst_206 = arith.constant 0.000000e+00 : f32
    %888 = vector.broadcast %cst_206 : f32 to vector<2x32xf32>
    %889 = arith.maximumf %887, %888 : vector<2x32xf32>
    %cst_207 = arith.constant dense<0.000000e+00> : vector<2x32xf32>
    %890 = tpu.matmul %889, %8, %cst_207 {dimension_numbers = #tpu.dot_dimension_numbers<[1], [0], [0], [1], [0, 0, 1, 1], [], []>} : vector<2x32xf32>, vector<32x32xf32>, vector<2x32xf32> -> vector<2x32xf32>
    %891 = vector.broadcast %5 : vector<1x32xf32> to vector<2x32xf32>
    %892 = arith.addf %890, %891 : vector<2x32xf32>
    %893 = vector.extract_strided_slice %9 {offsets = [0, 0, 0, 0], sizes = [1, 1, 32, 128], strides = [1, 1, 1, 1]} : vector<1x2x32x128xf32> to vector<1x1x32x128xf32>
    %894 = vector.shape_cast %893 : vector<1x1x32x128xf32> to vector<32x128xf32>
    %cst_208 = arith.constant dense<0.000000e+00> : vector<2x128xf32>
    %895 = tpu.matmul %892, %894, %cst_208 {dimension_numbers = #tpu.dot_dimension_numbers<[1], [0], [0], [1], [0, 0, 1, 1], [], []>} : vector<2x32xf32>, vector<32x128xf32>, vector<2x128xf32> -> vector<2x128xf32>
    %cst_209 = arith.constant dense<0.000000e+00> : vector<2xf32>
    %896 = vector.multi_reduction <add>, %895, %cst_209 [1] : vector<2x128xf32> to vector<2xf32>
    %897 = vector.shape_cast %896 : vector<2xf32> to vector<2x1xf32>
    %cst_210 = arith.constant 1.280000e+02 : f32
    %898 = vector.broadcast %cst_210 : f32 to vector<2x1xf32>
    %899 = arith.divf %897, %898 : vector<2x1xf32>
    %900 = vector.broadcast %899 : vector<2x1xf32> to vector<2x128xf32>
    %901 = arith.subf %895, %900 : vector<2x128xf32>
    %902 = arith.mulf %901, %901 : vector<2x128xf32>
    %cst_211 = arith.constant dense<0.000000e+00> : vector<2xf32>
    %903 = vector.multi_reduction <add>, %902, %cst_211 [1] : vector<2x128xf32> to vector<2xf32>
    %904 = vector.shape_cast %903 : vector<2xf32> to vector<2x1xf32>
    %cst_212 = arith.constant 1.280000e+02 : f32
    %905 = vector.broadcast %cst_212 : f32 to vector<2x1xf32>
    %906 = arith.divf %904, %905 : vector<2x1xf32>
    %907 = vector.broadcast %899 : vector<2x1xf32> to vector<2x128xf32>
    %908 = arith.subf %895, %907 : vector<2x128xf32>
    %cst_213 = arith.constant 9.99999974E-6 : f32
    %909 = vector.broadcast %cst_213 : f32 to vector<2x1xf32>
    %910 = arith.addf %906, %909 : vector<2x1xf32>
    %911 = math.rsqrt %910 : vector<2x1xf32>
    %912 = vector.broadcast %911 : vector<2x1xf32> to vector<2x128xf32>
    %913 = arith.mulf %908, %912 : vector<2x128xf32>
    %914 = vector.extract_strided_slice %10 {offsets = [0, 0, 0], sizes = [1, 1, 128], strides = [1, 1, 1]} : vector<1x4x128xf32> to vector<1x1x128xf32>
    %915 = vector.shape_cast %914 : vector<1x1x128xf32> to vector<128xf32>
    %916 = vector.shape_cast %915 : vector<128xf32> to vector<1x128xf32>
    %917 = vector.broadcast %916 : vector<1x128xf32> to vector<2x128xf32>
    %918 = arith.mulf %913, %917 : vector<2x128xf32>
    %919 = vector.extract_strided_slice %10 {offsets = [0, 1, 0], sizes = [1, 1, 128], strides = [1, 1, 1]} : vector<1x4x128xf32> to vector<1x1x128xf32>
    %920 = vector.shape_cast %919 : vector<1x1x128xf32> to vector<128xf32>
    %921 = vector.shape_cast %920 : vector<128xf32> to vector<1x128xf32>
    %922 = vector.broadcast %921 : vector<1x128xf32> to vector<2x128xf32>
    %923 = arith.addf %918, %922 : vector<2x128xf32>
    %924 = vector.extract_strided_slice %9 {offsets = [0, 1, 0, 0], sizes = [1, 1, 32, 128], strides = [1, 1, 1, 1]} : vector<1x2x32x128xf32> to vector<1x1x32x128xf32>
    %925 = vector.shape_cast %924 : vector<1x1x32x128xf32> to vector<32x128xf32>
    %cst_214 = arith.constant dense<0.000000e+00> : vector<2x128xf32>
    %926 = tpu.matmul %841, %925, %cst_214 {dimension_numbers = #tpu.dot_dimension_numbers<[1], [0], [0], [1], [0, 0, 1, 1], [], []>} : vector<2x32xf32>, vector<32x128xf32>, vector<2x128xf32> -> vector<2x128xf32>
    %cst_215 = arith.constant dense<0.000000e+00> : vector<2xf32>
    %927 = vector.multi_reduction <add>, %926, %cst_215 [1] : vector<2x128xf32> to vector<2xf32>
    %928 = vector.shape_cast %927 : vector<2xf32> to vector<2x1xf32>
    %cst_216 = arith.constant 1.280000e+02 : f32
    %929 = vector.broadcast %cst_216 : f32 to vector<2x1xf32>
    %930 = arith.divf %928, %929 : vector<2x1xf32>
    %931 = vector.broadcast %930 : vector<2x1xf32> to vector<2x128xf32>
    %932 = arith.subf %926, %931 : vector<2x128xf32>
    %933 = arith.mulf %932, %932 : vector<2x128xf32>
    %cst_217 = arith.constant dense<0.000000e+00> : vector<2xf32>
    %934 = vector.multi_reduction <add>, %933, %cst_217 [1] : vector<2x128xf32> to vector<2xf32>
    %935 = vector.shape_cast %934 : vector<2xf32> to vector<2x1xf32>
    %cst_218 = arith.constant 1.280000e+02 : f32
    %936 = vector.broadcast %cst_218 : f32 to vector<2x1xf32>
    %937 = arith.divf %935, %936 : vector<2x1xf32>
    %938 = vector.broadcast %930 : vector<2x1xf32> to vector<2x128xf32>
    %939 = arith.subf %926, %938 : vector<2x128xf32>
    %cst_219 = arith.constant 9.99999974E-6 : f32
    %940 = vector.broadcast %cst_219 : f32 to vector<2x1xf32>
    %941 = arith.addf %937, %940 : vector<2x1xf32>
    %942 = math.rsqrt %941 : vector<2x1xf32>
    %943 = vector.broadcast %942 : vector<2x1xf32> to vector<2x128xf32>
    %944 = arith.mulf %939, %943 : vector<2x128xf32>
    %945 = vector.extract_strided_slice %10 {offsets = [0, 2, 0], sizes = [1, 1, 128], strides = [1, 1, 1]} : vector<1x4x128xf32> to vector<1x1x128xf32>
    %946 = vector.shape_cast %945 : vector<1x1x128xf32> to vector<128xf32>
    %947 = vector.shape_cast %946 : vector<128xf32> to vector<1x128xf32>
    %948 = vector.broadcast %947 : vector<1x128xf32> to vector<2x128xf32>
    %949 = arith.mulf %944, %948 : vector<2x128xf32>
    %950 = vector.extract_strided_slice %10 {offsets = [0, 3, 0], sizes = [1, 1, 128], strides = [1, 1, 1]} : vector<1x4x128xf32> to vector<1x1x128xf32>
    %951 = vector.shape_cast %950 : vector<1x1x128xf32> to vector<128xf32>
    %952 = vector.shape_cast %951 : vector<128xf32> to vector<1x128xf32>
    %953 = vector.broadcast %952 : vector<1x128xf32> to vector<2x128xf32>
    %954 = arith.addf %949, %953 : vector<2x128xf32>
    %955 = arith.addf %923, %954 : vector<2x128xf32>
    %956 = vector.extract_strided_slice %955 {offsets = [0, 0], sizes = [2, 32], strides = [1, 1]} : vector<2x128xf32> to vector<2x32xf32>
    %957 = arith.negf %956 : vector<2x32xf32>
    %958 = math.exp %957 : vector<2x32xf32>
    %cst_220 = arith.constant 1.000000e+00 : f32
    %959 = vector.broadcast %cst_220 : f32 to vector<2x32xf32>
    %960 = arith.addf %959, %958 : vector<2x32xf32>
    %961 = arith.divf %959, %960 : vector<2x32xf32>
    %962 = vector.extract_strided_slice %955 {offsets = [0, 32], sizes = [2, 32], strides = [1, 1]} : vector<2x128xf32> to vector<2x32xf32>
    %963 = arith.negf %962 : vector<2x32xf32>
    %964 = math.exp %963 : vector<2x32xf32>
    %cst_221 = arith.constant 1.000000e+00 : f32
    %965 = vector.broadcast %cst_221 : f32 to vector<2x32xf32>
    %966 = arith.addf %965, %964 : vector<2x32xf32>
    %967 = arith.divf %965, %966 : vector<2x32xf32>
    %968 = vector.extract_strided_slice %955 {offsets = [0, 64], sizes = [2, 32], strides = [1, 1]} : vector<2x128xf32> to vector<2x32xf32>
    %969 = math.tanh %968 : vector<2x32xf32>
    %970 = vector.extract_strided_slice %955 {offsets = [0, 96], sizes = [2, 32], strides = [1, 1]} : vector<2x128xf32> to vector<2x32xf32>
    %971 = arith.negf %970 : vector<2x32xf32>
    %972 = math.exp %971 : vector<2x32xf32>
    %cst_222 = arith.constant 1.000000e+00 : f32
    %973 = vector.broadcast %cst_222 : f32 to vector<2x32xf32>
    %974 = arith.addf %973, %972 : vector<2x32xf32>
    %975 = arith.divf %973, %974 : vector<2x32xf32>
    %976 = arith.mulf %967, %839 : vector<2x32xf32>
    %977 = arith.mulf %961, %969 : vector<2x32xf32>
    %978 = arith.addf %976, %977 : vector<2x32xf32>
    %cst_223 = arith.constant dense<0.000000e+00> : vector<2xf32>
    %979 = vector.multi_reduction <add>, %978, %cst_223 [1] : vector<2x32xf32> to vector<2xf32>
    %980 = vector.shape_cast %979 : vector<2xf32> to vector<2x1xf32>
    %cst_224 = arith.constant 3.200000e+01 : f32
    %981 = vector.broadcast %cst_224 : f32 to vector<2x1xf32>
    %982 = arith.divf %980, %981 : vector<2x1xf32>
    %983 = vector.broadcast %982 : vector<2x1xf32> to vector<2x32xf32>
    %984 = arith.subf %978, %983 : vector<2x32xf32>
    %985 = arith.mulf %984, %984 : vector<2x32xf32>
    %cst_225 = arith.constant dense<0.000000e+00> : vector<2xf32>
    %986 = vector.multi_reduction <add>, %985, %cst_225 [1] : vector<2x32xf32> to vector<2xf32>
    %987 = vector.shape_cast %986 : vector<2xf32> to vector<2x1xf32>
    %cst_226 = arith.constant 3.200000e+01 : f32
    %988 = vector.broadcast %cst_226 : f32 to vector<2x1xf32>
    %989 = arith.divf %987, %988 : vector<2x1xf32>
    %990 = vector.broadcast %982 : vector<2x1xf32> to vector<2x32xf32>
    %991 = arith.subf %978, %990 : vector<2x32xf32>
    %cst_227 = arith.constant 9.99999974E-6 : f32
    %992 = vector.broadcast %cst_227 : f32 to vector<2x1xf32>
    %993 = arith.addf %989, %992 : vector<2x1xf32>
    %994 = math.rsqrt %993 : vector<2x1xf32>
    %995 = vector.broadcast %994 : vector<2x1xf32> to vector<2x32xf32>
    %996 = arith.mulf %991, %995 : vector<2x32xf32>
    %997 = vector.extract_strided_slice %11 {offsets = [0, 0, 0], sizes = [1, 1, 32], strides = [1, 1, 1]} : vector<1x2x32xf32> to vector<1x1x32xf32>
    %998 = vector.shape_cast %997 : vector<1x1x32xf32> to vector<32xf32>
    %999 = vector.shape_cast %998 : vector<32xf32> to vector<1x32xf32>
    %1000 = vector.broadcast %999 : vector<1x32xf32> to vector<2x32xf32>
    %1001 = arith.mulf %996, %1000 : vector<2x32xf32>
    %1002 = vector.extract_strided_slice %11 {offsets = [0, 1, 0], sizes = [1, 1, 32], strides = [1, 1, 1]} : vector<1x2x32xf32> to vector<1x1x32xf32>
    %1003 = vector.shape_cast %1002 : vector<1x1x32xf32> to vector<32xf32>
    %1004 = vector.shape_cast %1003 : vector<32xf32> to vector<1x32xf32>
    %1005 = vector.broadcast %1004 : vector<1x32xf32> to vector<2x32xf32>
    %1006 = arith.addf %1001, %1005 : vector<2x32xf32>
    %1007 = math.tanh %1006 : vector<2x32xf32>
    %1008 = arith.mulf %975, %1007 : vector<2x32xf32>
    %1009 = vector.shape_cast %1008 : vector<2x32xf32> to vector<2x1x32xf32>
    "tpu.trace_start"() <{level = 10 : i32, message = "bqk,bnk->bqn"}> : () -> ()
    %cst_228 = arith.constant dense<0.000000e+00> : vector<2x1x8xf32>
    %1010 = tpu.matmul %1009, %20, %cst_228 {dimension_numbers = #tpu.dot_dimension_numbers<[2], [2], [1], [1], [0, 0, 0, 1, 1, 1], [0], [0]>} : vector<2x1x32xf32>, vector<2x8x32xf32>, vector<2x1x8xf32> -> vector<2x1x8xf32>
    "tpu.trace_stop"() : () -> ()
    %1011 = vector.shape_cast %1010 : vector<2x1x8xf32> to vector<2x8xf32>
    %cst_229 = arith.constant 1.000000e+00 : f32
    %1012 = vector.broadcast %cst_229 : f32 to vector<2x8xf32>
    %1013 = arith.mulf %1011, %1012 : vector<2x8xf32>
    %cst_230 = arith.constant 5.000000e-01 : f32
    %1014 = vector.broadcast %cst_230 : f32 to vector<2x8xf32>
    %1015 = arith.cmpf ogt, %880, %1014 : vector<2x8xf32>
    %cst_231 = arith.constant -1.000000e+09 : f32
    %1016 = vector.broadcast %cst_231 : f32 to vector<2x8xf32>
    %1017 = arith.select %1015, %1013, %1016 : vector<2x8xi1>, vector<2x8xf32>
    %c5_i32 = arith.constant 5 : i32
    %1018 = vector.broadcast %c5_i32 : i32 to vector<2x8x8xi32>
    %1019 = arith.cmpi eq, %47, %1018 : vector<2x8x8xi32>
    %1020 = vector.shape_cast %1017 : vector<2x8xf32> to vector<2x1x8xf32>
    %1021 = vector.shape_cast %1020 : vector<2x1x8xf32> to vector<2x1x8xf32>
    %1022 = vector.broadcast %1021 : vector<2x1x8xf32> to vector<2x8x8xf32>
    %1023 = arith.select %1019, %1022, %856 : vector<2x8x8xi1>, vector<2x8x8xf32>
    %1024 = vector.extract_strided_slice %12 {offsets = [0, 5, 0], sizes = [2, 1, 8], strides = [1, 1, 1]} : vector<2x8x8xf32> to vector<2x1x8xf32>
    %1025 = vector.shape_cast %1024 : vector<2x1x8xf32> to vector<2x8xf32>
    %1026 = arith.addf %1017, %1025 : vector<2x8xf32>
    %cst_232 = arith.constant dense<0xFF800000> : vector<2xf32>
    %1027 = vector.multi_reduction <maximumf>, %1026, %cst_232 [1] : vector<2x8xf32> to vector<2xf32>
    %1028 = vector.shape_cast %1027 : vector<2xf32> to vector<2x1xf32>
    %1029 = vector.broadcast %1028 : vector<2x1xf32> to vector<2x8xf32>
    %1030 = arith.cmpf oge, %1026, %1029 : vector<2x8xf32>
    %c8_i32_233 = arith.constant 8 : i32
    %1031 = vector.broadcast %c8_i32_233 : i32 to vector<2x8xi32>
    %1032 = arith.select %1030, %45, %1031 : vector<2x8xi1>, vector<2x8xi32>
    %cst_234 = arith.constant dense<2147483647> : vector<2xi32>
    %1033 = vector.multi_reduction <minsi>, %1032, %cst_234 [1] : vector<2x8xi32> to vector<2xi32>
    %c5_i32_235 = arith.constant 5 : i32
    %1034 = vector.broadcast %c5_i32_235 : i32 to vector<2x8xi32>
    %1035 = arith.cmpi eq, %46, %1034 : vector<2x8xi32>
    %1036 = vector.shape_cast %1033 : vector<2xi32> to vector<2x1xi32>
    %1037 = vector.shape_cast %1036 : vector<2x1xi32> to vector<2x1xi32>
    %1038 = vector.broadcast %1037 : vector<2x1xi32> to vector<2x8xi32>
    %1039 = arith.select %1035, %1038, %872 : vector<2x8xi1>, vector<2x8xi32>
    %1040 = vector.shape_cast %1033 : vector<2xi32> to vector<2x1xi32>
    %1041 = vector.broadcast %1040 : vector<2x1xi32> to vector<2x8xi32>
    %1042 = arith.cmpi eq, %45, %1041 : vector<2x8xi32>
    %1043 = arith.extui %1042 : vector<2x8xi1> to vector<2x8xi32>
    %1044 = arith.sitofp %1043 : vector<2x8xi32> to vector<2x8xf32>
    %cst_236 = arith.constant 1.000000e+00 : f32
    %1045 = vector.broadcast %cst_236 : f32 to vector<2x8xf32>
    %1046 = arith.subf %1045, %1044 : vector<2x8xf32>
    %1047 = arith.mulf %880, %1046 : vector<2x8xf32>
    %1048 = vector.shape_cast %1044 : vector<2x8xf32> to vector<2x1x8xf32>
    "tpu.trace_start"() <{level = 10 : i32, message = "bqn,bnd->bqd"}> : () -> ()
    %cst_237 = arith.constant dense<0.000000e+00> : vector<2x1x32xf32>
    %1049 = tpu.matmul %1048, %41, %cst_237 {dimension_numbers = #tpu.dot_dimension_numbers<[2], [1], [1], [2], [0, 0, 0, 1, 1, 2], [0], [0]>} : vector<2x1x8xf32>, vector<2x8x32xf32>, vector<2x1x32xf32> -> vector<2x1x32xf32>
    "tpu.trace_stop"() : () -> ()
    %1050 = vector.shape_cast %1049 : vector<2x1x32xf32> to vector<2x32xf32>
    %1051 = arith.addf %884, %1050 : vector<2x32xf32>
    %cst_238 = arith.constant dense<0.000000e+00> : vector<2x32xf32>
    %1052 = tpu.matmul %1051, %7, %cst_238 {dimension_numbers = #tpu.dot_dimension_numbers<[1], [0], [0], [1], [0, 0, 1, 1], [], []>} : vector<2x32xf32>, vector<32x32xf32>, vector<2x32xf32> -> vector<2x32xf32>
    %1053 = vector.broadcast %4 : vector<1x32xf32> to vector<2x32xf32>
    %1054 = arith.addf %1052, %1053 : vector<2x32xf32>
    %cst_239 = arith.constant 0.000000e+00 : f32
    %1055 = vector.broadcast %cst_239 : f32 to vector<2x32xf32>
    %1056 = arith.maximumf %1054, %1055 : vector<2x32xf32>
    %cst_240 = arith.constant dense<0.000000e+00> : vector<2x32xf32>
    %1057 = tpu.matmul %1056, %8, %cst_240 {dimension_numbers = #tpu.dot_dimension_numbers<[1], [0], [0], [1], [0, 0, 1, 1], [], []>} : vector<2x32xf32>, vector<32x32xf32>, vector<2x32xf32> -> vector<2x32xf32>
    %1058 = vector.broadcast %5 : vector<1x32xf32> to vector<2x32xf32>
    %1059 = arith.addf %1057, %1058 : vector<2x32xf32>
    %1060 = vector.extract_strided_slice %9 {offsets = [0, 0, 0, 0], sizes = [1, 1, 32, 128], strides = [1, 1, 1, 1]} : vector<1x2x32x128xf32> to vector<1x1x32x128xf32>
    %1061 = vector.shape_cast %1060 : vector<1x1x32x128xf32> to vector<32x128xf32>
    %cst_241 = arith.constant dense<0.000000e+00> : vector<2x128xf32>
    %1062 = tpu.matmul %1059, %1061, %cst_241 {dimension_numbers = #tpu.dot_dimension_numbers<[1], [0], [0], [1], [0, 0, 1, 1], [], []>} : vector<2x32xf32>, vector<32x128xf32>, vector<2x128xf32> -> vector<2x128xf32>
    %cst_242 = arith.constant dense<0.000000e+00> : vector<2xf32>
    %1063 = vector.multi_reduction <add>, %1062, %cst_242 [1] : vector<2x128xf32> to vector<2xf32>
    %1064 = vector.shape_cast %1063 : vector<2xf32> to vector<2x1xf32>
    %cst_243 = arith.constant 1.280000e+02 : f32
    %1065 = vector.broadcast %cst_243 : f32 to vector<2x1xf32>
    %1066 = arith.divf %1064, %1065 : vector<2x1xf32>
    %1067 = vector.broadcast %1066 : vector<2x1xf32> to vector<2x128xf32>
    %1068 = arith.subf %1062, %1067 : vector<2x128xf32>
    %1069 = arith.mulf %1068, %1068 : vector<2x128xf32>
    %cst_244 = arith.constant dense<0.000000e+00> : vector<2xf32>
    %1070 = vector.multi_reduction <add>, %1069, %cst_244 [1] : vector<2x128xf32> to vector<2xf32>
    %1071 = vector.shape_cast %1070 : vector<2xf32> to vector<2x1xf32>
    %cst_245 = arith.constant 1.280000e+02 : f32
    %1072 = vector.broadcast %cst_245 : f32 to vector<2x1xf32>
    %1073 = arith.divf %1071, %1072 : vector<2x1xf32>
    %1074 = vector.broadcast %1066 : vector<2x1xf32> to vector<2x128xf32>
    %1075 = arith.subf %1062, %1074 : vector<2x128xf32>
    %cst_246 = arith.constant 9.99999974E-6 : f32
    %1076 = vector.broadcast %cst_246 : f32 to vector<2x1xf32>
    %1077 = arith.addf %1073, %1076 : vector<2x1xf32>
    %1078 = math.rsqrt %1077 : vector<2x1xf32>
    %1079 = vector.broadcast %1078 : vector<2x1xf32> to vector<2x128xf32>
    %1080 = arith.mulf %1075, %1079 : vector<2x128xf32>
    %1081 = vector.extract_strided_slice %10 {offsets = [0, 0, 0], sizes = [1, 1, 128], strides = [1, 1, 1]} : vector<1x4x128xf32> to vector<1x1x128xf32>
    %1082 = vector.shape_cast %1081 : vector<1x1x128xf32> to vector<128xf32>
    %1083 = vector.shape_cast %1082 : vector<128xf32> to vector<1x128xf32>
    %1084 = vector.broadcast %1083 : vector<1x128xf32> to vector<2x128xf32>
    %1085 = arith.mulf %1080, %1084 : vector<2x128xf32>
    %1086 = vector.extract_strided_slice %10 {offsets = [0, 1, 0], sizes = [1, 1, 128], strides = [1, 1, 1]} : vector<1x4x128xf32> to vector<1x1x128xf32>
    %1087 = vector.shape_cast %1086 : vector<1x1x128xf32> to vector<128xf32>
    %1088 = vector.shape_cast %1087 : vector<128xf32> to vector<1x128xf32>
    %1089 = vector.broadcast %1088 : vector<1x128xf32> to vector<2x128xf32>
    %1090 = arith.addf %1085, %1089 : vector<2x128xf32>
    %1091 = vector.extract_strided_slice %9 {offsets = [0, 1, 0, 0], sizes = [1, 1, 32, 128], strides = [1, 1, 1, 1]} : vector<1x2x32x128xf32> to vector<1x1x32x128xf32>
    %1092 = vector.shape_cast %1091 : vector<1x1x32x128xf32> to vector<32x128xf32>
    %cst_247 = arith.constant dense<0.000000e+00> : vector<2x128xf32>
    %1093 = tpu.matmul %1008, %1092, %cst_247 {dimension_numbers = #tpu.dot_dimension_numbers<[1], [0], [0], [1], [0, 0, 1, 1], [], []>} : vector<2x32xf32>, vector<32x128xf32>, vector<2x128xf32> -> vector<2x128xf32>
    %cst_248 = arith.constant dense<0.000000e+00> : vector<2xf32>
    %1094 = vector.multi_reduction <add>, %1093, %cst_248 [1] : vector<2x128xf32> to vector<2xf32>
    %1095 = vector.shape_cast %1094 : vector<2xf32> to vector<2x1xf32>
    %cst_249 = arith.constant 1.280000e+02 : f32
    %1096 = vector.broadcast %cst_249 : f32 to vector<2x1xf32>
    %1097 = arith.divf %1095, %1096 : vector<2x1xf32>
    %1098 = vector.broadcast %1097 : vector<2x1xf32> to vector<2x128xf32>
    %1099 = arith.subf %1093, %1098 : vector<2x128xf32>
    %1100 = arith.mulf %1099, %1099 : vector<2x128xf32>
    %cst_250 = arith.constant dense<0.000000e+00> : vector<2xf32>
    %1101 = vector.multi_reduction <add>, %1100, %cst_250 [1] : vector<2x128xf32> to vector<2xf32>
    %1102 = vector.shape_cast %1101 : vector<2xf32> to vector<2x1xf32>
    %cst_251 = arith.constant 1.280000e+02 : f32
    %1103 = vector.broadcast %cst_251 : f32 to vector<2x1xf32>
    %1104 = arith.divf %1102, %1103 : vector<2x1xf32>
    %1105 = vector.broadcast %1097 : vector<2x1xf32> to vector<2x128xf32>
    %1106 = arith.subf %1093, %1105 : vector<2x128xf32>
    %cst_252 = arith.constant 9.99999974E-6 : f32
    %1107 = vector.broadcast %cst_252 : f32 to vector<2x1xf32>
    %1108 = arith.addf %1104, %1107 : vector<2x1xf32>
    %1109 = math.rsqrt %1108 : vector<2x1xf32>
    %1110 = vector.broadcast %1109 : vector<2x1xf32> to vector<2x128xf32>
    %1111 = arith.mulf %1106, %1110 : vector<2x128xf32>
    %1112 = vector.extract_strided_slice %10 {offsets = [0, 2, 0], sizes = [1, 1, 128], strides = [1, 1, 1]} : vector<1x4x128xf32> to vector<1x1x128xf32>
    %1113 = vector.shape_cast %1112 : vector<1x1x128xf32> to vector<128xf32>
    %1114 = vector.shape_cast %1113 : vector<128xf32> to vector<1x128xf32>
    %1115 = vector.broadcast %1114 : vector<1x128xf32> to vector<2x128xf32>
    %1116 = arith.mulf %1111, %1115 : vector<2x128xf32>
    %1117 = vector.extract_strided_slice %10 {offsets = [0, 3, 0], sizes = [1, 1, 128], strides = [1, 1, 1]} : vector<1x4x128xf32> to vector<1x1x128xf32>
    %1118 = vector.shape_cast %1117 : vector<1x1x128xf32> to vector<128xf32>
    %1119 = vector.shape_cast %1118 : vector<128xf32> to vector<1x128xf32>
    %1120 = vector.broadcast %1119 : vector<1x128xf32> to vector<2x128xf32>
    %1121 = arith.addf %1116, %1120 : vector<2x128xf32>
    %1122 = arith.addf %1090, %1121 : vector<2x128xf32>
    %1123 = vector.extract_strided_slice %1122 {offsets = [0, 0], sizes = [2, 32], strides = [1, 1]} : vector<2x128xf32> to vector<2x32xf32>
    %1124 = arith.negf %1123 : vector<2x32xf32>
    %1125 = math.exp %1124 : vector<2x32xf32>
    %cst_253 = arith.constant 1.000000e+00 : f32
    %1126 = vector.broadcast %cst_253 : f32 to vector<2x32xf32>
    %1127 = arith.addf %1126, %1125 : vector<2x32xf32>
    %1128 = arith.divf %1126, %1127 : vector<2x32xf32>
    %1129 = vector.extract_strided_slice %1122 {offsets = [0, 32], sizes = [2, 32], strides = [1, 1]} : vector<2x128xf32> to vector<2x32xf32>
    %1130 = arith.negf %1129 : vector<2x32xf32>
    %1131 = math.exp %1130 : vector<2x32xf32>
    %cst_254 = arith.constant 1.000000e+00 : f32
    %1132 = vector.broadcast %cst_254 : f32 to vector<2x32xf32>
    %1133 = arith.addf %1132, %1131 : vector<2x32xf32>
    %1134 = arith.divf %1132, %1133 : vector<2x32xf32>
    %1135 = vector.extract_strided_slice %1122 {offsets = [0, 64], sizes = [2, 32], strides = [1, 1]} : vector<2x128xf32> to vector<2x32xf32>
    %1136 = math.tanh %1135 : vector<2x32xf32>
    %1137 = vector.extract_strided_slice %1122 {offsets = [0, 96], sizes = [2, 32], strides = [1, 1]} : vector<2x128xf32> to vector<2x32xf32>
    %1138 = arith.negf %1137 : vector<2x32xf32>
    %1139 = math.exp %1138 : vector<2x32xf32>
    %cst_255 = arith.constant 1.000000e+00 : f32
    %1140 = vector.broadcast %cst_255 : f32 to vector<2x32xf32>
    %1141 = arith.addf %1140, %1139 : vector<2x32xf32>
    %1142 = arith.divf %1140, %1141 : vector<2x32xf32>
    %1143 = arith.mulf %1134, %1006 : vector<2x32xf32>
    %1144 = arith.mulf %1128, %1136 : vector<2x32xf32>
    %1145 = arith.addf %1143, %1144 : vector<2x32xf32>
    %cst_256 = arith.constant dense<0.000000e+00> : vector<2xf32>
    %1146 = vector.multi_reduction <add>, %1145, %cst_256 [1] : vector<2x32xf32> to vector<2xf32>
    %1147 = vector.shape_cast %1146 : vector<2xf32> to vector<2x1xf32>
    %cst_257 = arith.constant 3.200000e+01 : f32
    %1148 = vector.broadcast %cst_257 : f32 to vector<2x1xf32>
    %1149 = arith.divf %1147, %1148 : vector<2x1xf32>
    %1150 = vector.broadcast %1149 : vector<2x1xf32> to vector<2x32xf32>
    %1151 = arith.subf %1145, %1150 : vector<2x32xf32>
    %1152 = arith.mulf %1151, %1151 : vector<2x32xf32>
    %cst_258 = arith.constant dense<0.000000e+00> : vector<2xf32>
    %1153 = vector.multi_reduction <add>, %1152, %cst_258 [1] : vector<2x32xf32> to vector<2xf32>
    %1154 = vector.shape_cast %1153 : vector<2xf32> to vector<2x1xf32>
    %cst_259 = arith.constant 3.200000e+01 : f32
    %1155 = vector.broadcast %cst_259 : f32 to vector<2x1xf32>
    %1156 = arith.divf %1154, %1155 : vector<2x1xf32>
    %1157 = vector.broadcast %1149 : vector<2x1xf32> to vector<2x32xf32>
    %1158 = arith.subf %1145, %1157 : vector<2x32xf32>
    %cst_260 = arith.constant 9.99999974E-6 : f32
    %1159 = vector.broadcast %cst_260 : f32 to vector<2x1xf32>
    %1160 = arith.addf %1156, %1159 : vector<2x1xf32>
    %1161 = math.rsqrt %1160 : vector<2x1xf32>
    %1162 = vector.broadcast %1161 : vector<2x1xf32> to vector<2x32xf32>
    %1163 = arith.mulf %1158, %1162 : vector<2x32xf32>
    %1164 = vector.extract_strided_slice %11 {offsets = [0, 0, 0], sizes = [1, 1, 32], strides = [1, 1, 1]} : vector<1x2x32xf32> to vector<1x1x32xf32>
    %1165 = vector.shape_cast %1164 : vector<1x1x32xf32> to vector<32xf32>
    %1166 = vector.shape_cast %1165 : vector<32xf32> to vector<1x32xf32>
    %1167 = vector.broadcast %1166 : vector<1x32xf32> to vector<2x32xf32>
    %1168 = arith.mulf %1163, %1167 : vector<2x32xf32>
    %1169 = vector.extract_strided_slice %11 {offsets = [0, 1, 0], sizes = [1, 1, 32], strides = [1, 1, 1]} : vector<1x2x32xf32> to vector<1x1x32xf32>
    %1170 = vector.shape_cast %1169 : vector<1x1x32xf32> to vector<32xf32>
    %1171 = vector.shape_cast %1170 : vector<32xf32> to vector<1x32xf32>
    %1172 = vector.broadcast %1171 : vector<1x32xf32> to vector<2x32xf32>
    %1173 = arith.addf %1168, %1172 : vector<2x32xf32>
    %1174 = math.tanh %1173 : vector<2x32xf32>
    %1175 = arith.mulf %1142, %1174 : vector<2x32xf32>
    %1176 = vector.shape_cast %1175 : vector<2x32xf32> to vector<2x1x32xf32>
    "tpu.trace_start"() <{level = 10 : i32, message = "bqk,bnk->bqn"}> : () -> ()
    %cst_261 = arith.constant dense<0.000000e+00> : vector<2x1x8xf32>
    %1177 = tpu.matmul %1176, %20, %cst_261 {dimension_numbers = #tpu.dot_dimension_numbers<[2], [2], [1], [1], [0, 0, 0, 1, 1, 1], [0], [0]>} : vector<2x1x32xf32>, vector<2x8x32xf32>, vector<2x1x8xf32> -> vector<2x1x8xf32>
    "tpu.trace_stop"() : () -> ()
    %1178 = vector.shape_cast %1177 : vector<2x1x8xf32> to vector<2x8xf32>
    %cst_262 = arith.constant 1.000000e+00 : f32
    %1179 = vector.broadcast %cst_262 : f32 to vector<2x8xf32>
    %1180 = arith.mulf %1178, %1179 : vector<2x8xf32>
    %cst_263 = arith.constant 5.000000e-01 : f32
    %1181 = vector.broadcast %cst_263 : f32 to vector<2x8xf32>
    %1182 = arith.cmpf ogt, %1047, %1181 : vector<2x8xf32>
    %cst_264 = arith.constant -1.000000e+09 : f32
    %1183 = vector.broadcast %cst_264 : f32 to vector<2x8xf32>
    %1184 = arith.select %1182, %1180, %1183 : vector<2x8xi1>, vector<2x8xf32>
    %c6_i32 = arith.constant 6 : i32
    %1185 = vector.broadcast %c6_i32 : i32 to vector<2x8x8xi32>
    %1186 = arith.cmpi eq, %47, %1185 : vector<2x8x8xi32>
    %1187 = vector.shape_cast %1184 : vector<2x8xf32> to vector<2x1x8xf32>
    %1188 = vector.shape_cast %1187 : vector<2x1x8xf32> to vector<2x1x8xf32>
    %1189 = vector.broadcast %1188 : vector<2x1x8xf32> to vector<2x8x8xf32>
    %1190 = arith.select %1186, %1189, %1023 : vector<2x8x8xi1>, vector<2x8x8xf32>
    %1191 = vector.extract_strided_slice %12 {offsets = [0, 6, 0], sizes = [2, 1, 8], strides = [1, 1, 1]} : vector<2x8x8xf32> to vector<2x1x8xf32>
    %1192 = vector.shape_cast %1191 : vector<2x1x8xf32> to vector<2x8xf32>
    %1193 = arith.addf %1184, %1192 : vector<2x8xf32>
    %cst_265 = arith.constant dense<0xFF800000> : vector<2xf32>
    %1194 = vector.multi_reduction <maximumf>, %1193, %cst_265 [1] : vector<2x8xf32> to vector<2xf32>
    %1195 = vector.shape_cast %1194 : vector<2xf32> to vector<2x1xf32>
    %1196 = vector.broadcast %1195 : vector<2x1xf32> to vector<2x8xf32>
    %1197 = arith.cmpf oge, %1193, %1196 : vector<2x8xf32>
    %c8_i32_266 = arith.constant 8 : i32
    %1198 = vector.broadcast %c8_i32_266 : i32 to vector<2x8xi32>
    %1199 = arith.select %1197, %45, %1198 : vector<2x8xi1>, vector<2x8xi32>
    %cst_267 = arith.constant dense<2147483647> : vector<2xi32>
    %1200 = vector.multi_reduction <minsi>, %1199, %cst_267 [1] : vector<2x8xi32> to vector<2xi32>
    %c6_i32_268 = arith.constant 6 : i32
    %1201 = vector.broadcast %c6_i32_268 : i32 to vector<2x8xi32>
    %1202 = arith.cmpi eq, %46, %1201 : vector<2x8xi32>
    %1203 = vector.shape_cast %1200 : vector<2xi32> to vector<2x1xi32>
    %1204 = vector.shape_cast %1203 : vector<2x1xi32> to vector<2x1xi32>
    %1205 = vector.broadcast %1204 : vector<2x1xi32> to vector<2x8xi32>
    %1206 = arith.select %1202, %1205, %1039 : vector<2x8xi1>, vector<2x8xi32>
    %1207 = vector.shape_cast %1200 : vector<2xi32> to vector<2x1xi32>
    %1208 = vector.broadcast %1207 : vector<2x1xi32> to vector<2x8xi32>
    %1209 = arith.cmpi eq, %45, %1208 : vector<2x8xi32>
    %1210 = arith.extui %1209 : vector<2x8xi1> to vector<2x8xi32>
    %1211 = arith.sitofp %1210 : vector<2x8xi32> to vector<2x8xf32>
    %cst_269 = arith.constant 1.000000e+00 : f32
    %1212 = vector.broadcast %cst_269 : f32 to vector<2x8xf32>
    %1213 = arith.subf %1212, %1211 : vector<2x8xf32>
    %1214 = arith.mulf %1047, %1213 : vector<2x8xf32>
    %1215 = vector.shape_cast %1211 : vector<2x8xf32> to vector<2x1x8xf32>
    "tpu.trace_start"() <{level = 10 : i32, message = "bqn,bnd->bqd"}> : () -> ()
    %cst_270 = arith.constant dense<0.000000e+00> : vector<2x1x32xf32>
    %1216 = tpu.matmul %1215, %41, %cst_270 {dimension_numbers = #tpu.dot_dimension_numbers<[2], [1], [1], [2], [0, 0, 0, 1, 1, 2], [0], [0]>} : vector<2x1x8xf32>, vector<2x8x32xf32>, vector<2x1x32xf32> -> vector<2x1x32xf32>
    "tpu.trace_stop"() : () -> ()
    %1217 = vector.shape_cast %1216 : vector<2x1x32xf32> to vector<2x32xf32>
    %1218 = arith.addf %1051, %1217 : vector<2x32xf32>
    %cst_271 = arith.constant dense<0.000000e+00> : vector<2x32xf32>
    %1219 = tpu.matmul %1218, %7, %cst_271 {dimension_numbers = #tpu.dot_dimension_numbers<[1], [0], [0], [1], [0, 0, 1, 1], [], []>} : vector<2x32xf32>, vector<32x32xf32>, vector<2x32xf32> -> vector<2x32xf32>
    %1220 = vector.broadcast %4 : vector<1x32xf32> to vector<2x32xf32>
    %1221 = arith.addf %1219, %1220 : vector<2x32xf32>
    %cst_272 = arith.constant 0.000000e+00 : f32
    %1222 = vector.broadcast %cst_272 : f32 to vector<2x32xf32>
    %1223 = arith.maximumf %1221, %1222 : vector<2x32xf32>
    %cst_273 = arith.constant dense<0.000000e+00> : vector<2x32xf32>
    %1224 = tpu.matmul %1223, %8, %cst_273 {dimension_numbers = #tpu.dot_dimension_numbers<[1], [0], [0], [1], [0, 0, 1, 1], [], []>} : vector<2x32xf32>, vector<32x32xf32>, vector<2x32xf32> -> vector<2x32xf32>
    %1225 = vector.broadcast %5 : vector<1x32xf32> to vector<2x32xf32>
    %1226 = arith.addf %1224, %1225 : vector<2x32xf32>
    %1227 = vector.extract_strided_slice %9 {offsets = [0, 0, 0, 0], sizes = [1, 1, 32, 128], strides = [1, 1, 1, 1]} : vector<1x2x32x128xf32> to vector<1x1x32x128xf32>
    %1228 = vector.shape_cast %1227 : vector<1x1x32x128xf32> to vector<32x128xf32>
    %cst_274 = arith.constant dense<0.000000e+00> : vector<2x128xf32>
    %1229 = tpu.matmul %1226, %1228, %cst_274 {dimension_numbers = #tpu.dot_dimension_numbers<[1], [0], [0], [1], [0, 0, 1, 1], [], []>} : vector<2x32xf32>, vector<32x128xf32>, vector<2x128xf32> -> vector<2x128xf32>
    %cst_275 = arith.constant dense<0.000000e+00> : vector<2xf32>
    %1230 = vector.multi_reduction <add>, %1229, %cst_275 [1] : vector<2x128xf32> to vector<2xf32>
    %1231 = vector.shape_cast %1230 : vector<2xf32> to vector<2x1xf32>
    %cst_276 = arith.constant 1.280000e+02 : f32
    %1232 = vector.broadcast %cst_276 : f32 to vector<2x1xf32>
    %1233 = arith.divf %1231, %1232 : vector<2x1xf32>
    %1234 = vector.broadcast %1233 : vector<2x1xf32> to vector<2x128xf32>
    %1235 = arith.subf %1229, %1234 : vector<2x128xf32>
    %1236 = arith.mulf %1235, %1235 : vector<2x128xf32>
    %cst_277 = arith.constant dense<0.000000e+00> : vector<2xf32>
    %1237 = vector.multi_reduction <add>, %1236, %cst_277 [1] : vector<2x128xf32> to vector<2xf32>
    %1238 = vector.shape_cast %1237 : vector<2xf32> to vector<2x1xf32>
    %cst_278 = arith.constant 1.280000e+02 : f32
    %1239 = vector.broadcast %cst_278 : f32 to vector<2x1xf32>
    %1240 = arith.divf %1238, %1239 : vector<2x1xf32>
    %1241 = vector.broadcast %1233 : vector<2x1xf32> to vector<2x128xf32>
    %1242 = arith.subf %1229, %1241 : vector<2x128xf32>
    %cst_279 = arith.constant 9.99999974E-6 : f32
    %1243 = vector.broadcast %cst_279 : f32 to vector<2x1xf32>
    %1244 = arith.addf %1240, %1243 : vector<2x1xf32>
    %1245 = math.rsqrt %1244 : vector<2x1xf32>
    %1246 = vector.broadcast %1245 : vector<2x1xf32> to vector<2x128xf32>
    %1247 = arith.mulf %1242, %1246 : vector<2x128xf32>
    %1248 = vector.extract_strided_slice %10 {offsets = [0, 0, 0], sizes = [1, 1, 128], strides = [1, 1, 1]} : vector<1x4x128xf32> to vector<1x1x128xf32>
    %1249 = vector.shape_cast %1248 : vector<1x1x128xf32> to vector<128xf32>
    %1250 = vector.shape_cast %1249 : vector<128xf32> to vector<1x128xf32>
    %1251 = vector.broadcast %1250 : vector<1x128xf32> to vector<2x128xf32>
    %1252 = arith.mulf %1247, %1251 : vector<2x128xf32>
    %1253 = vector.extract_strided_slice %10 {offsets = [0, 1, 0], sizes = [1, 1, 128], strides = [1, 1, 1]} : vector<1x4x128xf32> to vector<1x1x128xf32>
    %1254 = vector.shape_cast %1253 : vector<1x1x128xf32> to vector<128xf32>
    %1255 = vector.shape_cast %1254 : vector<128xf32> to vector<1x128xf32>
    %1256 = vector.broadcast %1255 : vector<1x128xf32> to vector<2x128xf32>
    %1257 = arith.addf %1252, %1256 : vector<2x128xf32>
    %1258 = vector.extract_strided_slice %9 {offsets = [0, 1, 0, 0], sizes = [1, 1, 32, 128], strides = [1, 1, 1, 1]} : vector<1x2x32x128xf32> to vector<1x1x32x128xf32>
    %1259 = vector.shape_cast %1258 : vector<1x1x32x128xf32> to vector<32x128xf32>
    %cst_280 = arith.constant dense<0.000000e+00> : vector<2x128xf32>
    %1260 = tpu.matmul %1175, %1259, %cst_280 {dimension_numbers = #tpu.dot_dimension_numbers<[1], [0], [0], [1], [0, 0, 1, 1], [], []>} : vector<2x32xf32>, vector<32x128xf32>, vector<2x128xf32> -> vector<2x128xf32>
    %cst_281 = arith.constant dense<0.000000e+00> : vector<2xf32>
    %1261 = vector.multi_reduction <add>, %1260, %cst_281 [1] : vector<2x128xf32> to vector<2xf32>
    %1262 = vector.shape_cast %1261 : vector<2xf32> to vector<2x1xf32>
    %cst_282 = arith.constant 1.280000e+02 : f32
    %1263 = vector.broadcast %cst_282 : f32 to vector<2x1xf32>
    %1264 = arith.divf %1262, %1263 : vector<2x1xf32>
    %1265 = vector.broadcast %1264 : vector<2x1xf32> to vector<2x128xf32>
    %1266 = arith.subf %1260, %1265 : vector<2x128xf32>
    %1267 = arith.mulf %1266, %1266 : vector<2x128xf32>
    %cst_283 = arith.constant dense<0.000000e+00> : vector<2xf32>
    %1268 = vector.multi_reduction <add>, %1267, %cst_283 [1] : vector<2x128xf32> to vector<2xf32>
    %1269 = vector.shape_cast %1268 : vector<2xf32> to vector<2x1xf32>
    %cst_284 = arith.constant 1.280000e+02 : f32
    %1270 = vector.broadcast %cst_284 : f32 to vector<2x1xf32>
    %1271 = arith.divf %1269, %1270 : vector<2x1xf32>
    %1272 = vector.broadcast %1264 : vector<2x1xf32> to vector<2x128xf32>
    %1273 = arith.subf %1260, %1272 : vector<2x128xf32>
    %cst_285 = arith.constant 9.99999974E-6 : f32
    %1274 = vector.broadcast %cst_285 : f32 to vector<2x1xf32>
    %1275 = arith.addf %1271, %1274 : vector<2x1xf32>
    %1276 = math.rsqrt %1275 : vector<2x1xf32>
    %1277 = vector.broadcast %1276 : vector<2x1xf32> to vector<2x128xf32>
    %1278 = arith.mulf %1273, %1277 : vector<2x128xf32>
    %1279 = vector.extract_strided_slice %10 {offsets = [0, 2, 0], sizes = [1, 1, 128], strides = [1, 1, 1]} : vector<1x4x128xf32> to vector<1x1x128xf32>
    %1280 = vector.shape_cast %1279 : vector<1x1x128xf32> to vector<128xf32>
    %1281 = vector.shape_cast %1280 : vector<128xf32> to vector<1x128xf32>
    %1282 = vector.broadcast %1281 : vector<1x128xf32> to vector<2x128xf32>
    %1283 = arith.mulf %1278, %1282 : vector<2x128xf32>
    %1284 = vector.extract_strided_slice %10 {offsets = [0, 3, 0], sizes = [1, 1, 128], strides = [1, 1, 1]} : vector<1x4x128xf32> to vector<1x1x128xf32>
    %1285 = vector.shape_cast %1284 : vector<1x1x128xf32> to vector<128xf32>
    %1286 = vector.shape_cast %1285 : vector<128xf32> to vector<1x128xf32>
    %1287 = vector.broadcast %1286 : vector<1x128xf32> to vector<2x128xf32>
    %1288 = arith.addf %1283, %1287 : vector<2x128xf32>
    %1289 = arith.addf %1257, %1288 : vector<2x128xf32>
    %1290 = vector.extract_strided_slice %1289 {offsets = [0, 0], sizes = [2, 32], strides = [1, 1]} : vector<2x128xf32> to vector<2x32xf32>
    %1291 = arith.negf %1290 : vector<2x32xf32>
    %1292 = math.exp %1291 : vector<2x32xf32>
    %cst_286 = arith.constant 1.000000e+00 : f32
    %1293 = vector.broadcast %cst_286 : f32 to vector<2x32xf32>
    %1294 = arith.addf %1293, %1292 : vector<2x32xf32>
    %1295 = arith.divf %1293, %1294 : vector<2x32xf32>
    %1296 = vector.extract_strided_slice %1289 {offsets = [0, 32], sizes = [2, 32], strides = [1, 1]} : vector<2x128xf32> to vector<2x32xf32>
    %1297 = arith.negf %1296 : vector<2x32xf32>
    %1298 = math.exp %1297 : vector<2x32xf32>
    %cst_287 = arith.constant 1.000000e+00 : f32
    %1299 = vector.broadcast %cst_287 : f32 to vector<2x32xf32>
    %1300 = arith.addf %1299, %1298 : vector<2x32xf32>
    %1301 = arith.divf %1299, %1300 : vector<2x32xf32>
    %1302 = vector.extract_strided_slice %1289 {offsets = [0, 64], sizes = [2, 32], strides = [1, 1]} : vector<2x128xf32> to vector<2x32xf32>
    %1303 = math.tanh %1302 : vector<2x32xf32>
    %1304 = vector.extract_strided_slice %1289 {offsets = [0, 96], sizes = [2, 32], strides = [1, 1]} : vector<2x128xf32> to vector<2x32xf32>
    %1305 = arith.negf %1304 : vector<2x32xf32>
    %1306 = math.exp %1305 : vector<2x32xf32>
    %cst_288 = arith.constant 1.000000e+00 : f32
    %1307 = vector.broadcast %cst_288 : f32 to vector<2x32xf32>
    %1308 = arith.addf %1307, %1306 : vector<2x32xf32>
    %1309 = arith.divf %1307, %1308 : vector<2x32xf32>
    %1310 = arith.mulf %1301, %1173 : vector<2x32xf32>
    %1311 = arith.mulf %1295, %1303 : vector<2x32xf32>
    %1312 = arith.addf %1310, %1311 : vector<2x32xf32>
    %cst_289 = arith.constant dense<0.000000e+00> : vector<2xf32>
    %1313 = vector.multi_reduction <add>, %1312, %cst_289 [1] : vector<2x32xf32> to vector<2xf32>
    %1314 = vector.shape_cast %1313 : vector<2xf32> to vector<2x1xf32>
    %cst_290 = arith.constant 3.200000e+01 : f32
    %1315 = vector.broadcast %cst_290 : f32 to vector<2x1xf32>
    %1316 = arith.divf %1314, %1315 : vector<2x1xf32>
    %1317 = vector.broadcast %1316 : vector<2x1xf32> to vector<2x32xf32>
    %1318 = arith.subf %1312, %1317 : vector<2x32xf32>
    %1319 = arith.mulf %1318, %1318 : vector<2x32xf32>
    %cst_291 = arith.constant dense<0.000000e+00> : vector<2xf32>
    %1320 = vector.multi_reduction <add>, %1319, %cst_291 [1] : vector<2x32xf32> to vector<2xf32>
    %1321 = vector.shape_cast %1320 : vector<2xf32> to vector<2x1xf32>
    %cst_292 = arith.constant 3.200000e+01 : f32
    %1322 = vector.broadcast %cst_292 : f32 to vector<2x1xf32>
    %1323 = arith.divf %1321, %1322 : vector<2x1xf32>
    %1324 = vector.broadcast %1316 : vector<2x1xf32> to vector<2x32xf32>
    %1325 = arith.subf %1312, %1324 : vector<2x32xf32>
    %cst_293 = arith.constant 9.99999974E-6 : f32
    %1326 = vector.broadcast %cst_293 : f32 to vector<2x1xf32>
    %1327 = arith.addf %1323, %1326 : vector<2x1xf32>
    %1328 = math.rsqrt %1327 : vector<2x1xf32>
    %1329 = vector.broadcast %1328 : vector<2x1xf32> to vector<2x32xf32>
    %1330 = arith.mulf %1325, %1329 : vector<2x32xf32>
    %1331 = vector.extract_strided_slice %11 {offsets = [0, 0, 0], sizes = [1, 1, 32], strides = [1, 1, 1]} : vector<1x2x32xf32> to vector<1x1x32xf32>
    %1332 = vector.shape_cast %1331 : vector<1x1x32xf32> to vector<32xf32>
    %1333 = vector.shape_cast %1332 : vector<32xf32> to vector<1x32xf32>
    %1334 = vector.broadcast %1333 : vector<1x32xf32> to vector<2x32xf32>
    %1335 = arith.mulf %1330, %1334 : vector<2x32xf32>
    %1336 = vector.extract_strided_slice %11 {offsets = [0, 1, 0], sizes = [1, 1, 32], strides = [1, 1, 1]} : vector<1x2x32xf32> to vector<1x1x32xf32>
    %1337 = vector.shape_cast %1336 : vector<1x1x32xf32> to vector<32xf32>
    %1338 = vector.shape_cast %1337 : vector<32xf32> to vector<1x32xf32>
    %1339 = vector.broadcast %1338 : vector<1x32xf32> to vector<2x32xf32>
    %1340 = arith.addf %1335, %1339 : vector<2x32xf32>
    %1341 = math.tanh %1340 : vector<2x32xf32>
    %1342 = arith.mulf %1309, %1341 : vector<2x32xf32>
    %1343 = vector.shape_cast %1342 : vector<2x32xf32> to vector<2x1x32xf32>
    "tpu.trace_start"() <{level = 10 : i32, message = "bqk,bnk->bqn"}> : () -> ()
    %cst_294 = arith.constant dense<0.000000e+00> : vector<2x1x8xf32>
    %1344 = tpu.matmul %1343, %20, %cst_294 {dimension_numbers = #tpu.dot_dimension_numbers<[2], [2], [1], [1], [0, 0, 0, 1, 1, 1], [0], [0]>} : vector<2x1x32xf32>, vector<2x8x32xf32>, vector<2x1x8xf32> -> vector<2x1x8xf32>
    "tpu.trace_stop"() : () -> ()
    %1345 = vector.shape_cast %1344 : vector<2x1x8xf32> to vector<2x8xf32>
    %cst_295 = arith.constant 1.000000e+00 : f32
    %1346 = vector.broadcast %cst_295 : f32 to vector<2x8xf32>
    %1347 = arith.mulf %1345, %1346 : vector<2x8xf32>
    %cst_296 = arith.constant 5.000000e-01 : f32
    %1348 = vector.broadcast %cst_296 : f32 to vector<2x8xf32>
    %1349 = arith.cmpf ogt, %1214, %1348 : vector<2x8xf32>
    %cst_297 = arith.constant -1.000000e+09 : f32
    %1350 = vector.broadcast %cst_297 : f32 to vector<2x8xf32>
    %1351 = arith.select %1349, %1347, %1350 : vector<2x8xi1>, vector<2x8xf32>
    %c7_i32 = arith.constant 7 : i32
    %1352 = vector.broadcast %c7_i32 : i32 to vector<2x8x8xi32>
    %1353 = arith.cmpi eq, %47, %1352 : vector<2x8x8xi32>
    %1354 = vector.shape_cast %1351 : vector<2x8xf32> to vector<2x1x8xf32>
    %1355 = vector.shape_cast %1354 : vector<2x1x8xf32> to vector<2x1x8xf32>
    %1356 = vector.broadcast %1355 : vector<2x1x8xf32> to vector<2x8x8xf32>
    %1357 = arith.select %1353, %1356, %1190 : vector<2x8x8xi1>, vector<2x8x8xf32>
    %1358 = vector.extract_strided_slice %12 {offsets = [0, 7, 0], sizes = [2, 1, 8], strides = [1, 1, 1]} : vector<2x8x8xf32> to vector<2x1x8xf32>
    %1359 = vector.shape_cast %1358 : vector<2x1x8xf32> to vector<2x8xf32>
    %1360 = arith.addf %1351, %1359 : vector<2x8xf32>
    %cst_298 = arith.constant dense<0xFF800000> : vector<2xf32>
    %1361 = vector.multi_reduction <maximumf>, %1360, %cst_298 [1] : vector<2x8xf32> to vector<2xf32>
    %1362 = vector.shape_cast %1361 : vector<2xf32> to vector<2x1xf32>
    %1363 = vector.broadcast %1362 : vector<2x1xf32> to vector<2x8xf32>
    %1364 = arith.cmpf oge, %1360, %1363 : vector<2x8xf32>
    %c8_i32_299 = arith.constant 8 : i32
    %1365 = vector.broadcast %c8_i32_299 : i32 to vector<2x8xi32>
    %1366 = arith.select %1364, %45, %1365 : vector<2x8xi1>, vector<2x8xi32>
    %cst_300 = arith.constant dense<2147483647> : vector<2xi32>
    %1367 = vector.multi_reduction <minsi>, %1366, %cst_300 [1] : vector<2x8xi32> to vector<2xi32>
    %c7_i32_301 = arith.constant 7 : i32
    %1368 = vector.broadcast %c7_i32_301 : i32 to vector<2x8xi32>
    %1369 = arith.cmpi eq, %46, %1368 : vector<2x8xi32>
    %1370 = vector.shape_cast %1367 : vector<2xi32> to vector<2x1xi32>
    %1371 = vector.shape_cast %1370 : vector<2x1xi32> to vector<2x1xi32>
    %1372 = vector.broadcast %1371 : vector<2x1xi32> to vector<2x8xi32>
    %1373 = arith.select %1369, %1372, %1206 : vector<2x8xi1>, vector<2x8xi32>
    %1374 = vector.shape_cast %1367 : vector<2xi32> to vector<2x1xi32>
    %1375 = vector.broadcast %1374 : vector<2x1xi32> to vector<2x8xi32>
    %1376 = arith.cmpi eq, %45, %1375 : vector<2x8xi32>
    %1377 = arith.extui %1376 : vector<2x8xi1> to vector<2x8xi32>
    %1378 = arith.sitofp %1377 : vector<2x8xi32> to vector<2x8xf32>
    %1379 = vector.shape_cast %1378 : vector<2x8xf32> to vector<2x1x8xf32>
    "tpu.trace_start"() <{level = 10 : i32, message = "bqn,bnd->bqd"}> : () -> ()
    %cst_302 = arith.constant dense<0.000000e+00> : vector<2x1x32xf32>
    %1380 = tpu.matmul %1379, %41, %cst_302 {dimension_numbers = #tpu.dot_dimension_numbers<[2], [1], [1], [2], [0, 0, 0, 1, 1, 2], [0], [0]>} : vector<2x1x8xf32>, vector<2x8x32xf32>, vector<2x1x32xf32> -> vector<2x1x32xf32>
    "tpu.trace_stop"() : () -> ()
    %1381 = vector.shape_cast %1380 : vector<2x1x32xf32> to vector<2x32xf32>
    %1382 = arith.addf %1218, %1381 : vector<2x32xf32>
    %c0_303 = arith.constant 0 : index
    %c0_304 = arith.constant 0 : index
    %c0_305 = arith.constant 0 : index
    %1383 = vector.load %arg16[%c0_303, %c0_304, %c0_305] : memref<2x8x8xf32, #tpu.memory_space<vmem>>, vector<2x8x8xf32>
    tpu.vector_store %arg16[%c0_303, %c0_304, %c0_305], %1357 {strides = array<i32>} : memref<2x8x8xf32, #tpu.memory_space<vmem>>, vector<2x8x8xf32>,
    %c0_306 = arith.constant 0 : index
    %c0_307 = arith.constant 0 : index
    %1384 = vector.load %arg17[%c0_306, %c0_307] : memref<2x8xi32, #tpu.memory_space<vmem>>, vector<2x8xi32>
    tpu.vector_store %arg17[%c0_306, %c0_307], %1373 {strides = array<i32>} : memref<2x8xi32, #tpu.memory_space<vmem>>, vector<2x8xi32>,
    %c0_308 = arith.constant 0 : index
    %c0_309 = arith.constant 0 : index
    %1385 = vector.load %arg18[%c0_308, %c0_309] : memref<2x32xf32, #tpu.memory_space<vmem>>, vector<2x32xf32>
    tpu.vector_store %arg18[%c0_308, %c0_309], %1382 {strides = array<i32>} : memref<2x32xf32, #tpu.memory_space<vmem>>, vector<2x32xf32>,
    %c0_310 = arith.constant 0 : index
    %c0_311 = arith.constant 0 : index
    %1386 = vector.load %arg12[%c0_310, %c0_311] : memref<32x32xf32, #tpu.memory_space<vmem>>, vector<32x32xf32>
    %cst_312 = arith.constant dense<0.000000e+00> : vector<2x32xf32>
    %1387 = tpu.matmul %1382, %1386, %cst_312 {dimension_numbers = #tpu.dot_dimension_numbers<[1], [0], [0], [1], [0, 0, 1, 1], [], []>} : vector<2x32xf32>, vector<32x32xf32>, vector<2x32xf32> -> vector<2x32xf32>
    %1388 = vector.broadcast %6 : vector<1x32xf32> to vector<2x32xf32>
    %1389 = arith.addf %1387, %1388 : vector<2x32xf32>
    %cst_313 = arith.constant 0.000000e+00 : f32
    %1390 = vector.broadcast %cst_313 : f32 to vector<2x32xf32>
    %1391 = arith.maximumf %1389, %1390 : vector<2x32xf32>
    %c0_314 = arith.constant 0 : index
    %c0_315 = arith.constant 0 : index
    %1392 = vector.load %arg13[%c0_314, %c0_315] : memref<32x2xf32, #tpu.memory_space<vmem>>, vector<32x2xf32>
    %cst_316 = arith.constant dense<0.000000e+00> : vector<2x2xf32>
    %1393 = tpu.matmul %1391, %1392, %cst_316 {dimension_numbers = #tpu.dot_dimension_numbers<[1], [0], [0], [1], [0, 0, 1, 1], [], []>} : vector<2x32xf32>, vector<32x2xf32>, vector<2x2xf32> -> vector<2x2xf32>
    %c0_317 = arith.constant 0 : index
    %c0_318 = arith.constant 0 : index
    %1394 = vector.load %arg15[%c0_317, %c0_318] : memref<1x2xf32, #tpu.memory_space<vmem>>, vector<1x2xf32>
    %1395 = vector.broadcast %1394 : vector<1x2xf32> to vector<2x2xf32>
    %1396 = arith.addf %1393, %1395 : vector<2x2xf32>
    %1397 = vector.extract_strided_slice %1396 {offsets = [0, 0], sizes = [2, 1], strides = [1, 1]} : vector<2x2xf32> to vector<2x1xf32>
    %c0_319 = arith.constant 0 : index
    %c0_320 = arith.constant 0 : index
    %1398 = vector.load %arg19[%c0_319, %c0_320] : memref<2x1xf32, #tpu.memory_space<vmem>>, vector<2x1xf32>
    tpu.vector_store %arg19[%c0_319, %c0_320], %1397 {strides = array<i32>} : memref<2x1xf32, #tpu.memory_space<vmem>>, vector<2x1xf32>,
    %1399 = vector.extract_strided_slice %1396 {offsets = [0, 1], sizes = [2, 1], strides = [1, 1]} : vector<2x2xf32> to vector<2x1xf32>
    %c0_321 = arith.constant 0 : index
    %c0_322 = arith.constant 0 : index
    %1400 = vector.load %arg20[%c0_321, %c0_322] : memref<2x1xf32, #tpu.memory_space<vmem>>, vector<2x1xf32>
    tpu.vector_store %arg20[%c0_321, %c0_322], %1399 {strides = array<i32>} : memref<2x1xf32, #tpu.memory_space<vmem>>, vector<2x1xf32>,
    return
  }
}

</mosaic_0001>

<bundles_post_ra>
// kernel: pointer_network_forward.1
= control target key start
LH: loop header
LB: loop body
LE: loop exit
PB: predicated region body
PF: predicated region fallthrough
CT: control target
= control target key end

     0   :  { %s10097_s0 = inlined_call_operand.hbm [shape: f32[2,32], index: 0, kind: input, shape index: {}]   ;;  %s10098_s1 = inlined_call_operand.hbm [shape: f32[2,8,16], index: 1, kind: input, shape index: {}]   ;;  %s10099_s2 = inlined_call_operand.hbm [shape: f32[2,8], index: 2, kind: input, shape index: {}]   ;;  %s10100_s3 = inlined_call_operand.vmem [shape: f32[2,8,8], index: 3, kind: input, shape index: {}]   ;;  %s10101_s4 = inlined_call_operand.hbm [shape: f32[16,32], index: 4, kind: input, shape index: {}]   ;;  %s10102_s5 = inlined_call_operand.vmem [shape: f32[32,32], index: 5, kind: input, shape index: {}]   ;;  %s10103_s6 = inlined_call_operand.vmem [shape: f32[32,32], index: 6, kind: input, shape index: {}]   ;;  %s10104_s7 = inlined_call_operand.hbm [shape: f32[32,32], index: 7, kind: input, shape index: {}]   ;;  %s10105_s8 = inlined_call_operand.hbm [shape: f32[32,32], index: 8, kind: input, shape index: {}]   ;;  %s10106_s9 = inlined_call_operand.vmem [shape: f32[1,2,32,128], index: 9, kind: input, shape index: {}]   ;;  %s10107_s10 = inlined_call_operand.vmem [shape: f32[1,4,128], index: 10, kind: input, shape index: {}]   ;;  %s10108_s11 = inlined_call_operand.vmem [shape: f32[1,2,32], index: 11, kind: input, shape index: {}]   ;;  %s10109_s12 = inlined_call_operand.hbm [shape: f32[32,32], index: 12, kind: input, shape index: {}]   ;;  %s10110_s13 = inlined_call_operand.vmem [shape: f32[32,2], index: 13, kind: input, shape index: {}]   ;;  %s10111_s14 = inlined_call_operand.vmem [shape: f32[6,32], index: 14, kind: input, shape index: {}]   ;;  %s10112_s15 = inlined_call_operand.vmem [shape: f32[1,2], index: 15, kind: input, shape index: {}]   ;;  %s10113_s16 = inlined_call_operand.hbm [shape: f32[2,8,8], index: 16, kind: output, shape index: {0}]   ;;  %s10114_s17 = inlined_call_operand.hbm [shape: s32[2,8], index: 17, kind: output, shape index: {1}]   ;;  %s10115_s18 = inlined_call_operand.hbm [shape: f32[2,32], index: 18, kind: output, shape index: {2}]   ;;  %s10116_s19 = inlined_call_operand.vmem [shape: f32[2,1], index: 19, kind: output, shape index: {3}]   ;;  %s10117_s20 = inlined_call_operand.vmem [shape: f32[2,1], index: 20, kind: output, shape index: {4}]  }
   0x1   :  { %10123 = sst [smem:[#allocation24_spill]] %s10097_s0 }
   0x2   :  { %10124 = sst [smem:[#allocation25_spill]] %s10098_s1 }
   0x3   :  { %10125 = sst [smem:[#allocation26_spill]] %s10099_s2 }
   0x4   :  { %10126 = sst [smem:[#allocation27_spill]] %s10100_s3 }
   0x5   :  { %10127 = sst [smem:[#allocation28_spill]] %s10101_s4 }
   0x6   :  { %10128 = sst [smem:[#allocation29_spill]] %s10112_s15 }
   0x7   :  { %10129 = sst [smem:[#allocation30_spill]] %s10116_s19 }
   0x8   :  { %10130 = sst [smem:[#allocation31_spill]] %s10117_s20 }
   0x9   :  { %26 = vsyncpa [#allocation3], 0 }
   0xa   :  { %27 = vsyncpa [#allocation6], 0 }
   0xb   :  { %28 = vsyncpa [#allocation9], 0 }
   0xc   :  { %29 = vsyncpa [#allocation12], 0 }
   0xd   :  { %30 = vsyncpa [#allocation4], 0 }
   0xe   :  { %31 = vsyncpa [#allocation16], 0  ;;  %s8654_s1 = smov [#allocation5]   ;;  %s10131_s2 = sld [smem:[#allocation25_spill]] }
   0xf   :  { %s47_s22 = sshll.u32 %s8654_s1, 4  ;;  %s48_s22 = int_to_ptr.vmem [resolvable:$true] %s47_s22 }
  0x14   :  { %s8422_s25 = scalar_lea.hbm %s10131_s2, 256 }
  0x15   :  { %p8423_p0 = scmp.ne.s32.totalorder %s10131_s2, %s8422_s25  ;;  %p8426_p1 = scmp.lt.u32.totalorder %s8422_s25, %s10131_s2 }
  0x17   :  { %p8428_p2 = pnand %p8426_p1, %p8423_p0 }
  0x19   :  { %8431 = shalt.err (!%p8428_p2)
}
  0x1a   :  { %s8432_s4 = scalar_lea.vmem %s48_s22, 256  ;;  %p8437_p4 = scmp.lt.s32.totalorder %s48_s22, %s48_s22 }
  0x1b   :  { %p8433_p3 = scmp.ne.s32.totalorder %s48_s22, %s8432_s4  ;;  %p8438_p5 = scmp.lt.s32.totalorder %s8432_s4, %s8432_s4 }
  0x1d   :  { %p8439_p6 = por %p8438_p5, %p8437_p4 }
  0x1f   :  { %p8440_p7 = pnand %p8439_p6, %p8433_p3 }
  0x21   :  { %8443 = shalt.err (!%p8440_p7)
}
  0x22   :  { %s8655_s29 = smov 128   ;;  %s8656_s30 = smov 8  }
  0x23   :  { %53 = dma.hbm_to_vmem [thread:$0]  %s10131_s2, 256, %s48_s22, [#allocation6], %s8655_s29, %s8655_s29, %s8656_s30  }
  0x24   :  { %s8657_s1 = smov [#allocation8]   ;;  %s8658_s24 = smov [#allocation11]  }
  0x25   :  { %s71_s23 = sshll.u32 %s8657_s1, 4  ;;  %s99_s25 = sshll.u32 %s8658_s24, 4  ;;  %s72_s23 = int_to_ptr.vmem [resolvable:$true] %s71_s23  ;;  %s100_s25 = int_to_ptr.vmem [resolvable:$true] %s99_s25 }
  0x26   :  { %s10132_s27 = sld [smem:[#allocation28_spill]] }
  0x2c   :  { %s8444_s28 = scalar_lea.hbm %s10132_s27, 256 }
  0x2d   :  { %p8445_p8 = scmp.ne.s32.totalorder %s10132_s27, %s8444_s28  ;;  %p8448_p9 = scmp.lt.u32.totalorder %s8444_s28, %s10132_s27 }
  0x2f   :  { %p8450_p10 = pnand %p8448_p9, %p8445_p8 }
  0x31   :  { %8453 = shalt.err (!%p8450_p10)
}
  0x32   :  { %s8454_s22 = scalar_lea.vmem %s72_s23, 256  ;;  %p8459_p12 = scmp.lt.s32.totalorder %s72_s23, %s72_s23 }
  0x33   :  { %p8455_p11 = scmp.ne.s32.totalorder %s72_s23, %s8454_s22  ;;  %p8460_p13 = scmp.lt.s32.totalorder %s8454_s22, %s8454_s22 }
  0x35   :  { %p8461_p0 = por %p8460_p13, %p8459_p12 }
  0x37   :  { %p8462_p1 = pnand %p8461_p0, %p8455_p11 }
  0x39   :  { %8465 = shalt.err (!%p8462_p1)
}
  0x3a   :  { %77 = dma.hbm_to_vmem [thread:$0]  %s10132_s27, 256, %s72_s23, [#allocation9], %s8655_s29, %s8655_s29, %s8656_s30  }
  0x3b   :  { %s8466_s19 = scalar_lea.hbm %s10105_s8, 512 }
  0x3c   :  { %p8467_p2 = scmp.ne.s32.totalorder %s10105_s8, %s8466_s19  ;;  %p8470_p3 = scmp.lt.u32.totalorder %s8466_s19, %s10105_s8 }
  0x3e   :  { %p8472_p4 = pnand %p8470_p3, %p8467_p2 }
  0x40   :  { %8475 = shalt.err (!%p8472_p4)
}
  0x41   :  { %s8476_s26 = scalar_lea.vmem %s100_s25, 512  ;;  %p8481_p6 = scmp.lt.s32.totalorder %s100_s25, %s100_s25 }
  0x42   :  { %p8477_p5 = scmp.ne.s32.totalorder %s100_s25, %s8476_s26  ;;  %p8482_p7 = scmp.lt.s32.totalorder %s8476_s26, %s8476_s26 }
  0x44   :  { %p8483_p8 = por %p8482_p7, %p8481_p6 }
  0x46   :  { %p8484_p9 = pnand %p8483_p8, %p8477_p5 }
  0x48   :  { %8487 = shalt.err (!%p8484_p9)
}
  0x49   :  { %105 = dma.hbm_to_vmem [thread:$0]  %s10105_s8, 512, %s100_s25, [#allocation12], %s8655_s29, %s8655_s29, %s8656_s30  }
  0x4a   :  { %s8659_s28 = smov [#allocation2]   ;;  %s8660_s22 = smov [#allocation7]  }
  0x4b   :  { %s38_s4 = sshll.u32 %s8659_s28, 4  ;;  %s60_s2 = sshll.u32 %s8660_s22, 4  ;;  %s39_s4 = int_to_ptr.vmem [resolvable:$true] %s38_s4  ;;  %s61_s2 = int_to_ptr.vmem [resolvable:$true] %s60_s2 }
  0x4c   :  { %s10133_s15 = sld [smem:[#allocation24_spill]] }
  0x52   :  { %s8488_s19 = scalar_lea.hbm %s10133_s15, 32 }
  0x53   :  { %p8489_p10 = scmp.ne.s32.totalorder %s10133_s15, %s8488_s19  ;;  %p8492_p11 = scmp.lt.u32.totalorder %s8488_s19, %s10133_s15 }
  0x55   :  { %p8494_p12 = pnand %p8492_p11, %p8489_p10 }
  0x57   :  { %8497 = shalt.err (!%p8494_p12)
}
  0x58   :  { %s8498_s8 = scalar_lea.vmem %s39_s4, 32  ;;  %p8503_p0 = scmp.lt.s32.totalorder %s39_s4, %s39_s4 }
  0x59   :  { %p8499_p13 = scmp.ne.s32.totalorder %s39_s4, %s8498_s8  ;;  %p8504_p1 = scmp.lt.s32.totalorder %s8498_s8, %s8498_s8 }
  0x5b   :  { %p8505_p2 = por %p8504_p1, %p8503_p0 }
  0x5d   :  { %p8506_p3 = pnand %p8505_p2, %p8499_p13 }
  0x5f   :  { %8509 = shalt.err (!%p8506_p3)
}
  0x60   :  { %41 = dma.hbm_to_vmem [thread:$0]  %s10133_s15, 32, %s39_s4, [#allocation3]  }
  0x61   :  { %s10134_s28 = sld [smem:[#allocation26_spill]] }
  0x67   :  { %s8510_s22 = scalar_lea.hbm %s10134_s28, 32 }
  0x68   :  { %p8511_p4 = scmp.ne.s32.totalorder %s10134_s28, %s8510_s22  ;;  %p8514_p5 = scmp.lt.u32.totalorder %s8510_s22, %s10134_s28 }
  0x6a   :  { %p8516_p6 = pnand %p8514_p5, %p8511_p4 }
  0x6c   :  { %8519 = shalt.err (!%p8516_p6)
}
  0x6d   :  { %s8520_s1 = scalar_lea.vmem %s61_s2, 32  ;;  %p8525_p8 = scmp.lt.s32.totalorder %s61_s2, %s61_s2 }
  0x6e   :  { %p8521_p7 = scmp.ne.s32.totalorder %s61_s2, %s8520_s1  ;;  %p8526_p9 = scmp.lt.s32.totalorder %s8520_s1, %s8520_s1 }
  0x70   :  { %p8527_p10 = por %p8526_p9, %p8525_p8 }
  0x72   :  { %p8528_p11 = pnand %p8527_p10, %p8521_p7 }
  0x74   :  { %8531 = shalt.err (!%p8528_p11)
}
  0x75   :  { %63 = dma.hbm_to_vmem [thread:$0]  %s10134_s28, 32, %s61_s2, [#allocation6]  }
  0x76   :  { %s8661_s24 = smov [#allocation10]   ;;  %s8662_s8 = smov [#allocation13]  }
  0x77   :  { %s87_s3 = sshll.u32 %s8661_s24, 4  ;;  %s117_s25 = sshll.u32 %s8662_s8, 4  ;;  %s88_s3 = int_to_ptr.vmem [resolvable:$true] %s87_s3  ;;  %s118_s25 = int_to_ptr.vmem [resolvable:$true] %s117_s25 }
  0x78   :  { %s8532_s27 = scalar_lea.hbm %s10104_s7, 512 }
  0x79   :  { %p8533_p12 = scmp.ne.s32.totalorder %s10104_s7, %s8532_s27  ;;  %p8536_p13 = scmp.lt.u32.totalorder %s8532_s27, %s10104_s7 }
  0x7b   :  { %p8538_p0 = pnand %p8536_p13, %p8533_p12 }
  0x7d   :  { %8541 = shalt.err (!%p8538_p0)
}
  0x7e   :  { %s8542_s2 = scalar_lea.vmem %s88_s3, 512  ;;  %p8547_p2 = scmp.lt.s32.totalorder %s88_s3, %s88_s3 }
  0x7f   :  { %p8543_p1 = scmp.ne.s32.totalorder %s88_s3, %s8542_s2  ;;  %p8548_p3 = scmp.lt.s32.totalorder %s8542_s2, %s8542_s2 }
  0x81   :  { %p8549_p4 = por %p8548_p3, %p8547_p2 }
  0x83   :  { %p8550_p5 = pnand %p8549_p4, %p8543_p1 }
  0x85   :  { %8553 = shalt.err (!%p8550_p5)
}
  0x86   :  { %93 = dma.hbm_to_vmem [thread:$0]  %s10104_s7, 512, %s88_s3, [#allocation9], %s8655_s29, %s8655_s29, %s8656_s30  }
  0x87   :  { %s8554_s15 = scalar_lea.hbm %s10109_s12, 512 }
  0x88   :  { %p8555_p6 = scmp.ne.s32.totalorder %s10109_s12, %s8554_s15  ;;  %p8558_p7 = scmp.lt.u32.totalorder %s8554_s15, %s10109_s12 }
  0x8a   :  { %p8560_p8 = pnand %p8558_p7, %p8555_p6 }
  0x8c   :  { %8563 = shalt.err (!%p8560_p8)
}
  0x8d   :  { %s8564_s27 = scalar_lea.vmem %s118_s25, 512  ;;  %p8569_p10 = scmp.lt.s32.totalorder %s118_s25, %s118_s25 }
  0x8e   :  { %p8565_p9 = scmp.ne.s32.totalorder %s118_s25, %s8564_s27  ;;  %p8570_p11 = scmp.lt.s32.totalorder %s8564_s27, %s8564_s27 }
  0x90   :  { %p8571_p12 = por %p8570_p11, %p8569_p10 }
  0x92   :  { %p8572_p13 = pnand %p8571_p12, %p8565_p9 }
  0x94   :  { %8575 = shalt.err (!%p8572_p13)
}
  0x95   :  { %123 = dma.hbm_to_vmem [thread:$0]  %s10109_s12, 512, %s118_s25, [#allocation12], %s8655_s29, %s8655_s29, %s8656_s30  }
  0x96   :  { %8642 = dma.done.wait [#allocation3], 32  }
  0x97   :  { %8643 = vsyncadd [#allocation3], 4294967264 }
  0x98   :  { %8644 = dma.done.wait [#allocation6], 288  }
  0x99   :  { %8645 = vsyncadd [#allocation6], 4294967008 }
  0x9a   :  { %8646 = dma.done.wait [#allocation9], 768  }
  0x9b   :  { %8647 = vsyncadd [#allocation9], 4294966528 }
  0x9c   :  { %8648 = dma.done.wait [#allocation12], 1024  }
  0x9d   :  { %8649 = vsyncadd [#allocation12], 4294966272  ;;  %vm181_vm0 = vcmask 130048   ;;  %vm263_vm1 = vcmask 58368   ;;  %v175_v0 = vld [vmem:[#allocation8] sm:$0xff]  ;;  %v176_v1 = vld [vmem:[#allocation8 + $0x8] sm:$0xff]  ;;  %v177_v19 = vlaneseq }
  0x9e   :  { %v173_v2 = vld [vmem:[#allocation5] sm:$0xff]  ;;  %v8059_v3 = vpack.c.bf16 %v176_v1, %v175_v0  ;;  %v8878_v4 = vld [vmem:[#allocation7] sm:$0x3]  ;;  %v174_v6 = vld [vmem:[#allocation5 + $0x8] sm:$0xff]  ;;  %v8663_v13 = vmov 0.0|0.0   ;;  %vm291_vm2 = vcmask 261120  }
  0x9f   :  { %7500 = vmatprep.mubr.msk.f32.mxu0 %vm181_vm0, %v173_v2  ;;  %v264_v5 = vsel %vm263_vm1, %v8878_v4, 0.0  ;;  %v283_v7 = vld [vmem:[%s10102_s5] sm:$0xff]  ;;  %v284_v8 = vld [vmem:[%s10102_s5 + $0x8] sm:$0xff]  ;;  %v285_v10 = vld [vmem:[%s10102_s5 + $0x10] sm:$0xff]  ;;  %v8902_v20 = vshrl.u32 %v177_v19, 7  ;;  %vm8664_vm3 = vmmov 0  }
  0xa0   :  { %8060 = vmatprep.subr.bf16.mxu0 %v8059_v3  ;;  %265 = vadd.xlane.f32.xlu0 %v264_v5  ;;  %v8063_v9 = vpack.c.bf16 %v284_v8, %v283_v7  ;;  %v286_v11 = vld [vmem:[%s10102_s5 + $0x18] sm:$0xff]  ;;  %v375_v14 = vld [vmem:[%s10103_s6] sm:$0xff]  ;;  %v376_v15 = vld [vmem:[%s10103_s6 + $0x8] sm:$0xff]  ;;  %v8665_v40 = vmov 0.0   ;;  %vm697_vm4 = vcmask 1041408   ;;  %s8667_s8 = smov 32  }
  0xa1   :  { %8062 = vmatpush3.bf16.msra.mxu0 %v8059_v3  ;;  %v8067_v12 = vpack.c.bf16 %v286_v11, %v285_v10  ;;  %v8071_v16 = vpack.c.bf16 %v376_v15, %v375_v14  ;;  %v8905_v21 = vsub.s32 0, %v8902_v20  ;;  %v8910_v22 = vld [vmem:[%s10111_s14] sm:$0x3f]  ;;  %v8915_v25 = vsub.s32 1, %v8902_v20  ;;  %v153_v32 = vld [vmem:[#allocation10 + $0x8] sm:$0xff]  ;;  %v154_v37 = vld [vmem:[#allocation10 + $0x10] sm:$0xff] }
  0xa2   :  { %8064 = vmatprep.subr.bf16.mxu1 %v8063_v9  ;;  %v152_v31 = vld [vmem:[#allocation10] sm:$0xff]  ;;  %v155_v38 = vld [vmem:[#allocation10 + $0x18] sm:$0xff]  ;;  %v377_v42 = vld [vmem:[%s10103_s6 + $0x10] sm:$0xff]  ;;  %v471_v50 = vsub.s32 3, %v8902_v20  ;;  %v549_v15 = vsub.s32 4, %v8902_v20  ;;  %s8668_s26 = smov 96  }
  0xa3   :  { %8066 = vmatpush3.bf16.msra.mxu1 %v8063_v9  ;;  %8072 = vmatprep.subr.bf16.mxu0 %v8071_v16  ;;  %v180_v24 = vrot.slane %v8910_v22, %v8905_v21  ;;  %v8924_v35 = vpack.c.bf16 %v153_v32, %v152_v31  ;;  %v8930_v39 = vpack.c.bf16 %v155_v38, %v154_v37  ;;  %v8936_v41 = vld [vmem:[#allocation2] sm:$0x3]  ;;  %v378_v43 = vld [vmem:[%s10103_s6 + $0x18] sm:$0xff]  ;;  %v161_v46 = vld [vmem:[%s10106_s9 + $0x8] sm:$0xff]  ;;  %vm841_vm5 = vcmask 254976   ;;  %s10135_s3 = sld [smem:[#allocation27_spill]] }
  0xa4   :  { %7501 = vmatmul.mubr.msk.f32.vlgmr.msra.gmra.mrb[0].mxu0 %vm181_vm0, %v174_v6  ;;  %8068 = vmatprep.subr.bf16.mxu1 %v8067_v12  ;;  %v8075_v44 = vpack.c.bf16 %v378_v43, %v377_v42  ;;  %v160_v45 = vld [vmem:[%s10106_s9] sm:$0xff]  ;;  %v290_v48 = vrot.slane %v8910_v22, %v8915_v25  ;;  %v157_v54 = vld [vmem:[#allocation11 + $0x8] sm:$0xff]  ;;  %v8968_v58 = vrot.slane %v8910_v22, %v471_v50  ;;  %v158_v60 = vld [vmem:[#allocation11 + $0x10] sm:$0xff]  ;;  %vm1073_vm6 = vcmask 1041409   ;;  %s8670_s27 = smov [#allocation15]  }
  0xa5   :  { %8074 = vmatpush3.bf16.msra.mxu0 %v8071_v16  ;;  %v8956_v47 = vpack.c.bf16 %v161_v46, %v160_v45  ;;  %v156_v53 = vld [vmem:[#allocation11] sm:$0xff]  ;;  %v159_v61 = vld [vmem:[#allocation11 + $0x18] sm:$0xff]  ;;  %v166_v7 = vld [vmem:[%s10106_s9 + $0x30] sm:$0xff]  ;;  %vm1069_vm7 = vcmp.gt.f32.partialorder %v8878_v4, 0.5  ;;  %vm1169_vm11 = vcmask 64512   ;;  %vm1077_vm13 = vcmp.eq.s32.totalorder %v8902_v20, 0 }
  0xa6   :  { %8076 = vmatprep.subr.bf16.mxu0 %v8075_v44  ;;  %v8963_v57 = vpack.c.bf16 %v157_v54, %v156_v53  ;;  %v8973_v63 = vpack.c.bf16 %v159_v61, %v158_v60  ;;  %v164_v2 = vld [vmem:[%s10106_s9 + $0x20] sm:$0xff]  ;;  %v165_v3 = vld [vmem:[%s10106_s9 + $0x28] sm:$0xff]  ;;  %v167_v8 = vld [vmem:[%s10106_s9 + $0x38] sm:$0xff]  ;;  %v381_v60 = vsub.s32 2, %v8902_v20  ;;  %vm1878_vm14 = vcmp.eq.s32.totalorder %v8902_v20, 1 }
  0xa7   :  { %8070 = vmatpush3.bf16.msra.mxu1 %v8067_v12  ;;  %v8986_v6 = vpack.c.bf16 %v165_v3, %v164_v2  ;;  %v8997_v9 = vpack.c.bf16 %v167_v8, %v166_v7  ;;  %v162_v10 = vld [vmem:[%s10106_s9 + $0x10] sm:$0xff]  ;;  %v163_v11 = vld [vmem:[%s10106_s9 + $0x18] sm:$0xff] }
  0xa8   :  { %8079 = vmatprep.subr.bf16.mxu1 %v8663_v13  ;;  %v9016_v12 = vpack.c.bf16 %v163_v11, %v162_v10 }
  0xa9   :  { %8078 = vmatpush3.bf16.msra.mxu0 %v8075_v44 }
  0xaa   :  { %8085 = vmatprep.subr.bf16.mxu0 %v8663_v13 }
 0x12d   :  { %v266_v17 = vpop.xlane.xlu0 %265 }
 0x12e   :  { %v267_v18 = vmax.f32 %v266_v17, 1.0  ;;  %v9026_v17 = vrot.slane %v8910_v22, %v549_v15 }
 0x130   :  { %8303 = vrcp.f32 %v267_v18 }
 0x13a   :  { %v8304_v23 = vpop.eup %8303 }
 0x13b   :  { %v274_v27 = vrot.slane %v8304_v23, %v8905_v21  ;;  %v278_v30 = vrot.slane %v8304_v23, %v8915_v25 }
 0x177   :  { %v7502_v26 = vpop.f32.mrb[0].mxu0 }
 0x178   :  { %v8918_v28 = vadd.f32 %v7502_v26, %v180_v24  ;;  %v254_v29 = vpop.f32.mrb[1].mxu0 }
 0x179   :  { %v8921_v33 = vadd.f32 %v254_v29, %v180_v24 }
 0x17a   :  { %v282_v36 = vmul.f32 %v278_v30, %v8918_v28 }
 0x17b   :  { %v281_v34 = vmul.f32 %v274_v27, %v8921_v33 }
 0x17d   :  { %7511 = vmatprep.mubr.msk.f32.mxu1 %vm291_vm2, %v281_v34 }
 0x17e   :  { %7512 = vmatmul.mubr.msk.f32.vlgmr.msra.gmra.mrb[0].mxu1 %vm291_vm2, %v282_v36 }
 0x17f   :  { %8081 = vmatpush3.bf16.msra.mxu1 %v8924_v35  ;;  %7533 = vmatprep.mubr.msk.f32.mxu1 %vm8664_vm3, %v8665_v40 }
 0x180   :  { %8082 = vmatprep.subr.bf16.mxu1 %v8663_v13 }
 0x183   :  { %8084 = vmatpush3.bf16.msra.mxu1 %v8930_v39 }
 0x184   :  { %8091 = vmatprep.subr.bf16.mxu1 %v8663_v13 }
 0x186   :  { %7534 = vmatmul.mubr.msk.f32.vlgmr.msra.gmra.mrb[2].mxu1 %vm291_vm2, %v8936_v41 }
 0x187   :  { %7555 = vmatprep.mubr.msk.f32.mxu1 %vm8664_vm3, %v8665_v40  ;;  %8093 = vmatpush3.bf16.msra.mxu1 %v8956_v47 }
 0x188   :  { %8094 = vmatprep.subr.bf16.mxu1 %v8663_v13 }
 0x18b   :  { %8096 = vmatpush3.bf16.msra.mxu1 %v9016_v12 }
 0x18c   :  { %7569 = vmatprep.subr.mxu1 %v8665_v40 }
 0x251   :  { %v7513_v49 = vpop.f32.mrb[0].mxu1 }
 0x252   :  { %v370_v51 = vadd.f32 %v7513_v49, %v290_v48  ;;  %v364_v52 = vpop.f32.mrb[1].mxu1 }
 0x253   :  { %v365_v55 = vadd.f32 %v364_v52, %v290_v48 }
 0x254   :  { %v374_v59 = vmax.f32 %v370_v51, 0.0 }
 0x255   :  { %v373_v56 = vmax.f32 %v365_v55, 0.0 }
 0x257   :  { %7522 = vmatprep.mubr.msk.f32.mxu0 %vm291_vm2, %v373_v56 }
 0x258   :  { %7523 = vmatmul.mubr.msk.f32.vlgmr.msra.gmra.mrb[2].mxu0 %vm291_vm2, %v374_v59  ;;  %v168_v59 = vld [vmem:[%s10107_s10] sm:$0xf]  ;;  %s8666_s10 = smov 64  }
 0x259   :  { %8087 = vmatpush3.bf16.msra.mxu0 %v8963_v57  ;;  %v542_v62 = vpop.f32.mrb[2].mxu1  ;;  %7544 = vmatprep.mubr.msk.f32.mxu0 %vm8664_vm3, %v8665_v40  ;;  %v9045_v61 = vrot.slane %v168_v59, %v381_v60  ;;  %v9051_v2 = vrot.slane %v168_v59, %v8915_v25  ;;  %v9055_v3 = vrot.slane %v168_v59, %v471_v50 }
 0x25a   :  { %v543_v0 = vadd.f32 %v542_v62, %v8968_v58  ;;  %v7535_v1 = vpop.f32.mrb[3].mxu1  ;;  %8088 = vmatprep.subr.bf16.mxu0 %v8663_v13 }
 0x25c   :  { %v546_v5 = vmax.f32 %v543_v0, 0.0  ;;  %v9048_v0 = vrot.slane %v168_v59, %v8905_v21 }
 0x25d   :  { %8090 = vmatpush3.bf16.msra.mxu0 %v8973_v63 }
 0x25e   :  { %8097 = vmatprep.subr.bf16.mxu0 %v8663_v13 }
 0x260   :  { %7545 = vmatmul.mubr.msk.f32.vlgmr.msra.gmra.mrb[4].mxu0 %vm291_vm2, %v546_v5 }
 0x261   :  { %8099 = vmatpush3.bf16.msra.mxu0 %v8986_v6  ;;  %7566 = vmatprep.mubr.msk.f32.mxu0 %vm8664_vm3, %v8665_v40 }
 0x262   :  { %8100 = vmatprep.subr.bf16.mxu0 %v8663_v13 }
 0x265   :  { %8102 = vmatpush3.bf16.msra.mxu0 %v8997_v9 }
 0x266   :  { %7574 = vmatprep.subr.mxu0 %v8665_v40 }
 0x268   :  { %7567 = vmatmul.mubr.f32.vlgmr.msra.gmra.mrb[6].mxu0 %v8665_v40 }
 0x269   :  { %7576 = vmatprep.mubr.msk.f32.mxu0 %vm8664_vm3, %v8665_v40 }
 0x26e   :  { %7575 = vmatpush3.xpose.msk.msra.mxu0 %vm291_vm2, %v8918_v28 }
 0x26f   :  { %7584 = vmatprep.subr.mxu0 %v8665_v40 }
 0x32b   :  { %v9020_v14 = vpop.f32.mrb[2].mxu0 }
 0x32c   :  { %v9023_v16 = vpop.f32.mrb[3].mxu0 }
 0x333   :  { %v620_v18 = vpop.f32.mrb[4].mxu0 }
 0x334   :  { %v621_v23 = vadd.f32 %v620_v18, %v9026_v17  ;;  %v7546_v24 = vpop.f32.mrb[5].mxu0 }
 0x336   :  { %7556 = vmatmul.mubr.msk.f32.vlgmr.msra.gmra.mrb[4].mxu1 %vm291_vm2, %v621_v23 }
 0x337   :  { %7570 = vmatpush3.xpose.msk.msra.mxu1 %vm291_vm2, %v8921_v33  ;;  %7571 = vmatprep.mubr.msk.f32.mxu1 %vm8664_vm3, %v8665_v40 }
 0x338   :  { %7579 = vmatprep.subr.mxu1 %v8665_v40 }
 0x33b   :  { %v791_v26 = vpop.f32.mrb[6].mxu0 }
 0x33c   :  { %v795_v27 = vsel %vm697_vm4, %v791_v26, 0.0  ;;  %v7568_v29 = vpop.f32.mrb[7].mxu0 }
 0x33d   :  { %796 = vadd.xlane.f32.xlu1 %v795_v27 }
 0x3ca   :  { %v797_v30 = vpop.xlane.xlu1 %796 }
 0x3cb   :  { %v798_v31 = vmul.f32 0.0078125, %v797_v30 }
 0x3cd   :  { %v799_v32 = vsub.f32 %v791_v26, %v798_v31 }
 0x3cf   :  { %v800_v34 = vmul.f32 %v799_v32, %v799_v32 }
 0x3d1   :  { %v801_v42 = vsel %vm697_vm4, %v800_v34, 0.0 }
 0x409   :  { %v693_v36 = vpop.f32.mrb[4].mxu1 }
 0x40a   :  { %v7557_v37 = vpop.f32.mrb[5].mxu1  ;;  %v698_v38 = vsel %vm697_vm4, %v693_v36, 0.0 }
 0x40b   :  { %699 = vadd.xlane.f32.xlu0 %v698_v38  ;;  %v169_v37 = vld [vmem:[%s10108_s11] sm:$0x3]  ;;  %s7105_s11 = sshll.u32 %s8670_s27, 4  ;;  %s7106_s11 = int_to_ptr.vmem [resolvable:$true] %s7105_s11 }
 0x40c   :  { %v863_v38 = vrot.slane %v169_v37, %v8905_v21  ;;  %s8576_s7 = scalar_lea.vmem %s7106_s11, 32  ;;  %p8581_p1 = scmp.lt.s32.totalorder %s7106_s11, %s7106_s11 }
 0x40d   :  { %p8577_p0 = scmp.ne.s32.totalorder %s7106_s11, %s8576_s7  ;;  %p8582_p2 = scmp.lt.s32.totalorder %s8576_s7, %s8576_s7 }
 0x40f   :  { %802 = vadd.xlane.f32.xlu0 %v801_v42  ;;  %p8583_p3 = por %p8582_p2, %p8581_p1 }
 0x411   :  { %p8584_p4 = pnand %p8583_p3, %p8577_p0 }
 0x498   :  { %v700_v43 = vpop.xlane.xlu0 %699 }
 0x499   :  { %v702_v44 = vmul.f32 0.0078125, %v700_v43 }
 0x49b   :  { %v703_v45 = vsub.f32 %v693_v36, %v702_v44 }
 0x49c   :  { %v803_v49 = vpop.xlane.xlu0 %802 }
 0x49d   :  { %v704_v46 = vmul.f32 %v703_v45, %v703_v45  ;;  %v804_v51 = vmul.f32 0.0078125, %v803_v49  ;;  %v872_v49 = vrot.slane %v169_v37, %v8915_v25 }
 0x49f   :  { %v705_v48 = vsel %vm697_vm4, %v704_v46, 0.0  ;;  %v805_v52 = vadd.f32 1e-05, %v804_v51 }
 0x4a0   :  { %706 = vadd.xlane.f32.xlu1 %v705_v48 }
 0x4a1   :  { %8305 = vrsqrt.f32 %v805_v52 }
 0x4ab   :  { %v8306_v56 = vpop.eup %8305 }
 0x4ac   :  { %v807_v62 = vmul.f32 %v8306_v56, %v799_v32 }
 0x4ae   :  { %v812_v5 = vmul.f32 %v9045_v61, %v807_v62 }
 0x4b0   :  { %v817_v10 = vadd.f32 %v9055_v3, %v812_v5  ;;  %v8669_v5 = vmov 1966171168  }
 0x52d   :  { %v707_v53 = vpop.xlane.xlu1 %706 }
 0x52e   :  { %v708_v54 = vmul.f32 0.0078125, %v707_v53 }
 0x530   :  { %v709_v55 = vadd.f32 1e-05, %v708_v54 }
 0x532   :  { %8307 = vrsqrt.f32 %v709_v55 }
 0x53c   :  { %v8308_v1 = vpop.eup %8307 }
 0x53d   :  { %v711_v7 = vmul.f32 %v8308_v1, %v703_v45 }
 0x53f   :  { %v716_v8 = vmul.f32 %v9048_v0, %v711_v7  ;;  %v886_v7 = vunpack.c.l.s4 %v8669_v5 }
 0x541   :  { %v721_v11 = vadd.f32 %v9051_v2, %v716_v8  ;;  %v887_v8 = vunpack.c.0.s8 %v886_v7 }
 0x543   :  { %v818_v15 = vadd.f32 %v817_v10, %v721_v11  ;;  %v9085_v10 = vsub.s32 %v887_v8, %v8902_v20 }
 0x545   :  { %8309 = vtanh.f32 %v818_v15  ;;  %v7151_v23 = vmul.f32 -1.442695, %v818_v15 }
 0x547   :  { %8311 = vpow2.f32 %v7151_v23 }
 0x54f   :  { %v8310_v18 = vpop.eup %8309 }
 0x550   :  { %828 = vrot.lane.b32.xlu1 %v8310_v18, %s8666_s10 }
 0x551   :  { %v8312_v24 = vpop.eup %8311 }
 0x552   :  { %v822_v50 = vadd.f32 1.0, %v8312_v24 }
 0x554   :  { %8313 = vrcp.f32 %v822_v50 }
 0x55e   :  { %v8314_v26 = vpop.eup %8313 }
 0x55f   :  { %v826_v30 = vmul.f32 0.0, %v8314_v26 }
 0x5c2   :  { %v829_v27 = vpop.permute.xlu1 %828 }
 0x5c3   :  { %v831_v29 = vmul.f32 %v8314_v26, %v829_v27 }
 0x5c5   :  { %833 = vrot.lane.b32.xlu0 %v831_v29, %s8667_s8 }
 0x637   :  { %v834_v31 = vpop.permute.xlu0 %833 }
 0x638   :  { %v836_v32 = vadd.f32 %v834_v31, %v826_v30  ;;  %v382_v30 = vrot.slane %v8910_v22, %v381_v60  ;;  %v9116_v22 = vld [vmem:[%s10135_s3 + $0x8] sm:$0xff] }
 0x639   :  { %v1115_v60 = vrot.slane %v9116_v22, 7 }
 0x63a   :  { %838 = vrot.lane.b32.xlu1 %v836_v32, %s8668_s26 }
 0x6ac   :  { %v839_v34 = vpop.permute.xlu1 %838 }
 0x6ad   :  { %v842_v36 = vsel %vm841_vm5, %v839_v34, 0.0 }
 0x6ae   :  { %843 = vadd.xlane.f32.xlu1 %v842_v36  ;;  %v9122_v36 = vld [vmem:[%s10135_s3] sm:$0xff] }
 0x6bf   :  { %865 = vrot.lane.b32.xlu1 %v863_v38, %s8667_s8 }
 0x73b   :  { %v844_v42 = vpop.xlane.xlu1 %843 }
 0x73c   :  { %v846_v43 = vmul.f32 0.03125, %v844_v42  ;;  %v1116_v42 = vsel %vm1073_vm6, %v1115_v60, %v9122_v36 }
 0x73e   :  { %v847_v44 = vsub.f32 %v836_v32, %v846_v43  ;;  %v9106_v32 = vadd.f32 %v9023_v16, %v382_v30 }
 0x73f   :  { %v9074_v55 = vpop.permute.xlu1 %865 }
 0x740   :  { %v848_v45 = vmul.f32 %v847_v44, %v847_v44 }
 0x742   :  { %850 = vrot.lane.b32.xlu0 %v848_v45, %s8668_s26 }
 0x7b4   :  { %v851_v46 = vpop.permute.xlu0 %850 }
 0x7b5   :  { %v853_v48 = vsel %vm841_vm5, %v851_v46, 0.0 }
 0x7b6   :  { %854 = vadd.xlane.f32.xlu0 %v853_v48 }
 0x7cc   :  { %874 = vrot.lane.b32.xlu0 %v872_v49, %s8667_s8  ;;  %v9133_v49 = vand.u32 127, %v177_v19 }
 0x843   :  { %v855_v51 = vpop.xlane.xlu0 %854 }
 0x844   :  { %v856_v52 = vmul.f32 0.03125, %v855_v51 }
 0x846   :  { %v857_v53 = vadd.f32 1e-05, %v856_v52 }
 0x847   :  { %v9076_v59 = vpop.permute.xlu0 %874 }
 0x848   :  { %8315 = vrsqrt.f32 %v857_v53 }
 0x852   :  { %v8316_v54 = vpop.eup %8315 }
 0x853   :  { %v859_v56 = vmul.f32 %v8316_v54, %v847_v44 }
 0x855   :  { %v868_v62 = vmul.f32 %v9074_v55, %v859_v56 }
 0x857   :  { %v9080_v1 = vadd.f32 %v9076_v59, %v868_v62 }
 0x859   :  { %8317 = vtanh.f32 %v9080_v1 }
 0x863   :  { %v8318_v25 = vpop.eup %8317 }
 0x864   :  { %880 = vrot.lane.b32.xlu1 %v8318_v25, %s8666_s10 }
 0x8d6   :  { %v881_v11 = vpop.permute.xlu1 %880 }
 0x8d7   :  { %v883_v15 = vmul.f32 %v8314_v26, %v881_v11  ;;  %v9098_v26 = vadd.f32 %v9020_v14, %v382_v30 }
 0x8d9   :  { %v891_v18 = vrot.slane %v883_v15, %v9085_v10 }
 0x8db   :  { %v892_v23 = vcombine.high %v891_v18, %v891_v18  ;;  %v899_v50 = vrot.slane %v891_v18, %v9085_v10 }
 0x8dd   :  { %v906_v24 = vrot.slane %v892_v23, %v9085_v10  ;;  %v910_v29 = vrot.slane %v899_v50, %v8905_v21 }
 0x8df   :  { %v991_v27 = vrot.slane %v906_v24, %v8905_v21 }
 0x8e1   :  { %992 = vrot.lane.b32.xlu1 %v991_v27, %s8667_s8 }
 0x8e5   :  { %911 = vrot.lane.b32.xlu1 %v910_v29, %s8667_s8 }
 0x953   :  { %v993_v31 = vpop.permute.xlu1 %992 }
 0x954   :  { %7577 = vmatmul.mubr.msk.f32.vlgmr.msra.gmra.mrb[8].mxu0 %vm291_vm2, %v993_v31 }
 0x955   :  { %7585 = vmatpush3.msra.mxu0 %v9098_v26  ;;  %7586 = vmatprep.mubr.msk.f32.mxu0 %vm8664_vm3, %v8665_v40 }
 0x956   :  { %8109 = vmatprep.subr.bf16.mxu0 %v8663_v13 }
 0x957   :  { %v912_v34 = vpop.permute.xlu1 %911 }
 0x958   :  { %7572 = vmatmul.mubr.msk.f32.vlgmr.msra.gmra.mrb[6].mxu1 %vm291_vm2, %v912_v34 }
 0x959   :  { %7580 = vmatpush3.msra.mxu1 %v9106_v32  ;;  %7581 = vmatprep.mubr.msk.f32.mxu1 %vm8664_vm3, %v8665_v40 }
 0x95a   :  { %8103 = vmatprep.subr.bf16.mxu1 %v8663_v13 }
 0xa27   :  { %v1065_v14 = vpop.f32.mrb[8].mxu0 }
 0xa28   :  { %v7578_v16 = vpop.f32.mrb[9].mxu0  ;;  %v1072_v37 = vrot.slane %v1065_v14, 7 }
 0xa2b   :  { %v984_v38 = vpop.f32.mrb[6].mxu1 }
 0xa2c   :  { %v1074_v43 = vsel %vm1073_vm6, %v1072_v37, %v984_v38  ;;  %v7573_v44 = vpop.f32.mrb[7].mxu1 }
 0xa2d   :  { %v9128_v45 = vsel %vm1069_vm7, %v1074_v43, -1e+09  ;;  %vm1139_vm7 = vcmp.eq.s32.totalorder %v9133_v49, 0 }
 0xa2e   :  { %v1118_v46 = vadd.f32 %v1116_v42, %v9128_v45 }
 0xa30   :  { %v1119_v48 = vsel %vm263_vm1, %v1118_v46, -inf }
 0xa31   :  { %1120 = vmax.xlane.f32.xlu0 %v1119_v48 }
 0xabe   :  { %v1121_v51 = vpop.xlane.xlu0 %1120 }
 0xabf   :  { %vm1122_vm8 = vcmp.ge.f32.partialorder %v1118_v46, %v1121_v51 }
 0xac0   :  { %v1123_v52 = vsel %vm1122_vm8, %v9133_v49, 8  ;;  %vm1938_vm8 = vcmp.eq.s32.totalorder %v9133_v49, 1 }
 0xac1   :  { %v1124_v53 = vsel %vm263_vm1, %v1123_v52, 2147483647 }
 0xac2   :  { %v1126_v54 = vshra.s32 %v1124_v53, 16  ;;  %v1125_v62 = vand.u32 65535, %v1124_v53 }
 0xac4   :  { %v1128_v56 = vcvt.s32.f32 %v1126_v54  ;;  %v1127_v5 = vcvt.s32.f32 %v1125_v62 }
 0xac6   :  { %1129 = vmin.xlane.f32.xlu1 %v1128_v56 }
 0xb53   :  { %v1130_v25 = vpop.xlane.xlu1 %1129 }
 0xb54   :  { %vm1131_vm9 = vcmp.eq.f32.partialorder %v1128_v56, %v1130_v25  ;;  %v1136_v8 = vcvt.f32.s32 %v1130_v25 }
 0xb55   :  { %v1132_v7 = vsel %vm1131_vm9, %v1127_v5, inf }
 0xb56   :  { %1133 = vmin.xlane.f32.xlu0 %v1132_v7  ;;  %v1137_v11 = vshll.u32 %v1136_v8, 16 }
 0xb6c   :  { %1555 = vrot.lane.b32.xlu0 %v883_v15, %s8667_s8 }
 0xbe3   :  { %v1134_v19 = vpop.xlane.xlu0 %1133 }
 0xbe4   :  { %v1135_v18 = vcvt.f32.s32 %v1134_v19 }
 0xbe6   :  { %v9138_v23 = vadd.s32 %v1137_v11, %v1135_v18 }
 0xbe7   :  { %v1556_v44 = vpop.permute.xlu0 %1555 }
 0xbe8   :  { %vm1141_vm10 = vcmp.eq.s32.totalorder %v9133_v49, %v9138_v23 }
 0xbe9   :  { %v9143_v24 = vsel %vm1141_vm10, 1.0, %v8665_v40 }
 0xbea   :  { %v1153_v50 = vrot.slane %v9143_v24, %v9085_v10 }
 0xbec   :  { %v1154_v27 = vcombine.high %v1153_v50, %v1153_v50  ;;  %v1161_v29 = vrot.slane %v1153_v50, %v9085_v10 }
 0xbee   :  { %v1168_v15 = vrot.slane %v1154_v27, %v9085_v10  ;;  %7582 = vmatmul.mubr.msk.f32.vlgmr.msra.gmra.mrb[8].mxu1 %vm1169_vm11, %v1161_v29 }
 0xbef   :  { %8105 = vmatpush3.bf16.msra.mxu1 %v8924_v35  ;;  %7597 = vmatprep.mubr.msk.f32.mxu1 %vm8664_vm3, %v8665_v40 }
 0xbf0   :  { %7587 = vmatmul.mubr.msk.f32.vlgmr.msra.gmra.mrb[10].mxu0 %vm1169_vm11, %v1168_v15  ;;  %8106 = vmatprep.subr.bf16.mxu1 %v8663_v13 }
 0xbf1   :  { %8111 = vmatpush3.bf16.msra.mxu0 %v8963_v57  ;;  %7608 = vmatprep.mubr.msk.f32.mxu0 %vm8664_vm3, %v8665_v40 }
 0xbf2   :  { %8112 = vmatprep.subr.bf16.mxu0 %v8663_v13 }
 0xbf3   :  { %8108 = vmatpush3.bf16.msra.mxu1 %v8930_v39 }
 0xbf4   :  { %8115 = vmatprep.subr.bf16.mxu1 %v8663_v13 }
 0xbf5   :  { %8114 = vmatpush3.bf16.msra.mxu0 %v8973_v63 }
 0xbf6   :  { %8121 = vmatprep.subr.bf16.mxu0 %v8663_v13 }
 0xcc1   :  { %v1238_v30 = vpop.f32.mrb[8].mxu1 }
 0xcc2   :  { %v7583_v31 = vpop.f32.mrb[9].mxu1 }
 0xcc3   :  { %v1310_v34 = vpop.f32.mrb[10].mxu0 }
 0xcc4   :  { %v1316_v14 = vrot.slane %v1310_v34, 7  ;;  %v7588_v60 = vpop.f32.mrb[11].mxu0 }
 0xcc6   :  { %v1317_v16 = vsel %vm1073_vm6, %v1316_v14, %v1238_v30 }
 0xcc7   :  { %v9165_v37 = vadd.f32 %v1317_v16, %v8936_v41 }
 0xcc9   :  { %7598 = vmatmul.mubr.msk.f32.vlgmr.msra.gmra.mrb[10].mxu1 %vm291_vm2, %v9165_v37 }
 0xcca   :  { %8117 = vmatpush3.bf16.msra.mxu1 %v8956_v47  ;;  %7619 = vmatprep.mubr.msk.f32.mxu1 %vm8664_vm3, %v8665_v40 }
 0xccb   :  { %8118 = vmatprep.subr.bf16.mxu1 %v8663_v13 }
 0xcce   :  { %8120 = vmatpush3.bf16.msra.mxu1 %v9016_v12 }
 0xccf   :  { %7633 = vmatprep.subr.mxu1 %v8665_v40 }
 0xd9c   :  { %v1389_v38 = vpop.f32.mrb[10].mxu1 }
 0xd9d   :  { %v1390_v42 = vadd.f32 %v1389_v38, %v8968_v58  ;;  %v7599_v43 = vpop.f32.mrb[11].mxu1 }
 0xd9f   :  { %v1393_v41 = vmax.f32 %v1390_v42, 0.0 }
 0xda1   :  { %7609 = vmatmul.mubr.msk.f32.vlgmr.msra.gmra.mrb[12].mxu0 %vm291_vm2, %v1393_v41 }
 0xda2   :  { %8123 = vmatpush3.bf16.msra.mxu0 %v8986_v6  ;;  %7630 = vmatprep.mubr.msk.f32.mxu0 %vm8664_vm3, %v8665_v40 }
 0xda3   :  { %8124 = vmatprep.subr.bf16.mxu0 %v8663_v13 }
 0xda6   :  { %8126 = vmatpush3.bf16.msra.mxu0 %v8997_v9 }
 0xda7   :  { %7638 = vmatprep.subr.mxu0 %v8665_v40 }
 0xda9   :  { %7631 = vmatmul.mubr.msk.f32.vlgmr.msra.gmra.mrb[14].mxu0 %vm291_vm2, %v1556_v44 }
 0xdaa   :  { %7640 = vmatprep.mubr.msk.f32.mxu0 %vm8664_vm3, %v8665_v40 }
 0xdaf   :  { %7639 = vmatpush3.xpose.msk.msra.mxu0 %vm291_vm2, %v8918_v28 }
 0xdb0   :  { %7648 = vmatprep.subr.mxu0 %v8665_v40 }
 0xe74   :  { %v1463_v46 = vpop.f32.mrb[12].mxu0 }
 0xe75   :  { %v1464_v48 = vadd.f32 %v1463_v46, %v9026_v17  ;;  %v7610_v51 = vpop.f32.mrb[13].mxu0 }
 0xe77   :  { %7620 = vmatmul.mubr.msk.f32.vlgmr.msra.gmra.mrb[12].mxu1 %vm291_vm2, %v1464_v48 }
 0xe78   :  { %7634 = vmatpush3.xpose.msk.msra.mxu1 %vm291_vm2, %v8921_v33  ;;  %7635 = vmatprep.mubr.msk.f32.mxu1 %vm8664_vm3, %v8665_v40 }
 0xe79   :  { %7643 = vmatprep.subr.mxu1 %v8665_v40 }
 0xe7c   :  { %v1625_v52 = vpop.f32.mrb[14].mxu0 }
 0xe7d   :  { %v7632_v53 = vpop.f32.mrb[15].mxu0  ;;  %v1629_v25 = vsel %vm697_vm4, %v1625_v52, 0.0 }
 0xf4a   :  { %v1536_v54 = vpop.f32.mrb[12].mxu1 }
 0xf4b   :  { %v7621_v56 = vpop.f32.mrb[13].mxu1  ;;  %v1540_v62 = vsel %vm697_vm4, %v1536_v54, 0.0 }
 0xf4c   :  { %1541 = vadd.xlane.f32.xlu1 %v1540_v62 }
 0xf50   :  { %1630 = vadd.xlane.f32.xlu1 %v1629_v25 }
 0xfd9   :  { %v1542_v5 = vpop.xlane.xlu1 %1541 }
 0xfda   :  { %v1543_v7 = vmul.f32 0.0078125, %v1542_v5 }
 0xfdc   :  { %v1544_v8 = vsub.f32 %v1536_v54, %v1543_v7 }
 0xfdd   :  { %v1631_v19 = vpop.xlane.xlu1 %1630 }
 0xfde   :  { %v1632_v11 = vmul.f32 0.0078125, %v1631_v19  ;;  %v1545_v18 = vmul.f32 %v1544_v8, %v1544_v8 }
 0xfe0   :  { %v1633_v50 = vsub.f32 %v1625_v52, %v1632_v11  ;;  %v1546_v27 = vsel %vm697_vm4, %v1545_v18, 0.0 }
 0xfe1   :  { %1547 = vadd.xlane.f32.xlu1 %v1546_v27 }
 0xfe2   :  { %v1634_v29 = vmul.f32 %v1633_v50, %v1633_v50 }
 0xfe4   :  { %v1635_v15 = vsel %vm697_vm4, %v1634_v29, 0.0 }
 0xfe5   :  { %1636 = vadd.xlane.f32.xlu1 %v1635_v15 }
0x106e   :  { %v1548_v30 = vpop.xlane.xlu1 %1547 }
0x106f   :  { %v1549_v31 = vmul.f32 0.0078125, %v1548_v30 }
0x1071   :  { %v1550_v34 = vadd.f32 1e-05, %v1549_v31 }
0x1072   :  { %v1637_v14 = vpop.xlane.xlu1 %1636 }
0x1073   :  { %8319 = vrsqrt.f32 %v1550_v34  ;;  %v1638_v60 = vmul.f32 0.0078125, %v1637_v14 }
0x1075   :  { %v1639_v16 = vadd.f32 1e-05, %v1638_v60 }
0x1077   :  { %8321 = vrsqrt.f32 %v1639_v16 }
0x107d   :  { %v8320_v38 = vpop.eup %8319 }
0x107e   :  { %v1552_v42 = vmul.f32 %v8320_v38, %v1544_v8 }
0x1080   :  { %v1553_v41 = vmul.f32 %v1552_v42, %v9048_v0 }
0x1081   :  { %v8322_v43 = vpop.eup %8321 }
0x1082   :  { %v1641_v44 = vmul.f32 %v8322_v43, %v1633_v50  ;;  %v1554_v48 = vadd.f32 %v1553_v41, %v9051_v2 }
0x1084   :  { %v1642_v46 = vmul.f32 %v1641_v44, %v9045_v61 }
0x1086   :  { %v1643_v51 = vadd.f32 %v1642_v46, %v9055_v3 }
0x1088   :  { %v1644_v52 = vadd.f32 %v1643_v51, %v1554_v48 }
0x108a   :  { %8323 = vtanh.f32 %v1644_v52  ;;  %v7163_v54 = vmul.f32 -1.442695, %v1644_v52 }
0x108c   :  { %8325 = vpow2.f32 %v7163_v54 }
0x1094   :  { %v8324_v53 = vpop.eup %8323 }
0x1095   :  { %1654 = vrot.lane.b32.xlu1 %v8324_v53, %s8666_s10 }
0x1096   :  { %v8326_v56 = vpop.eup %8325 }
0x1097   :  { %v1648_v62 = vadd.f32 1.0, %v8326_v56 }
0x1099   :  { %8327 = vrcp.f32 %v1648_v62 }
0x10a3   :  { %v8328_v25 = vpop.eup %8327 }
0x10a4   :  { %v1652_v8 = vmul.f32 %v8328_v25, %v9080_v1 }
0x1107   :  { %v1655_v5 = vpop.permute.xlu1 %1654 }
0x1108   :  { %v1657_v7 = vmul.f32 %v8328_v25, %v1655_v5  ;;  %v1144_v5 = vsub.f32 1.0, %v9143_v24 }
0x110a   :  { %1659 = vrot.lane.b32.xlu0 %v1657_v7, %s8667_s8  ;;  %v1085_v7 = vrot.slane %v9128_v45, %v9085_v10 }
0x117c   :  { %v1660_v19 = vpop.permute.xlu0 %1659 }
0x117d   :  { %v1662_v11 = vadd.f32 %v1660_v19, %v1652_v8  ;;  %v1914_v19 = vrot.slane %v9122_v36, 1 }
0x117f   :  { %1664 = vrot.lane.b32.xlu0 %v1662_v11, %s8668_s26 }
0x11f1   :  { %v1665_v18 = vpop.permute.xlu0 %1664 }
0x11f2   :  { %v1667_v50 = vsel %vm841_vm5, %v1665_v18, 0.0  ;;  %v9242_v18 = vmul.f32 %v1144_v5, %v8878_v4 }
0x11f3   :  { %1668 = vadd.xlane.f32.xlu0 %v1667_v50  ;;  %v1086_v50 = vcombine.high %v1085_v7, %v1085_v7 }
0x11f4   :  { %vm1871_vm12 = vcmp.gt.f32.partialorder %v9242_v18, 0.5 }
0x11f5   :  { %v1100_v24 = vrot.slane %v1086_v50, %v9085_v10 }
0x1280   :  { %v1669_v27 = vpop.xlane.xlu0 %1668 }
0x1281   :  { %v1670_v29 = vmul.f32 0.03125, %v1669_v27 }
0x1283   :  { %v1671_v15 = vsub.f32 %v1662_v11, %v1670_v29 }
0x1285   :  { %v1672_v30 = vmul.f32 %v1671_v15, %v1671_v15 }
0x1287   :  { %1674 = vrot.lane.b32.xlu1 %v1672_v30, %s8668_s26  ;;  %v1093_v30 = vrot.slane %v1085_v7, %v9085_v10 }
0x12f9   :  { %v1675_v31 = vpop.permute.xlu1 %1674 }
0x12fa   :  { %v1677_v34 = vsel %vm841_vm5, %v1675_v31, 0.0  ;;  %v1915_v31 = vsel %vm1073_vm6, %v9116_v22, %v1914_v19 }
0x12fb   :  { %1678 = vadd.xlane.f32.xlu1 %v1677_v34 }
0x1388   :  { %v1679_v14 = vpop.xlane.xlu1 %1678 }
0x1389   :  { %v1680_v1 = vmul.f32 0.03125, %v1679_v14 }
0x138b   :  { %v1681_v60 = vadd.f32 1e-05, %v1680_v1  ;;  %v1104_v1 = vrot.slane %v1093_v30, %v8905_v21 }
0x138d   :  { %8329 = vrsqrt.f32 %v1681_v60 }
0x1397   :  { %v8330_v16 = vpop.eup %8329 }
0x1398   :  { %v1683_v38 = vmul.f32 %v8330_v16, %v1671_v15 }
0x139a   :  { %v1684_v42 = vmul.f32 %v1683_v38, %v9074_v55 }
0x139c   :  { %v9213_v43 = vadd.f32 %v1684_v42, %v9076_v59  ;;  %v1108_v42 = vrot.slane %v1100_v24, %v8905_v21 }
0x139e   :  { %8331 = vtanh.f32 %v9213_v43 }
0x13a8   :  { %v8332_v41 = vpop.eup %8331 }
0x13a9   :  { %1688 = vrot.lane.b32.xlu0 %v8332_v41, %s8666_s10 }
0x141b   :  { %v1689_v44 = vpop.permute.xlu0 %1688 }
0x141c   :  { %v9217_v46 = vmul.f32 %v8328_v25, %v1689_v44 }
0x141e   :  { %v1699_v48 = vrot.slane %v9217_v46, %v9085_v10 }
0x1420   :  { %v1700_v51 = vcombine.high %v1699_v48, %v1699_v48  ;;  %v1707_v52 = vrot.slane %v1699_v48, %v9085_v10  ;;  %v1111_v48 = vsel %vm1077_vm13, %v1104_v1, 0.0 }
0x1422   :  { %v1718_v53 = vrot.slane %v1707_v52, %v8905_v21  ;;  %v1714_v54 = vrot.slane %v1700_v51, %v9085_v10 }
0x1424   :  { %1719 = vrot.lane.b32.xlu0 %v1718_v53, %s8667_s8  ;;  %v1796_v56 = vrot.slane %v1714_v54, %v8905_v21  ;;  %v1112_v53 = vsel %vm1077_vm13, %v1108_v42, 0.0 }
0x1426   :  { %1797 = vrot.lane.b32.xlu1 %v1796_v56, %s8667_s8 }
0x1496   :  { %v1720_v62 = vpop.permute.xlu0 %1719 }
0x1497   :  { %7636 = vmatmul.mubr.msk.f32.vlgmr.msra.gmra.mrb[14].mxu1 %vm291_vm2, %v1720_v62 }
0x1498   :  { %7644 = vmatpush3.msra.mxu1 %v9106_v32  ;;  %v1798_v25 = vpop.permute.xlu1 %1797  ;;  %7645 = vmatprep.mubr.msk.f32.mxu1 %vm8664_vm3, %v8665_v40 }
0x1499   :  { %7641 = vmatmul.mubr.msk.f32.vlgmr.msra.gmra.mrb[16].mxu0 %vm291_vm2, %v1798_v25  ;;  %8127 = vmatprep.subr.bf16.mxu1 %v8663_v13 }
0x149a   :  { %7649 = vmatpush3.msra.mxu0 %v9098_v26  ;;  %7650 = vmatprep.mubr.msk.f32.mxu0 %vm8664_vm3, %v8665_v40 }
0x149b   :  { %8133 = vmatprep.subr.bf16.mxu0 %v8663_v13 }
0x156a   :  { %v1789_v8 = vpop.f32.mrb[14].mxu1 }
0x156b   :  { %v7637_v11 = vpop.f32.mrb[15].mxu1 }
0x156c   :  { %v1867_v27 = vpop.f32.mrb[16].mxu0 }
0x156d   :  { %v1874_v29 = vrot.slane %v1867_v27, 7  ;;  %v7642_v15 = vpop.f32.mrb[17].mxu0 }
0x156f   :  { %v1875_v45 = vsel %vm1073_vm6, %v1874_v29, %v1789_v8 }
0x1570   :  { %v1877_v34 = vsel %vm1871_vm12, %v1875_v45, -1e+09  ;;  %v1140_v45 = vsel %vm1139_vm7, %v9138_v23, 0  ;;  %vm2676_vm12 = vcmp.eq.s32.totalorder %v8902_v20, 2 }
0x1571   :  { %v1917_v14 = vadd.f32 %v1915_v31, %v1877_v34  ;;  %v1886_v4 = vrot.slane %v1877_v34, %v9085_v10 }
0x1573   :  { %v1918_v60 = vsel %vm263_vm1, %v1917_v14, -inf  ;;  %v1887_v16 = vcombine.high %v1886_v4, %v1886_v4  ;;  %v1894_v38 = vrot.slane %v1886_v4, %v9085_v10 }
0x1574   :  { %1919 = vmax.xlane.f32.xlu0 %v1918_v60 }
0x1575   :  { %v1901_v41 = vrot.slane %v1887_v16, %v9085_v10  ;;  %v1905_v44 = vrot.slane %v1894_v38, %v8905_v21 }
0x1577   :  { %v1909_v51 = vrot.slane %v1901_v41, %v8905_v21  ;;  %v9260_v52 = vsel %vm1878_vm14, %v1905_v44, %v1111_v48 }
0x1579   :  { %v9262_v54 = vsel %vm1878_vm14, %v1909_v51, %v1112_v53 }
0x1601   :  { %v1920_v56 = vpop.xlane.xlu0 %1919 }
0x1602   :  { %vm1921_vm15 = vcmp.ge.f32.partialorder %v1917_v14, %v1920_v56 }
0x1603   :  { %v1922_v62 = vsel %vm1921_vm15, %v9133_v49, 8  ;;  %vm2737_vm15 = vcmp.eq.s32.totalorder %v9133_v49, 2 }
0x1604   :  { %v1923_v25 = vsel %vm263_vm1, %v1922_v62, 2147483647 }
0x1605   :  { %v1925_v5 = vshra.s32 %v1923_v25, 16  ;;  %v1924_v8 = vand.u32 65535, %v1923_v25 }
0x1607   :  { %v1927_v7 = vcvt.s32.f32 %v1925_v5  ;;  %v1926_v11 = vcvt.s32.f32 %v1924_v8 }
0x1609   :  { %1928 = vmin.xlane.f32.xlu1 %v1927_v7 }
0x1696   :  { %v1929_v19 = vpop.xlane.xlu1 %1928 }
0x1697   :  { %vm1930_vm0 = vcmp.eq.f32.partialorder %v1927_v7, %v1929_v19  ;;  %v1935_v27 = vcvt.f32.s32 %v1929_v19 }
0x1698   :  { %v1931_v50 = vsel %vm1930_vm0, %v1926_v11, inf }
0x1699   :  { %1932 = vmin.xlane.f32.xlu0 %v1931_v50  ;;  %v1936_v15 = vshll.u32 %v1935_v27, 16 }
0x16af   :  { %2353 = vrot.lane.b32.xlu0 %v9217_v46, %s8667_s8 }
0x1726   :  { %v1933_v29 = vpop.xlane.xlu0 %1932 }
0x1727   :  { %v1934_v30 = vcvt.f32.s32 %v1933_v29 }
0x1729   :  { %v1937_v31 = vadd.s32 %v1936_v15, %v1934_v30 }
0x172a   :  { %v2354_v56 = vpop.permute.xlu0 %2353 }
0x172b   :  { %v9271_v24 = vsel %vm1938_vm8, %v1937_v31, %v1140_v45  ;;  %vm1940_vm9 = vcmp.eq.s32.totalorder %v9133_v49, %v1937_v31  ;;  %vm3475_vm8 = vcmp.eq.s32.totalorder %v8902_v20, 3 }
0x172c   :  { %v9275_v34 = vsel %vm1940_vm9, 1.0, %v8665_v40 }
0x172d   :  { %v1952_v46 = vrot.slane %v9275_v34, %v9085_v10 }
0x172f   :  { %v1953_v14 = vcombine.high %v1952_v46, %v1952_v46  ;;  %v1960_v4 = vrot.slane %v1952_v46, %v9085_v10 }
0x1731   :  { %v1967_v1 = vrot.slane %v1953_v14, %v9085_v10  ;;  %7646 = vmatmul.mubr.msk.f32.vlgmr.msra.gmra.mrb[16].mxu1 %vm1169_vm11, %v1960_v4 }
0x1732   :  { %8129 = vmatpush3.bf16.msra.mxu1 %v8924_v35  ;;  %7661 = vmatprep.mubr.msk.f32.mxu1 %vm8664_vm3, %v8665_v40 }
0x1733   :  { %7651 = vmatmul.mubr.msk.f32.vlgmr.msra.gmra.mrb[18].mxu0 %vm1169_vm11, %v1967_v1  ;;  %8130 = vmatprep.subr.bf16.mxu1 %v8663_v13 }
0x1734   :  { %8135 = vmatpush3.bf16.msra.mxu0 %v8963_v57  ;;  %7672 = vmatprep.mubr.msk.f32.mxu0 %vm8664_vm3, %v8665_v40 }
0x1735   :  { %8136 = vmatprep.subr.bf16.mxu0 %v8663_v13 }
0x1736   :  { %8132 = vmatpush3.bf16.msra.mxu1 %v8930_v39 }
0x1737   :  { %8139 = vmatprep.subr.bf16.mxu1 %v8663_v13 }
0x1738   :  { %8138 = vmatpush3.bf16.msra.mxu0 %v8973_v63 }
0x1739   :  { %8145 = vmatprep.subr.bf16.mxu0 %v8663_v13 }
0x1804   :  { %v2036_v23 = vpop.f32.mrb[16].mxu1 }
0x1805   :  { %v7647_v60 = vpop.f32.mrb[17].mxu1 }
0x1806   :  { %v2108_v16 = vpop.f32.mrb[18].mxu0 }
0x1807   :  { %v2114_v38 = vrot.slane %v2108_v16, 7  ;;  %v7652_v42 = vpop.f32.mrb[19].mxu0 }
0x1809   :  { %v2115_v41 = vsel %vm1073_vm6, %v2114_v38, %v2036_v23 }
0x180a   :  { %v9297_v44 = vadd.f32 %v2115_v41, %v9165_v37 }
0x180c   :  { %7662 = vmatmul.mubr.msk.f32.vlgmr.msra.gmra.mrb[18].mxu1 %vm291_vm2, %v9297_v44 }
0x180d   :  { %8141 = vmatpush3.bf16.msra.mxu1 %v8956_v47  ;;  %7683 = vmatprep.mubr.msk.f32.mxu1 %vm8664_vm3, %v8665_v40 }
0x180e   :  { %8142 = vmatprep.subr.bf16.mxu1 %v8663_v13 }
0x1811   :  { %8144 = vmatpush3.bf16.msra.mxu1 %v9016_v12 }
0x1812   :  { %7697 = vmatprep.subr.mxu1 %v8665_v40 }
0x18df   :  { %v2187_v48 = vpop.f32.mrb[18].mxu1 }
0x18e0   :  { %v2188_v51 = vadd.f32 %v2187_v48, %v8968_v58  ;;  %v7663_v53 = vpop.f32.mrb[19].mxu1 }
0x18e2   :  { %v2191_v37 = vmax.f32 %v2188_v51, 0.0 }
0x18e4   :  { %7673 = vmatmul.mubr.msk.f32.vlgmr.msra.gmra.mrb[20].mxu0 %vm291_vm2, %v2191_v37 }
0x18e5   :  { %8147 = vmatpush3.bf16.msra.mxu0 %v8986_v6  ;;  %7694 = vmatprep.mubr.msk.f32.mxu0 %vm8664_vm3, %v8665_v40 }
0x18e6   :  { %8148 = vmatprep.subr.bf16.mxu0 %v8663_v13 }
0x18e9   :  { %8150 = vmatpush3.bf16.msra.mxu0 %v8997_v9 }
0x18ea   :  { %7702 = vmatprep.subr.mxu0 %v8665_v40 }
0x18ec   :  { %7695 = vmatmul.mubr.msk.f32.vlgmr.msra.gmra.mrb[22].mxu0 %vm291_vm2, %v2354_v56 }
0x18ed   :  { %7704 = vmatprep.mubr.msk.f32.mxu0 %vm8664_vm3, %v8665_v40 }
0x18f2   :  { %7703 = vmatpush3.xpose.msk.msra.mxu0 %vm291_vm2, %v8918_v28 }
0x18f3   :  { %7712 = vmatprep.subr.mxu0 %v8665_v40 }
0x19b7   :  { %v2261_v62 = vpop.f32.mrb[20].mxu0 }
0x19b8   :  { %v2262_v25 = vadd.f32 %v2261_v62, %v9026_v17  ;;  %v7674_v5 = vpop.f32.mrb[21].mxu0 }
0x19ba   :  { %7684 = vmatmul.mubr.msk.f32.vlgmr.msra.gmra.mrb[20].mxu1 %vm291_vm2, %v2262_v25 }
0x19bb   :  { %7698 = vmatpush3.xpose.msk.msra.mxu1 %vm291_vm2, %v8921_v33  ;;  %7699 = vmatprep.mubr.msk.f32.mxu1 %vm8664_vm3, %v8665_v40 }
0x19bc   :  { %7707 = vmatprep.subr.mxu1 %v8665_v40 }
0x19bf   :  { %v2423_v7 = vpop.f32.mrb[22].mxu0 }
0x19c0   :  { %v7696_v8 = vpop.f32.mrb[23].mxu0  ;;  %v2427_v27 = vsel %vm697_vm4, %v2423_v7, 0.0 }
0x1a8d   :  { %v2334_v19 = vpop.f32.mrb[20].mxu1 }
0x1a8e   :  { %v7685_v11 = vpop.f32.mrb[21].mxu1  ;;  %v2338_v50 = vsel %vm697_vm4, %v2334_v19, 0.0 }
0x1a8f   :  { %2339 = vadd.xlane.f32.xlu1 %v2338_v50 }
0x1a93   :  { %2428 = vadd.xlane.f32.xlu1 %v2427_v27 }
0x1b1c   :  { %v2340_v29 = vpop.xlane.xlu1 %2339 }
0x1b1d   :  { %v2341_v15 = vmul.f32 0.0078125, %v2340_v29 }
0x1b1f   :  { %v2342_v30 = vsub.f32 %v2334_v19, %v2341_v15 }
0x1b20   :  { %v2429_v31 = vpop.xlane.xlu1 %2428 }
0x1b21   :  { %v2430_v45 = vmul.f32 0.0078125, %v2429_v31  ;;  %v2343_v46 = vmul.f32 %v2342_v30, %v2342_v30 }
0x1b23   :  { %v2431_v14 = vsub.f32 %v2423_v7, %v2430_v45  ;;  %v2344_v4 = vsel %vm697_vm4, %v2343_v46, 0.0 }
0x1b24   :  { %2345 = vadd.xlane.f32.xlu1 %v2344_v4 }
0x1b25   :  { %v2432_v1 = vmul.f32 %v2431_v14, %v2431_v14 }
0x1b27   :  { %v2433_v23 = vsel %vm697_vm4, %v2432_v1, 0.0 }
0x1b28   :  { %2434 = vadd.xlane.f32.xlu1 %v2433_v23 }
0x1bb1   :  { %v2346_v60 = vpop.xlane.xlu1 %2345 }
0x1bb2   :  { %v2347_v16 = vmul.f32 0.0078125, %v2346_v60 }
0x1bb4   :  { %v2348_v38 = vadd.f32 1e-05, %v2347_v16 }
0x1bb5   :  { %v2435_v42 = vpop.xlane.xlu1 %2434 }
0x1bb6   :  { %8333 = vrsqrt.f32 %v2348_v38  ;;  %v2436_v41 = vmul.f32 0.0078125, %v2435_v42 }
0x1bb8   :  { %v2437_v48 = vadd.f32 1e-05, %v2436_v41 }
0x1bba   :  { %8335 = vrsqrt.f32 %v2437_v48 }
0x1bc0   :  { %v8334_v51 = vpop.eup %8333 }
0x1bc1   :  { %v2350_v53 = vmul.f32 %v8334_v51, %v2342_v30 }
0x1bc3   :  { %v2351_v56 = vmul.f32 %v2350_v53, %v9048_v0 }
0x1bc4   :  { %v8336_v37 = vpop.eup %8335 }
0x1bc5   :  { %v2439_v62 = vmul.f32 %v8336_v37, %v2431_v14  ;;  %v2352_v5 = vadd.f32 %v2351_v56, %v9051_v2 }
0x1bc7   :  { %v2440_v25 = vmul.f32 %v2439_v62, %v9045_v61 }
0x1bc9   :  { %v2441_v7 = vadd.f32 %v2440_v25, %v9055_v3 }
0x1bcb   :  { %v2442_v8 = vadd.f32 %v2441_v7, %v2352_v5 }
0x1bcd   :  { %8337 = vtanh.f32 %v2442_v8  ;;  %v7175_v11 = vmul.f32 -1.442695, %v2442_v8 }
0x1bcf   :  { %8339 = vpow2.f32 %v7175_v11 }
0x1bd7   :  { %v8338_v19 = vpop.eup %8337 }
0x1bd8   :  { %2452 = vrot.lane.b32.xlu0 %v8338_v19, %s8666_s10 }
0x1bd9   :  { %v8340_v50 = vpop.eup %8339 }
0x1bda   :  { %v2446_v27 = vadd.f32 1.0, %v8340_v50 }
0x1bdc   :  { %8341 = vrcp.f32 %v2446_v27 }
0x1be6   :  { %v8342_v29 = vpop.eup %8341 }
0x1be7   :  { %v2450_v31 = vmul.f32 %v8342_v29, %v9213_v43 }
0x1c4a   :  { %v2453_v15 = vpop.permute.xlu0 %2452 }
0x1c4b   :  { %v2455_v30 = vmul.f32 %v8342_v29, %v2453_v15 }
0x1c4d   :  { %2457 = vrot.lane.b32.xlu1 %v2455_v30, %s8667_s8  ;;  %v1943_v30 = vsub.f32 1.0, %v9275_v34 }
0x1cbf   :  { %v2458_v45 = vpop.permute.xlu1 %2457 }
0x1cc0   :  { %v2460_v46 = vadd.f32 %v2458_v45, %v2450_v31  ;;  %v2712_v45 = vrot.slane %v9122_v36, 2 }
0x1cc2   :  { %2462 = vrot.lane.b32.xlu0 %v2460_v46, %s8668_s26 }
0x1d34   :  { %v2463_v14 = vpop.permute.xlu0 %2462 }
0x1d35   :  { %v2465_v4 = vsel %vm841_vm5, %v2463_v14, 0.0 }
0x1d36   :  { %2466 = vadd.xlane.f32.xlu0 %v2465_v4  ;;  %v9370_v4 = vmul.f32 %v1943_v30, %v9242_v18 }
0x1d38   :  { %vm2669_vm10 = vcmp.gt.f32.partialorder %v9370_v4, 0.5 }
0x1dc3   :  { %v2467_v1 = vpop.xlane.xlu0 %2466 }
0x1dc4   :  { %v2468_v23 = vmul.f32 0.03125, %v2467_v1 }
0x1dc6   :  { %v2469_v60 = vsub.f32 %v2460_v46, %v2468_v23  ;;  %v2713_v46 = vrot.slane %v9116_v22, 1 }
0x1dc8   :  { %v2470_v16 = vmul.f32 %v2469_v60, %v2469_v60 }
0x1dca   :  { %2472 = vrot.lane.b32.xlu1 %v2470_v16, %s8668_s26  ;;  %v2714_v16 = vsel %vm1073_vm6, %v2713_v46, %v2712_v45 }
0x1e3c   :  { %v2473_v38 = vpop.permute.xlu1 %2472 }
0x1e3d   :  { %v2475_v42 = vsel %vm841_vm5, %v2473_v38, 0.0 }
0x1e3e   :  { %2476 = vadd.xlane.f32.xlu1 %v2475_v42 }
0x1ecb   :  { %v2477_v41 = vpop.xlane.xlu1 %2476 }
0x1ecc   :  { %v2478_v43 = vmul.f32 0.03125, %v2477_v41 }
0x1ece   :  { %v2479_v48 = vadd.f32 1e-05, %v2478_v43 }
0x1ed0   :  { %8343 = vrsqrt.f32 %v2479_v48 }
0x1eda   :  { %v8344_v51 = vpop.eup %8343 }
0x1edb   :  { %v2481_v53 = vmul.f32 %v8344_v51, %v2469_v60 }
0x1edd   :  { %v2482_v37 = vmul.f32 %v2481_v53, %v9074_v55 }
0x1edf   :  { %v9345_v56 = vadd.f32 %v2482_v37, %v9076_v59 }
0x1ee1   :  { %8345 = vtanh.f32 %v9345_v56 }
0x1eeb   :  { %v8346_v62 = vpop.eup %8345 }
0x1eec   :  { %2486 = vrot.lane.b32.xlu0 %v8346_v62, %s8666_s10 }
0x1f5e   :  { %v2487_v25 = vpop.permute.xlu0 %2486 }
0x1f5f   :  { %v2489_v5 = vmul.f32 %v8342_v29, %v2487_v25 }
0x1f61   :  { %v2497_v7 = vrot.slane %v2489_v5, %v9085_v10 }
0x1f63   :  { %v2498_v8 = vcombine.high %v2497_v7, %v2497_v7  ;;  %v2505_v19 = vrot.slane %v2497_v7, %v9085_v10 }
0x1f65   :  { %v2516_v11 = vrot.slane %v2505_v19, %v8905_v21  ;;  %v2512_v50 = vrot.slane %v2498_v8, %v9085_v10 }
0x1f67   :  { %2517 = vrot.lane.b32.xlu0 %v2516_v11, %s8667_s8  ;;  %v2594_v27 = vrot.slane %v2512_v50, %v8905_v21 }
0x1f69   :  { %2595 = vrot.lane.b32.xlu1 %v2594_v27, %s8667_s8 }
0x1fd9   :  { %v2518_v15 = vpop.permute.xlu0 %2517 }
0x1fda   :  { %7700 = vmatmul.mubr.msk.f32.vlgmr.msra.gmra.mrb[22].mxu1 %vm291_vm2, %v2518_v15 }
0x1fdb   :  { %7708 = vmatpush3.msra.mxu1 %v9106_v32  ;;  %v2596_v29 = vpop.permute.xlu1 %2595  ;;  %7709 = vmatprep.mubr.msk.f32.mxu1 %vm8664_vm3, %v8665_v40 }
0x1fdc   :  { %7705 = vmatmul.mubr.msk.f32.vlgmr.msra.gmra.mrb[24].mxu0 %vm291_vm2, %v2596_v29  ;;  %8151 = vmatprep.subr.bf16.mxu1 %v8663_v13 }
0x1fdd   :  { %7713 = vmatpush3.msra.mxu0 %v9098_v26  ;;  %7714 = vmatprep.mubr.msk.f32.mxu0 %vm8664_vm3, %v8665_v40 }
0x1fde   :  { %8157 = vmatprep.subr.bf16.mxu0 %v8663_v13 }
0x20ad   :  { %v2587_v31 = vpop.f32.mrb[22].mxu1 }
0x20ae   :  { %v7701_v14 = vpop.f32.mrb[23].mxu1 }
0x20af   :  { %v2665_v1 = vpop.f32.mrb[24].mxu0 }
0x20b0   :  { %v2672_v23 = vrot.slane %v2665_v1, 7  ;;  %v7706_v60 = vpop.f32.mrb[25].mxu0 }
0x20b2   :  { %v2673_v38 = vsel %vm1073_vm6, %v2672_v23, %v2587_v31 }
0x20b3   :  { %v2675_v42 = vsel %vm2669_vm10, %v2673_v38, -1e+09 }
0x20b4   :  { %v2716_v34 = vadd.f32 %v2714_v16, %v2675_v42  ;;  %v2684_v41 = vrot.slane %v2675_v42, %v9085_v10 }
0x20b6   :  { %v2717_v36 = vsel %vm263_vm1, %v2716_v34, -inf  ;;  %v2685_v22 = vcombine.high %v2684_v41, %v2684_v41  ;;  %v2692_v43 = vrot.slane %v2684_v41, %v9085_v10 }
0x20b7   :  { %2718 = vmax.xlane.f32.xlu0 %v2717_v36 }
0x20b8   :  { %v2699_v18 = vrot.slane %v2685_v22, %v9085_v10  ;;  %v2703_v48 = vrot.slane %v2692_v43, %v8905_v21 }
0x20ba   :  { %v2707_v51 = vrot.slane %v2699_v18, %v8905_v21  ;;  %v9383_v53 = vsel %vm2676_vm12, %v2703_v48, %v9260_v52 }
0x20bc   :  { %v9386_v37 = vsel %vm2676_vm12, %v2707_v51, %v9262_v54  ;;  %vm3536_vm12 = vcmp.eq.s32.totalorder %v9133_v49, 3 }
0x2144   :  { %v2719_v62 = vpop.xlane.xlu0 %2718 }
0x2145   :  { %vm2720_vm13 = vcmp.ge.f32.partialorder %v2716_v34, %v2719_v62 }
0x2146   :  { %v2721_v25 = vsel %vm2720_vm13, %v9133_v49, 8 }
0x2147   :  { %v2722_v7 = vsel %vm263_vm1, %v2721_v25, 2147483647 }
0x2148   :  { %v2724_v8 = vshra.s32 %v2722_v7, 16  ;;  %v2723_v11 = vand.u32 65535, %v2722_v7 }
0x214a   :  { %v2726_v19 = vcvt.s32.f32 %v2724_v8  ;;  %v2725_v27 = vcvt.s32.f32 %v2723_v11 }
0x214c   :  { %2727 = vmin.xlane.f32.xlu1 %v2726_v19 }
0x21d9   :  { %v2728_v50 = vpop.xlane.xlu1 %2727 }
0x21da   :  { %vm2729_vm14 = vcmp.eq.f32.partialorder %v2726_v19, %v2728_v50  ;;  %v2734_v52 = vcvt.f32.s32 %v2728_v50 }
0x21db   :  { %v2730_v15 = vsel %vm2729_vm14, %v2725_v27, inf }
0x21dc   :  { %2731 = vmin.xlane.f32.xlu0 %v2730_v15  ;;  %v2735_v29 = vshll.u32 %v2734_v52, 16 }
0x21f2   :  { %3152 = vrot.lane.b32.xlu0 %v2489_v5, %s8667_s8 }
0x2269   :  { %v2732_v54 = vpop.xlane.xlu0 %2731 }
0x226a   :  { %v2733_v30 = vcvt.f32.s32 %v2732_v54 }
0x226c   :  { %v2736_v31 = vadd.s32 %v2735_v29, %v2733_v30 }
0x226d   :  { %v3153_v18 = vpop.permute.xlu0 %3152 }
0x226e   :  { %v9393_v45 = vsel %vm2737_vm15, %v2736_v31, %v9271_v24  ;;  %vm2739_vm0 = vcmp.eq.s32.totalorder %v9133_v49, %v2736_v31  ;;  %vm4274_vm15 = vcmp.eq.s32.totalorder %v8902_v20, 4 }
0x226f   :  { %v9397_v46 = vsel %vm2739_vm0, 1.0, %v8665_v40 }
0x2270   :  { %v2751_v14 = vrot.slane %v9397_v46, %v9085_v10 }
0x2272   :  { %v2752_v1 = vcombine.high %v2751_v14, %v2751_v14  ;;  %v2759_v5 = vrot.slane %v2751_v14, %v9085_v10 }
0x2274   :  { %v2766_v23 = vrot.slane %v2752_v1, %v9085_v10  ;;  %7710 = vmatmul.mubr.msk.f32.vlgmr.msra.gmra.mrb[24].mxu1 %vm1169_vm11, %v2759_v5 }
0x2275   :  { %8153 = vmatpush3.bf16.msra.mxu1 %v8924_v35  ;;  %7725 = vmatprep.mubr.msk.f32.mxu1 %vm8664_vm3, %v8665_v40 }
0x2276   :  { %7715 = vmatmul.mubr.msk.f32.vlgmr.msra.gmra.mrb[26].mxu0 %vm1169_vm11, %v2766_v23  ;;  %8154 = vmatprep.subr.bf16.mxu1 %v8663_v13 }
0x2277   :  { %8159 = vmatpush3.bf16.msra.mxu0 %v8963_v57  ;;  %7736 = vmatprep.mubr.msk.f32.mxu0 %vm8664_vm3, %v8665_v40 }
0x2278   :  { %8160 = vmatprep.subr.bf16.mxu0 %v8663_v13 }
0x2279   :  { %8156 = vmatpush3.bf16.msra.mxu1 %v8930_v39 }
0x227a   :  { %8163 = vmatprep.subr.bf16.mxu1 %v8663_v13 }
0x227b   :  { %8162 = vmatpush3.bf16.msra.mxu0 %v8973_v63 }
0x227c   :  { %8169 = vmatprep.subr.bf16.mxu0 %v8663_v13 }
0x2347   :  { %v2835_v24 = vpop.f32.mrb[24].mxu1 }
0x2348   :  { %v7711_v60 = vpop.f32.mrb[25].mxu1 }
0x2349   :  { %v2907_v16 = vpop.f32.mrb[26].mxu0 }
0x234a   :  { %v2913_v38 = vrot.slane %v2907_v16, 7  ;;  %v7716_v42 = vpop.f32.mrb[27].mxu0 }
0x234c   :  { %v2914_v34 = vsel %vm1073_vm6, %v2913_v38, %v2835_v24 }
0x234d   :  { %v9419_v41 = vadd.f32 %v2914_v34, %v9297_v44 }
0x234f   :  { %7726 = vmatmul.mubr.msk.f32.vlgmr.msra.gmra.mrb[26].mxu1 %vm291_vm2, %v9419_v41 }
0x2350   :  { %8165 = vmatpush3.bf16.msra.mxu1 %v8956_v47  ;;  %7747 = vmatprep.mubr.msk.f32.mxu1 %vm8664_vm3, %v8665_v40 }
0x2351   :  { %8166 = vmatprep.subr.bf16.mxu1 %v8663_v13 }
0x2354   :  { %8168 = vmatpush3.bf16.msra.mxu1 %v9016_v12 }
0x2355   :  { %7761 = vmatprep.subr.mxu1 %v8665_v40 }
0x2422   :  { %v2986_v36 = vpop.f32.mrb[26].mxu1 }
0x2423   :  { %v2987_v22 = vadd.f32 %v2986_v36, %v8968_v58  ;;  %v7727_v43 = vpop.f32.mrb[27].mxu1 }
0x2425   :  { %v2990_v44 = vmax.f32 %v2987_v22, 0.0 }
0x2427   :  { %7737 = vmatmul.mubr.msk.f32.vlgmr.msra.gmra.mrb[28].mxu0 %vm291_vm2, %v2990_v44 }
0x2428   :  { %8171 = vmatpush3.bf16.msra.mxu0 %v8986_v6  ;;  %7758 = vmatprep.mubr.msk.f32.mxu0 %vm8664_vm3, %v8665_v40 }
0x2429   :  { %8172 = vmatprep.subr.bf16.mxu0 %v8663_v13 }
0x242c   :  { %8174 = vmatpush3.bf16.msra.mxu0 %v8997_v9 }
0x242d   :  { %7766 = vmatprep.subr.mxu0 %v8665_v40 }
0x242f   :  { %7759 = vmatmul.mubr.msk.f32.vlgmr.msra.gmra.mrb[30].mxu0 %vm291_vm2, %v3153_v18 }
0x2430   :  { %7768 = vmatprep.mubr.msk.f32.mxu0 %vm8664_vm3, %v8665_v40 }
0x2435   :  { %7767 = vmatpush3.xpose.msk.msra.mxu0 %vm291_vm2, %v8918_v28 }
0x2436   :  { %7776 = vmatprep.subr.mxu0 %v8665_v40 }
0x24fa   :  { %v3060_v48 = vpop.f32.mrb[28].mxu0 }
0x24fb   :  { %v3061_v51 = vadd.f32 %v3060_v48, %v9026_v17  ;;  %v7738_v62 = vpop.f32.mrb[29].mxu0 }
0x24fd   :  { %7748 = vmatmul.mubr.msk.f32.vlgmr.msra.gmra.mrb[28].mxu1 %vm291_vm2, %v3061_v51 }
0x24fe   :  { %7762 = vmatpush3.xpose.msk.msra.mxu1 %vm291_vm2, %v8921_v33  ;;  %7763 = vmatprep.mubr.msk.f32.mxu1 %vm8664_vm3, %v8665_v40 }
0x24ff   :  { %7771 = vmatprep.subr.mxu1 %v8665_v40 }
0x2502   :  { %v3222_v25 = vpop.f32.mrb[30].mxu0 }
0x2503   :  { %v7760_v7 = vpop.f32.mrb[31].mxu0  ;;  %v3226_v50 = vsel %vm697_vm4, %v3222_v25, 0.0 }
0x25d0   :  { %v3133_v8 = vpop.f32.mrb[28].mxu1 }
0x25d1   :  { %v7749_v19 = vpop.f32.mrb[29].mxu1  ;;  %v3137_v11 = vsel %vm697_vm4, %v3133_v8, 0.0 }
0x25d2   :  { %3138 = vadd.xlane.f32.xlu1 %v3137_v11 }
0x25d6   :  { %3227 = vadd.xlane.f32.xlu1 %v3226_v50 }
0x265f   :  { %v3139_v27 = vpop.xlane.xlu1 %3138 }
0x2660   :  { %v3140_v15 = vmul.f32 0.0078125, %v3139_v27 }
0x2662   :  { %v3141_v52 = vsub.f32 %v3133_v8, %v3140_v15 }
0x2663   :  { %v3228_v54 = vpop.xlane.xlu1 %3227 }
0x2664   :  { %v3229_v29 = vmul.f32 0.0078125, %v3228_v54  ;;  %v3142_v30 = vmul.f32 %v3141_v52, %v3141_v52 }
0x2666   :  { %v3230_v31 = vsub.f32 %v3222_v25, %v3229_v29  ;;  %v3143_v14 = vsel %vm697_vm4, %v3142_v30, 0.0 }
0x2667   :  { %3144 = vadd.xlane.f32.xlu1 %v3143_v14 }
0x2668   :  { %v3231_v1 = vmul.f32 %v3230_v31, %v3230_v31 }
0x266a   :  { %v3232_v5 = vsel %vm697_vm4, %v3231_v1, 0.0 }
0x266b   :  { %3233 = vadd.xlane.f32.xlu0 %v3232_v5 }
0x26f4   :  { %v3145_v23 = vpop.xlane.xlu1 %3144 }
0x26f5   :  { %v3146_v24 = vmul.f32 0.0078125, %v3145_v23 }
0x26f7   :  { %v3147_v60 = vadd.f32 1e-05, %v3146_v24 }
0x26f8   :  { %v3234_v16 = vpop.xlane.xlu0 %3233 }
0x26f9   :  { %8347 = vrsqrt.f32 %v3147_v60  ;;  %v3235_v38 = vmul.f32 0.0078125, %v3234_v16 }
0x26fb   :  { %v3236_v42 = vadd.f32 1e-05, %v3235_v38 }
0x26fd   :  { %8349 = vrsqrt.f32 %v3236_v42 }
0x2703   :  { %v8348_v34 = vpop.eup %8347 }
0x2704   :  { %v3149_v36 = vmul.f32 %v8348_v34, %v3141_v52 }
0x2706   :  { %v3150_v43 = vmul.f32 %v3149_v36, %v9048_v0 }
0x2707   :  { %v8350_v22 = vpop.eup %8349 }
0x2708   :  { %v3238_v44 = vmul.f32 %v8350_v22, %v3230_v31  ;;  %v3151_v48 = vadd.f32 %v3150_v43, %v9051_v2 }
0x270a   :  { %v3239_v18 = vmul.f32 %v3238_v44, %v9045_v61 }
0x270c   :  { %v3240_v51 = vadd.f32 %v3239_v18, %v9055_v3 }
0x270e   :  { %v3241_v62 = vadd.f32 %v3240_v51, %v3151_v48 }
0x2710   :  { %8351 = vtanh.f32 %v3241_v62  ;;  %v7187_v7 = vmul.f32 -1.442695, %v3241_v62 }
0x2712   :  { %8353 = vpow2.f32 %v7187_v7 }
0x271a   :  { %v8352_v25 = vpop.eup %8351 }
0x271b   :  { %3251 = vrot.lane.b32.xlu1 %v8352_v25, %s8666_s10 }
0x271c   :  { %v8354_v8 = vpop.eup %8353 }
0x271d   :  { %v3245_v19 = vadd.f32 1.0, %v8354_v8 }
0x271f   :  { %8355 = vrcp.f32 %v3245_v19 }
0x2729   :  { %v8356_v11 = vpop.eup %8355 }
0x272a   :  { %v3249_v15 = vmul.f32 %v8356_v11, %v9345_v56 }
0x278d   :  { %v3252_v50 = vpop.permute.xlu1 %3251 }
0x278e   :  { %v3254_v27 = vmul.f32 %v8356_v11, %v3252_v50 }
0x2790   :  { %3256 = vrot.lane.b32.xlu1 %v3254_v27, %s8667_s8  ;;  %v9492_v27 = vld [vmem:[%s10135_s3] sm:$0xff] }
0x2802   :  { %v3257_v52 = vpop.permute.xlu1 %3256 }
0x2803   :  { %v3259_v54 = vadd.f32 %v3257_v52, %v3249_v15  ;;  %v3511_v15 = vrot.slane %v9492_v27, 3  ;;  %v9498_v52 = vld [vmem:[%s10135_s3 + $0x8] sm:$0xff] }
0x2805   :  { %3261 = vrot.lane.b32.xlu1 %v3259_v54, %s8668_s26 }
0x2877   :  { %v3262_v29 = vpop.permute.xlu1 %3261 }
0x2878   :  { %v3264_v30 = vsel %vm841_vm5, %v3262_v29, 0.0 }
0x2879   :  { %3265 = vadd.xlane.f32.xlu1 %v3264_v30 }
0x2906   :  { %v3266_v31 = vpop.xlane.xlu1 %3265 }
0x2907   :  { %v3267_v14 = vmul.f32 0.03125, %v3266_v31 }
0x2909   :  { %v3268_v1 = vsub.f32 %v3259_v54, %v3267_v14  ;;  %v3512_v54 = vrot.slane %v9498_v52, 2 }
0x290b   :  { %v3269_v5 = vmul.f32 %v3268_v1, %v3268_v1 }
0x290d   :  { %3271 = vrot.lane.b32.xlu0 %v3269_v5, %s8668_s26 }
0x297f   :  { %v3272_v23 = vpop.permute.xlu0 %3271 }
0x2980   :  { %v3274_v24 = vsel %vm841_vm5, %v3272_v23, 0.0 }
0x2981   :  { %3275 = vadd.xlane.f32.xlu0 %v3274_v24 }
0x2a0e   :  { %v3276_v60 = vpop.xlane.xlu0 %3275 }
0x2a0f   :  { %v3277_v56 = vmul.f32 0.03125, %v3276_v60 }
0x2a11   :  { %v3278_v16 = vadd.f32 1e-05, %v3277_v56 }
0x2a13   :  { %8357 = vrsqrt.f32 %v3278_v16 }
0x2a1d   :  { %v8358_v38 = vpop.eup %8357 }
0x2a1e   :  { %v3280_v42 = vmul.f32 %v8358_v38, %v3268_v1  ;;  %v3513_v1 = vsel %vm1073_vm6, %v3512_v54, %v3511_v15 }
0x2a20   :  { %v3281_v34 = vmul.f32 %v3280_v42, %v9074_v55 }
0x2a22   :  { %v9467_v36 = vadd.f32 %v3281_v34, %v9076_v59 }
0x2a24   :  { %8359 = vtanh.f32 %v9467_v36 }
0x2a2e   :  { %v8360_v22 = vpop.eup %8359 }
0x2a2f   :  { %3285 = vrot.lane.b32.xlu1 %v8360_v22, %s8666_s10 }
0x2aa1   :  { %v3286_v43 = vpop.permute.xlu1 %3285 }
0x2aa2   :  { %v3288_v44 = vmul.f32 %v8356_v11, %v3286_v43  ;;  %v2742_v11 = vsub.f32 1.0, %v9397_v46 }
0x2aa4   :  { %v3296_v18 = vrot.slane %v3288_v44, %v9085_v10  ;;  %v9502_v30 = vmul.f32 %v2742_v11, %v9370_v4 }
0x2aa6   :  { %v3297_v48 = vcombine.high %v3296_v18, %v3296_v18  ;;  %v3304_v51 = vrot.slane %v3296_v18, %v9085_v10  ;;  %vm3468_vm7 = vcmp.gt.f32.partialorder %v9502_v30, 0.5 }
0x2aa8   :  { %v3315_v62 = vrot.slane %v3304_v51, %v8905_v21  ;;  %v3311_v25 = vrot.slane %v3297_v48, %v9085_v10 }
0x2aaa   :  { %3316 = vrot.lane.b32.xlu0 %v3315_v62, %s8667_s8  ;;  %v3393_v7 = vrot.slane %v3311_v25, %v8905_v21 }
0x2aac   :  { %3394 = vrot.lane.b32.xlu1 %v3393_v7, %s8667_s8 }
0x2b1c   :  { %v3317_v8 = vpop.permute.xlu0 %3316 }
0x2b1d   :  { %7764 = vmatmul.mubr.msk.f32.vlgmr.msra.gmra.mrb[30].mxu1 %vm291_vm2, %v3317_v8 }
0x2b1e   :  { %7772 = vmatpush3.msra.mxu1 %v9106_v32  ;;  %v3395_v19 = vpop.permute.xlu1 %3394  ;;  %7773 = vmatprep.mubr.msk.f32.mxu1 %vm8664_vm3, %v8665_v40 }
0x2b1f   :  { %7769 = vmatmul.mubr.msk.f32.vlgmr.msra.gmra.mrb[32].mxu0 %vm291_vm2, %v3395_v19  ;;  %8175 = vmatprep.subr.bf16.mxu1 %v8663_v13 }
0x2b20   :  { %7777 = vmatpush3.msra.mxu0 %v9098_v26  ;;  %7778 = vmatprep.mubr.msk.f32.mxu0 %vm8664_vm3, %v8665_v40 }
0x2b21   :  { %8181 = vmatprep.subr.bf16.mxu0 %v8663_v13 }
0x2bf0   :  { %v3386_v50 = vpop.f32.mrb[30].mxu1 }
0x2bf1   :  { %v7765_v29 = vpop.f32.mrb[31].mxu1 }
0x2bf2   :  { %v3464_v46 = vpop.f32.mrb[32].mxu0 }
0x2bf3   :  { %v3471_v31 = vrot.slane %v3464_v46, 7  ;;  %v7770_v14 = vpop.f32.mrb[33].mxu0 }
0x2bf5   :  { %v3472_v5 = vsel %vm1073_vm6, %v3471_v31, %v3386_v50 }
0x2bf6   :  { %v3474_v23 = vsel %vm3468_vm7, %v3472_v5, -1e+09 }
0x2bf7   :  { %v3515_v24 = vadd.f32 %v3513_v1, %v3474_v23  ;;  %v3483_v60 = vrot.slane %v3474_v23, %v9085_v10 }
0x2bf9   :  { %v3516_v56 = vsel %vm263_vm1, %v3515_v24, -inf  ;;  %v3484_v16 = vcombine.high %v3483_v60, %v3483_v60  ;;  %v3491_v38 = vrot.slane %v3483_v60, %v9085_v10 }
0x2bfa   :  { %3517 = vmax.xlane.f32.xlu1 %v3516_v56 }
0x2bfb   :  { %v3498_v4 = vrot.slane %v3484_v16, %v9085_v10  ;;  %v3502_v42 = vrot.slane %v3491_v38, %v8905_v21 }
0x2bfd   :  { %v3506_v34 = vrot.slane %v3498_v4, %v8905_v21  ;;  %v9515_v22 = vsel %vm3475_vm8, %v3502_v42, %v9383_v53 }
0x2bff   :  { %v9518_v43 = vsel %vm3475_vm8, %v3506_v34, %v9386_v37  ;;  %vm4335_vm8 = vcmp.eq.s32.totalorder %v9133_v49, 4 }
0x2c87   :  { %v3518_v18 = vpop.xlane.xlu1 %3517 }
0x2c88   :  { %vm3519_vm9 = vcmp.ge.f32.partialorder %v3515_v24, %v3518_v18 }
0x2c89   :  { %v3520_v48 = vsel %vm3519_vm9, %v9133_v49, 8 }
0x2c8a   :  { %v3521_v51 = vsel %vm263_vm1, %v3520_v48, 2147483647 }
0x2c8b   :  { %v3523_v62 = vshra.s32 %v3521_v51, 16  ;;  %v3522_v7 = vand.u32 65535, %v3521_v51 }
0x2c8d   :  { %v3525_v25 = vcvt.s32.f32 %v3523_v62  ;;  %v3524_v19 = vcvt.s32.f32 %v3522_v7 }
0x2c8f   :  { %3526 = vmin.xlane.f32.xlu0 %v3525_v25 }
0x2d1c   :  { %v3527_v8 = vpop.xlane.xlu0 %3526 }
0x2d1d   :  { %vm3528_vm10 = vcmp.eq.f32.partialorder %v3525_v25, %v3527_v8  ;;  %v3533_v53 = vcvt.f32.s32 %v3527_v8 }
0x2d1e   :  { %v3529_v11 = vsel %vm3528_vm10, %v3524_v19, inf }
0x2d1f   :  { %3530 = vmin.xlane.f32.xlu1 %v3529_v11  ;;  %v3534_v50 = vshll.u32 %v3533_v53, 16 }
0x2d30   :  { %3951 = vrot.lane.b32.xlu1 %v3288_v44, %s8667_s8 }
0x2dac   :  { %v3531_v37 = vpop.xlane.xlu1 %3530 }
0x2dad   :  { %v3532_v15 = vcvt.f32.s32 %v3531_v37 }
0x2daf   :  { %v3535_v54 = vadd.s32 %v3534_v50, %v3532_v15 }
0x2db0   :  { %v3952_v34 = vpop.permute.xlu1 %3951 }
0x2db1   :  { %v9525_v29 = vsel %vm3536_vm12, %v3535_v54, %v9393_v45  ;;  %vm3538_vm13 = vcmp.eq.s32.totalorder %v9133_v49, %v3535_v54  ;;  %vm5073_vm12 = vcmp.eq.s32.totalorder %v8902_v20, 5 }
0x2db2   :  { %v9529_v46 = vsel %vm3538_vm13, 1.0, %v8665_v40 }
0x2db3   :  { %v3550_v31 = vrot.slane %v9529_v46, %v9085_v10 }
0x2db5   :  { %v3551_v14 = vcombine.high %v3550_v31, %v3550_v31  ;;  %v3558_v44 = vrot.slane %v3550_v31, %v9085_v10 }
0x2db7   :  { %v3565_v1 = vrot.slane %v3551_v14, %v9085_v10  ;;  %7774 = vmatmul.mubr.msk.f32.vlgmr.msra.gmra.mrb[32].mxu1 %vm1169_vm11, %v3558_v44 }
0x2db8   :  { %8177 = vmatpush3.bf16.msra.mxu1 %v8924_v35  ;;  %7789 = vmatprep.mubr.msk.f32.mxu1 %vm8664_vm3, %v8665_v40 }
0x2db9   :  { %7779 = vmatmul.mubr.msk.f32.vlgmr.msra.gmra.mrb[34].mxu0 %vm1169_vm11, %v3565_v1  ;;  %8178 = vmatprep.subr.bf16.mxu1 %v8663_v13 }
0x2dba   :  { %8183 = vmatpush3.bf16.msra.mxu0 %v8963_v57  ;;  %7800 = vmatprep.mubr.msk.f32.mxu0 %vm8664_vm3, %v8665_v40 }
0x2dbb   :  { %8184 = vmatprep.subr.bf16.mxu0 %v8663_v13 }
0x2dbc   :  { %8180 = vmatpush3.bf16.msra.mxu1 %v8930_v39 }
0x2dbd   :  { %8187 = vmatprep.subr.bf16.mxu1 %v8663_v13 }
0x2dbe   :  { %8186 = vmatpush3.bf16.msra.mxu0 %v8973_v63 }
0x2dbf   :  { %8193 = vmatprep.subr.bf16.mxu0 %v8663_v13 }
0x2e8a   :  { %v3634_v45 = vpop.f32.mrb[32].mxu1 }
0x2e8b   :  { %v7775_v5 = vpop.f32.mrb[33].mxu1 }
0x2e8c   :  { %v3706_v23 = vpop.f32.mrb[34].mxu0 }
0x2e8d   :  { %v3712_v24 = vrot.slane %v3706_v23, 7  ;;  %v7780_v60 = vpop.f32.mrb[35].mxu0 }
0x2e8f   :  { %v3713_v56 = vsel %vm1073_vm6, %v3712_v24, %v3634_v45 }
0x2e90   :  { %v9551_v16 = vadd.f32 %v3713_v56, %v9419_v41 }
0x2e92   :  { %7790 = vmatmul.mubr.msk.f32.vlgmr.msra.gmra.mrb[34].mxu1 %vm291_vm2, %v9551_v16 }
0x2e93   :  { %8189 = vmatpush3.bf16.msra.mxu1 %v8956_v47  ;;  %7811 = vmatprep.mubr.msk.f32.mxu1 %vm8664_vm3, %v8665_v40 }
0x2e94   :  { %8190 = vmatprep.subr.bf16.mxu1 %v8663_v13 }
0x2e97   :  { %8192 = vmatpush3.bf16.msra.mxu1 %v9016_v12 }
0x2e98   :  { %7825 = vmatprep.subr.mxu1 %v8665_v40 }
0x2f65   :  { %v3785_v38 = vpop.f32.mrb[34].mxu1 }
0x2f66   :  { %v3786_v4 = vadd.f32 %v3785_v38, %v8968_v58  ;;  %v7791_v42 = vpop.f32.mrb[35].mxu1 }
0x2f68   :  { %v3789_v41 = vmax.f32 %v3786_v4, 0.0 }
0x2f6a   :  { %7801 = vmatmul.mubr.msk.f32.vlgmr.msra.gmra.mrb[36].mxu0 %vm291_vm2, %v3789_v41 }
0x2f6b   :  { %8195 = vmatpush3.bf16.msra.mxu0 %v8986_v6  ;;  %7822 = vmatprep.mubr.msk.f32.mxu0 %vm8664_vm3, %v8665_v40 }
0x2f6c   :  { %8196 = vmatprep.subr.bf16.mxu0 %v8663_v13 }
0x2f6f   :  { %8198 = vmatpush3.bf16.msra.mxu0 %v8997_v9 }
0x2f70   :  { %7830 = vmatprep.subr.mxu0 %v8665_v40 }
0x2f72   :  { %7823 = vmatmul.mubr.msk.f32.vlgmr.msra.gmra.mrb[38].mxu0 %vm291_vm2, %v3952_v34 }
0x2f73   :  { %7832 = vmatprep.mubr.msk.f32.mxu0 %vm8664_vm3, %v8665_v40 }
0x2f78   :  { %7831 = vmatpush3.xpose.msk.msra.mxu0 %vm291_vm2, %v8918_v28 }
0x2f79   :  { %7840 = vmatprep.subr.mxu0 %v8665_v40 }
0x303d   :  { %v3859_v18 = vpop.f32.mrb[36].mxu0 }
0x303e   :  { %v3860_v48 = vadd.f32 %v3859_v18, %v9026_v17  ;;  %v7802_v51 = vpop.f32.mrb[37].mxu0 }
0x3040   :  { %7812 = vmatmul.mubr.msk.f32.vlgmr.msra.gmra.mrb[36].mxu1 %vm291_vm2, %v3860_v48 }
0x3041   :  { %7826 = vmatpush3.xpose.msk.msra.mxu1 %vm291_vm2, %v8921_v33  ;;  %7827 = vmatprep.mubr.msk.f32.mxu1 %vm8664_vm3, %v8665_v40 }
0x3042   :  { %7835 = vmatprep.subr.mxu1 %v8665_v40 }
0x3045   :  { %v4021_v62 = vpop.f32.mrb[38].mxu0 }
0x3046   :  { %v7824_v25 = vpop.f32.mrb[39].mxu0  ;;  %v4025_v11 = vsel %vm697_vm4, %v4021_v62, 0.0 }
0x3113   :  { %v3932_v7 = vpop.f32.mrb[36].mxu1 }
0x3114   :  { %v7813_v8 = vpop.f32.mrb[37].mxu1  ;;  %v3936_v19 = vsel %vm697_vm4, %v3932_v7, 0.0 }
0x3115   :  { %3937 = vadd.xlane.f32.xlu0 %v3936_v19 }
0x3119   :  { %4026 = vadd.xlane.f32.xlu0 %v4025_v11 }
0x31a2   :  { %v3938_v53 = vpop.xlane.xlu0 %3937 }
0x31a3   :  { %v3939_v37 = vmul.f32 0.0078125, %v3938_v53 }
0x31a5   :  { %v3940_v50 = vsub.f32 %v3932_v7, %v3939_v37 }
0x31a6   :  { %v4027_v15 = vpop.xlane.xlu0 %4026 }
0x31a7   :  { %v4028_v54 = vmul.f32 0.0078125, %v4027_v15  ;;  %v3941_v31 = vmul.f32 %v3940_v50, %v3940_v50 }
0x31a9   :  { %v4029_v14 = vsub.f32 %v4021_v62, %v4028_v54  ;;  %v3942_v44 = vsel %vm697_vm4, %v3941_v31, 0.0 }
0x31aa   :  { %3943 = vadd.xlane.f32.xlu1 %v3942_v44 }
0x31ab   :  { %v4030_v1 = vmul.f32 %v4029_v14, %v4029_v14 }
0x31ad   :  { %v4031_v45 = vsel %vm697_vm4, %v4030_v1, 0.0 }
0x31ae   :  { %4032 = vadd.xlane.f32.xlu0 %v4031_v45 }
0x3237   :  { %v3944_v5 = vpop.xlane.xlu1 %3943 }
0x3238   :  { %v3945_v23 = vmul.f32 0.0078125, %v3944_v5 }
0x323a   :  { %v3946_v24 = vadd.f32 1e-05, %v3945_v23 }
0x323b   :  { %v4033_v60 = vpop.xlane.xlu0 %4032 }
0x323c   :  { %8361 = vrsqrt.f32 %v3946_v24  ;;  %v4034_v56 = vmul.f32 0.0078125, %v4033_v60 }
0x323e   :  { %v4035_v38 = vadd.f32 1e-05, %v4034_v56 }
0x3240   :  { %8363 = vrsqrt.f32 %v4035_v38 }
0x3246   :  { %v8362_v4 = vpop.eup %8361 }
0x3247   :  { %v3948_v42 = vmul.f32 %v8362_v4, %v3940_v50 }
0x3249   :  { %v3949_v34 = vmul.f32 %v3948_v42, %v9048_v0 }
0x324a   :  { %v8364_v41 = vpop.eup %8363 }
0x324b   :  { %v4037_v18 = vmul.f32 %v8364_v41, %v4029_v14  ;;  %v3950_v51 = vadd.f32 %v3949_v34, %v9051_v2 }
0x324d   :  { %v4038_v48 = vmul.f32 %v4037_v18, %v9045_v61 }
0x324f   :  { %v4039_v62 = vadd.f32 %v4038_v48, %v9055_v3 }
0x3251   :  { %v4040_v25 = vadd.f32 %v4039_v62, %v3950_v51 }
0x3253   :  { %8365 = vtanh.f32 %v4040_v25  ;;  %v7199_v8 = vmul.f32 -1.442695, %v4040_v25 }
0x3255   :  { %8367 = vpow2.f32 %v7199_v8 }
0x325d   :  { %v8366_v7 = vpop.eup %8365 }
0x325e   :  { %4050 = vrot.lane.b32.xlu0 %v8366_v7, %s8666_s10 }
0x325f   :  { %v8368_v19 = vpop.eup %8367 }
0x3260   :  { %v4044_v11 = vadd.f32 1.0, %v8368_v19 }
0x3262   :  { %8369 = vrcp.f32 %v4044_v11 }
0x326c   :  { %v8370_v53 = vpop.eup %8369 }
0x326d   :  { %v4048_v15 = vmul.f32 %v8370_v53, %v9467_v36 }
0x32d0   :  { %v4051_v37 = vpop.permute.xlu0 %4050 }
0x32d1   :  { %v4053_v50 = vmul.f32 %v8370_v53, %v4051_v37 }
0x32d3   :  { %4055 = vrot.lane.b32.xlu0 %v4053_v50, %s8667_s8  ;;  %v3541_v50 = vsub.f32 1.0, %v9529_v46 }
0x3345   :  { %v4056_v54 = vpop.permute.xlu0 %4055 }
0x3346   :  { %v4058_v31 = vadd.f32 %v4056_v54, %v4048_v15  ;;  %v4310_v54 = vrot.slane %v9492_v27, 4 }
0x3348   :  { %4060 = vrot.lane.b32.xlu0 %v4058_v31, %s8668_s26 }
0x33ba   :  { %v4061_v14 = vpop.permute.xlu0 %4060 }
0x33bb   :  { %v4063_v44 = vsel %vm841_vm5, %v4061_v14, 0.0 }
0x33bc   :  { %4064 = vadd.xlane.f32.xlu1 %v4063_v44  ;;  %v9624_v44 = vmul.f32 %v3541_v50, %v9502_v30 }
0x33be   :  { %vm4267_vm14 = vcmp.gt.f32.partialorder %v9624_v44, 0.5 }
0x3449   :  { %v4065_v1 = vpop.xlane.xlu1 %4064 }
0x344a   :  { %v4066_v45 = vmul.f32 0.03125, %v4065_v1 }
0x344c   :  { %v4067_v5 = vsub.f32 %v4058_v31, %v4066_v45  ;;  %v4311_v31 = vrot.slane %v9498_v52, 3 }
0x344e   :  { %v4068_v23 = vmul.f32 %v4067_v5, %v4067_v5 }
0x3450   :  { %4070 = vrot.lane.b32.xlu0 %v4068_v23, %s8668_s26  ;;  %v4312_v23 = vsel %vm1073_vm6, %v4311_v31, %v4310_v54 }
0x34c2   :  { %v4071_v24 = vpop.permute.xlu0 %4070 }
0x34c3   :  { %v4073_v60 = vsel %vm841_vm5, %v4071_v24, 0.0 }
0x34c4   :  { %4074 = vadd.xlane.f32.xlu1 %v4073_v60 }
0x3551   :  { %v4075_v56 = vpop.xlane.xlu1 %4074 }
0x3552   :  { %v4076_v36 = vmul.f32 0.03125, %v4075_v56 }
0x3554   :  { %v4077_v38 = vadd.f32 1e-05, %v4076_v36 }
0x3556   :  { %8371 = vrsqrt.f32 %v4077_v38 }
0x3560   :  { %v8372_v4 = vpop.eup %8371 }
0x3561   :  { %v4079_v42 = vmul.f32 %v8372_v4, %v4067_v5 }
0x3563   :  { %v4080_v41 = vmul.f32 %v4079_v42, %v9074_v55 }
0x3565   :  { %v9599_v34 = vadd.f32 %v4080_v41, %v9076_v59 }
0x3567   :  { %8373 = vtanh.f32 %v9599_v34 }
0x3571   :  { %v8374_v18 = vpop.eup %8373 }
0x3572   :  { %4084 = vrot.lane.b32.xlu0 %v8374_v18, %s8666_s10 }
0x35e4   :  { %v4085_v48 = vpop.permute.xlu0 %4084 }
0x35e5   :  { %v4087_v51 = vmul.f32 %v8370_v53, %v4085_v48 }
0x35e7   :  { %v4095_v62 = vrot.slane %v4087_v51, %v9085_v10 }
0x35e9   :  { %v4096_v25 = vcombine.high %v4095_v62, %v4095_v62  ;;  %v4103_v7 = vrot.slane %v4095_v62, %v9085_v10 }
0x35eb   :  { %v4114_v8 = vrot.slane %v4103_v7, %v8905_v21  ;;  %v4110_v19 = vrot.slane %v4096_v25, %v9085_v10 }
0x35ed   :  { %4115 = vrot.lane.b32.xlu0 %v4114_v8, %s8667_s8  ;;  %v4192_v11 = vrot.slane %v4110_v19, %v8905_v21 }
0x35ef   :  { %4193 = vrot.lane.b32.xlu1 %v4192_v11, %s8667_s8 }
0x365f   :  { %v4116_v37 = vpop.permute.xlu0 %4115 }
0x3660   :  { %7828 = vmatmul.mubr.msk.f32.vlgmr.msra.gmra.mrb[38].mxu1 %vm291_vm2, %v4116_v37 }
0x3661   :  { %7836 = vmatpush3.msra.mxu1 %v9106_v32  ;;  %v4194_v53 = vpop.permute.xlu1 %4193  ;;  %7837 = vmatprep.mubr.msk.f32.mxu1 %vm8664_vm3, %v8665_v40 }
0x3662   :  { %7833 = vmatmul.mubr.msk.f32.vlgmr.msra.gmra.mrb[40].mxu0 %vm291_vm2, %v4194_v53  ;;  %8199 = vmatprep.subr.bf16.mxu1 %v8663_v13 }
0x3663   :  { %7841 = vmatpush3.msra.mxu0 %v9098_v26  ;;  %7842 = vmatprep.mubr.msk.f32.mxu0 %vm8664_vm3, %v8665_v40 }
0x3664   :  { %8205 = vmatprep.subr.bf16.mxu0 %v8663_v13 }
0x3733   :  { %v4185_v15 = vpop.f32.mrb[38].mxu1 }
0x3734   :  { %v7829_v14 = vpop.f32.mrb[39].mxu1 }
0x3735   :  { %v4263_v1 = vpop.f32.mrb[40].mxu0 }
0x3736   :  { %v4270_v45 = vrot.slane %v4263_v1, 7  ;;  %v7834_v5 = vpop.f32.mrb[41].mxu0 }
0x3738   :  { %v4271_v24 = vsel %vm1073_vm6, %v4270_v45, %v4185_v15 }
0x3739   :  { %v4273_v60 = vsel %vm4267_vm14, %v4271_v24, -1e+09 }
0x373a   :  { %v4314_v46 = vadd.f32 %v4312_v23, %v4273_v60  ;;  %v4282_v56 = vrot.slane %v4273_v60, %v9085_v10 }
0x373c   :  { %v4315_v36 = vsel %vm263_vm1, %v4314_v46, -inf  ;;  %v4283_v38 = vcombine.high %v4282_v56, %v4282_v56  ;;  %v4290_v4 = vrot.slane %v4282_v56, %v9085_v10 }
0x373d   :  { %4316 = vmax.xlane.f32.xlu0 %v4315_v36 }
0x373e   :  { %v4297_v30 = vrot.slane %v4283_v38, %v9085_v10  ;;  %v4301_v42 = vrot.slane %v4290_v4, %v8905_v21 }
0x3740   :  { %v4305_v41 = vrot.slane %v4297_v30, %v8905_v21  ;;  %v9637_v18 = vsel %vm4274_vm15, %v4301_v42, %v9515_v22 }
0x3742   :  { %v9640_v48 = vsel %vm4274_vm15, %v4305_v41, %v9518_v43  ;;  %vm5134_vm15 = vcmp.eq.s32.totalorder %v9133_v49, 5 }
0x37ca   :  { %v4317_v62 = vpop.xlane.xlu0 %4316 }
0x37cb   :  { %vm4318_vm0 = vcmp.ge.f32.partialorder %v4314_v46, %v4317_v62 }
0x37cc   :  { %v4319_v25 = vsel %vm4318_vm0, %v9133_v49, 8 }
0x37cd   :  { %v4320_v7 = vsel %vm263_vm1, %v4319_v25, 2147483647 }
0x37ce   :  { %v4322_v8 = vshra.s32 %v4320_v7, 16  ;;  %v4321_v11 = vand.u32 65535, %v4320_v7 }
0x37d0   :  { %v4324_v19 = vcvt.s32.f32 %v4322_v8  ;;  %v4323_v53 = vcvt.s32.f32 %v4321_v11 }
0x37d2   :  { %4325 = vmin.xlane.f32.xlu1 %v4324_v19 }
0x385f   :  { %v4326_v37 = vpop.xlane.xlu1 %4325 }
0x3860   :  { %vm4327_vm7 = vcmp.eq.f32.partialorder %v4324_v19, %v4326_v37  ;;  %v4332_v22 = vcvt.f32.s32 %v4326_v37 }
0x3861   :  { %v4328_v50 = vsel %vm4327_vm7, %v4323_v53, inf }
0x3862   :  { %4329 = vmin.xlane.f32.xlu0 %v4328_v50  ;;  %v4333_v15 = vshll.u32 %v4332_v22, 16 }
0x3878   :  { %4750 = vrot.lane.b32.xlu0 %v4087_v51, %s8667_s8 }
0x38ef   :  { %v4330_v43 = vpop.xlane.xlu0 %4329 }
0x38f0   :  { %v4331_v54 = vcvt.f32.s32 %v4330_v43 }
0x38f2   :  { %v4334_v31 = vadd.s32 %v4333_v15, %v4331_v54 }
0x38f3   :  { %v4751_v41 = vpop.permute.xlu0 %4750 }
0x38f4   :  { %v9647_v14 = vsel %vm4335_vm8, %v4334_v31, %v9525_v29  ;;  %vm4337_vm9 = vcmp.eq.s32.totalorder %v9133_v49, %v4334_v31  ;;  %vm5872_vm8 = vcmp.eq.s32.totalorder %v8902_v20, 6 }
0x38f5   :  { %v9651_v1 = vsel %vm4337_vm9, 1.0, %v8665_v40 }
0x38f6   :  { %v4349_v45 = vrot.slane %v9651_v1, %v9085_v10 }
0x38f8   :  { %v4350_v5 = vcombine.high %v4349_v45, %v4349_v45  ;;  %v4357_v51 = vrot.slane %v4349_v45, %v9085_v10 }
0x38fa   :  { %v4364_v23 = vrot.slane %v4350_v5, %v9085_v10  ;;  %7838 = vmatmul.mubr.msk.f32.vlgmr.msra.gmra.mrb[40].mxu1 %vm1169_vm11, %v4357_v51 }
0x38fb   :  { %8201 = vmatpush3.bf16.msra.mxu1 %v8924_v35  ;;  %7853 = vmatprep.mubr.msk.f32.mxu1 %vm8664_vm3, %v8665_v40 }
0x38fc   :  { %7843 = vmatmul.mubr.msk.f32.vlgmr.msra.gmra.mrb[42].mxu0 %vm1169_vm11, %v4364_v23  ;;  %8202 = vmatprep.subr.bf16.mxu1 %v8663_v13 }
0x38fd   :  { %8207 = vmatpush3.bf16.msra.mxu0 %v8963_v57  ;;  %7864 = vmatprep.mubr.msk.f32.mxu0 %vm8664_vm3, %v8665_v40 }
0x38fe   :  { %8208 = vmatprep.subr.bf16.mxu0 %v8663_v13 }
0x38ff   :  { %8204 = vmatpush3.bf16.msra.mxu1 %v8930_v39 }
0x3900   :  { %8211 = vmatprep.subr.bf16.mxu1 %v8663_v13 }
0x3901   :  { %8210 = vmatpush3.bf16.msra.mxu0 %v8973_v63 }
0x3902   :  { %8217 = vmatprep.subr.bf16.mxu0 %v8663_v13 }
0x39cd   :  { %v4433_v29 = vpop.f32.mrb[40].mxu1 }
0x39ce   :  { %v7839_v24 = vpop.f32.mrb[41].mxu1 }
0x39cf   :  { %v4505_v60 = vpop.f32.mrb[42].mxu0 }
0x39d0   :  { %v4511_v46 = vrot.slane %v4505_v60, 7  ;;  %v7844_v56 = vpop.f32.mrb[43].mxu0 }
0x39d2   :  { %v4512_v36 = vsel %vm1073_vm6, %v4511_v46, %v4433_v29 }
0x39d3   :  { %v9673_v38 = vadd.f32 %v4512_v36, %v9551_v16 }
0x39d5   :  { %7854 = vmatmul.mubr.msk.f32.vlgmr.msra.gmra.mrb[42].mxu1 %vm291_vm2, %v9673_v38 }
0x39d6   :  { %8213 = vmatpush3.bf16.msra.mxu1 %v8956_v47  ;;  %7875 = vmatprep.mubr.msk.f32.mxu1 %vm8664_vm3, %v8665_v40 }
0x39d7   :  { %8214 = vmatprep.subr.bf16.mxu1 %v8663_v13 }
0x39da   :  { %8216 = vmatpush3.bf16.msra.mxu1 %v9016_v12 }
0x39db   :  { %7889 = vmatprep.subr.mxu1 %v8665_v40 }
0x3aa8   :  { %v4584_v4 = vpop.f32.mrb[42].mxu1 }
0x3aa9   :  { %v4585_v30 = vadd.f32 %v4584_v4, %v8968_v58  ;;  %v7855_v42 = vpop.f32.mrb[43].mxu1 }
0x3aab   :  { %v4588_v16 = vmax.f32 %v4585_v30, 0.0 }
0x3aad   :  { %7865 = vmatmul.mubr.msk.f32.vlgmr.msra.gmra.mrb[44].mxu0 %vm291_vm2, %v4588_v16 }
0x3aae   :  { %8219 = vmatpush3.bf16.msra.mxu0 %v8986_v6  ;;  %7886 = vmatprep.mubr.msk.f32.mxu0 %vm8664_vm3, %v8665_v40 }
0x3aaf   :  { %8220 = vmatprep.subr.bf16.mxu0 %v8663_v13 }
0x3ab2   :  { %8222 = vmatpush3.bf16.msra.mxu0 %v8997_v9 }
0x3ab3   :  { %7894 = vmatprep.subr.mxu0 %v8665_v40 }
0x3ab5   :  { %7887 = vmatmul.mubr.msk.f32.vlgmr.msra.gmra.mrb[46].mxu0 %vm291_vm2, %v4751_v41 }
0x3ab6   :  { %7896 = vmatprep.mubr.msk.f32.mxu0 %vm8664_vm3, %v8665_v40 }
0x3abb   :  { %7895 = vmatpush3.xpose.msk.msra.mxu0 %vm291_vm2, %v8918_v28 }
0x3abc   :  { %7904 = vmatprep.subr.mxu0 %v8665_v40 }
0x3b80   :  { %v4658_v62 = vpop.f32.mrb[44].mxu0 }
0x3b81   :  { %v4659_v25 = vadd.f32 %v4658_v62, %v9026_v17  ;;  %v7866_v7 = vpop.f32.mrb[45].mxu0 }
0x3b83   :  { %7876 = vmatmul.mubr.msk.f32.vlgmr.msra.gmra.mrb[44].mxu1 %vm291_vm2, %v4659_v25 }
0x3b84   :  { %7890 = vmatpush3.xpose.msk.msra.mxu1 %vm291_vm2, %v8921_v33  ;;  %7891 = vmatprep.mubr.msk.f32.mxu1 %vm8664_vm3, %v8665_v40 }
0x3b85   :  { %7899 = vmatprep.subr.mxu1 %v8665_v40 }
0x3b88   :  { %v4820_v8 = vpop.f32.mrb[46].mxu0 }
0x3b89   :  { %v7888_v19 = vpop.f32.mrb[47].mxu0  ;;  %v4824_v50 = vsel %vm697_vm4, %v4820_v8, 0.0 }
0x3c56   :  { %v4731_v11 = vpop.f32.mrb[44].mxu1 }
0x3c57   :  { %v7877_v37 = vpop.f32.mrb[45].mxu1  ;;  %v4735_v53 = vsel %vm697_vm4, %v4731_v11, 0.0 }
0x3c58   :  { %4736 = vadd.xlane.f32.xlu1 %v4735_v53 }
0x3c5c   :  { %4825 = vadd.xlane.f32.xlu1 %v4824_v50 }
0x3ce5   :  { %v4737_v22 = vpop.xlane.xlu1 %4736 }
0x3ce6   :  { %v4738_v43 = vmul.f32 0.0078125, %v4737_v22 }
0x3ce8   :  { %v4739_v15 = vsub.f32 %v4731_v11, %v4738_v43 }
0x3ce9   :  { %v4826_v54 = vpop.xlane.xlu1 %4825 }
0x3cea   :  { %v4827_v31 = vmul.f32 0.0078125, %v4826_v54  ;;  %v4740_v45 = vmul.f32 %v4739_v15, %v4739_v15 }
0x3cec   :  { %v4828_v5 = vsub.f32 %v4820_v8, %v4827_v31  ;;  %v4741_v51 = vsel %vm697_vm4, %v4740_v45, 0.0 }
0x3ced   :  { %4742 = vadd.xlane.f32.xlu1 %v4741_v51 }
0x3cee   :  { %v4829_v23 = vmul.f32 %v4828_v5, %v4828_v5 }
0x3cf0   :  { %v4830_v29 = vsel %vm697_vm4, %v4829_v23, 0.0 }
0x3cf1   :  { %4831 = vadd.xlane.f32.xlu0 %v4830_v29 }
0x3d7a   :  { %v4743_v24 = vpop.xlane.xlu1 %4742 }
0x3d7b   :  { %v4744_v60 = vmul.f32 0.0078125, %v4743_v24 }
0x3d7d   :  { %v4745_v46 = vadd.f32 1e-05, %v4744_v60 }
0x3d7e   :  { %v4832_v56 = vpop.xlane.xlu0 %4831 }
0x3d7f   :  { %8375 = vrsqrt.f32 %v4745_v46  ;;  %v4833_v36 = vmul.f32 0.0078125, %v4832_v56 }
0x3d81   :  { %v4834_v4 = vadd.f32 1e-05, %v4833_v36 }
0x3d83   :  { %8377 = vrsqrt.f32 %v4834_v4 }
0x3d89   :  { %v8376_v30 = vpop.eup %8375 }
0x3d8a   :  { %v4747_v42 = vmul.f32 %v8376_v30, %v4739_v15 }
0x3d8c   :  { %v4748_v41 = vmul.f32 %v4747_v42, %v9048_v0 }
0x3d8d   :  { %v8378_v16 = vpop.eup %8377 }
0x3d8e   :  { %v4836_v62 = vmul.f32 %v8378_v16, %v4828_v5  ;;  %v4749_v7 = vadd.f32 %v4748_v41, %v9051_v2 }
0x3d90   :  { %v4837_v25 = vmul.f32 %v4836_v62, %v9045_v61 }
0x3d92   :  { %v4838_v8 = vadd.f32 %v4837_v25, %v9055_v3 }
0x3d94   :  { %v4839_v19 = vadd.f32 %v4838_v8, %v4749_v7 }
0x3d96   :  { %8379 = vtanh.f32 %v4839_v19  ;;  %v7211_v37 = vmul.f32 -1.442695, %v4839_v19 }
0x3d98   :  { %8381 = vpow2.f32 %v7211_v37 }
0x3da0   :  { %v8380_v11 = vpop.eup %8379 }
0x3da1   :  { %4849 = vrot.lane.b32.xlu1 %v8380_v11, %s8666_s10 }
0x3da2   :  { %v8382_v53 = vpop.eup %8381 }
0x3da3   :  { %v4843_v50 = vadd.f32 1.0, %v8382_v53 }
0x3da5   :  { %8383 = vrcp.f32 %v4843_v50 }
0x3daf   :  { %v8384_v22 = vpop.eup %8383 }
0x3db0   :  { %v4847_v54 = vmul.f32 %v8384_v22, %v9599_v34 }
0x3e13   :  { %v4850_v43 = vpop.permute.xlu1 %4849 }
0x3e14   :  { %v4852_v15 = vmul.f32 %v8384_v22, %v4850_v43 }
0x3e16   :  { %4854 = vrot.lane.b32.xlu1 %v4852_v15, %s8667_s8  ;;  %v4340_v15 = vsub.f32 1.0, %v9651_v1 }
0x3e88   :  { %v4855_v31 = vpop.permute.xlu1 %4854 }
0x3e89   :  { %v4857_v45 = vadd.f32 %v4855_v31, %v4847_v54  ;;  %v5109_v31 = vrot.slane %v9492_v27, 5 }
0x3e8b   :  { %4859 = vrot.lane.b32.xlu1 %v4857_v45, %s8668_s26 }
0x3efd   :  { %v4860_v5 = vpop.permute.xlu1 %4859 }
0x3efe   :  { %v4862_v51 = vsel %vm841_vm5, %v4860_v5, 0.0 }
0x3eff   :  { %4863 = vadd.xlane.f32.xlu1 %v4862_v51  ;;  %v9746_v51 = vmul.f32 %v4340_v15, %v9624_v44 }
0x3f01   :  { %vm5066_vm10 = vcmp.gt.f32.partialorder %v9746_v51, 0.5 }
0x3f8c   :  { %v4864_v23 = vpop.xlane.xlu1 %4863 }
0x3f8d   :  { %v4865_v29 = vmul.f32 0.03125, %v4864_v23 }
0x3f8f   :  { %v4866_v24 = vsub.f32 %v4857_v45, %v4865_v29  ;;  %v5110_v45 = vrot.slane %v9498_v52, 4 }
0x3f91   :  { %v4867_v60 = vmul.f32 %v4866_v24, %v4866_v24 }
0x3f93   :  { %4869 = vrot.lane.b32.xlu0 %v4867_v60, %s8668_s26  ;;  %v5111_v60 = vsel %vm1073_vm6, %v5110_v45, %v5109_v31 }
0x4005   :  { %v4870_v46 = vpop.permute.xlu0 %4869 }
0x4006   :  { %v4872_v56 = vsel %vm841_vm5, %v4870_v46, 0.0 }
0x4007   :  { %4873 = vadd.xlane.f32.xlu0 %v4872_v56 }
0x4094   :  { %v4874_v36 = vpop.xlane.xlu0 %4873 }
0x4095   :  { %v4875_v34 = vmul.f32 0.03125, %v4874_v36 }
0x4097   :  { %v4876_v4 = vadd.f32 1e-05, %v4875_v34 }
0x4099   :  { %8385 = vrsqrt.f32 %v4876_v4 }
0x40a3   :  { %v8386_v30 = vpop.eup %8385 }
0x40a4   :  { %v4878_v42 = vmul.f32 %v8386_v30, %v4866_v24 }
0x40a6   :  { %v4879_v16 = vmul.f32 %v4878_v42, %v9074_v55 }
0x40a8   :  { %v9721_v41 = vadd.f32 %v4879_v16, %v9076_v59 }
0x40aa   :  { %8387 = vtanh.f32 %v9721_v41 }
0x40b4   :  { %v8388_v62 = vpop.eup %8387 }
0x40b5   :  { %4883 = vrot.lane.b32.xlu1 %v8388_v62, %s8666_s10 }
0x4127   :  { %v4884_v25 = vpop.permute.xlu1 %4883 }
0x4128   :  { %v4886_v7 = vmul.f32 %v8384_v22, %v4884_v25 }
0x412a   :  { %v4894_v8 = vrot.slane %v4886_v7, %v9085_v10 }
0x412c   :  { %v4895_v19 = vcombine.high %v4894_v8, %v4894_v8  ;;  %v4902_v11 = vrot.slane %v4894_v8, %v9085_v10 }
0x412e   :  { %v4909_v37 = vrot.slane %v4895_v19, %v9085_v10  ;;  %v4913_v53 = vrot.slane %v4902_v11, %v8905_v21 }
0x4130   :  { %4914 = vrot.lane.b32.xlu0 %v4913_v53, %s8667_s8  ;;  %v4991_v50 = vrot.slane %v4909_v37, %v8905_v21 }
0x4132   :  { %4992 = vrot.lane.b32.xlu1 %v4991_v50, %s8667_s8 }
0x41a2   :  { %v4915_v43 = vpop.permute.xlu0 %4914 }
0x41a3   :  { %7892 = vmatmul.mubr.msk.f32.vlgmr.msra.gmra.mrb[46].mxu1 %vm291_vm2, %v4915_v43 }
0x41a4   :  { %7900 = vmatpush3.msra.mxu1 %v9106_v32  ;;  %v4993_v22 = vpop.permute.xlu1 %4992  ;;  %7901 = vmatprep.mubr.msk.f32.mxu1 %vm8664_vm3, %v8665_v40 }
0x41a5   :  { %7897 = vmatmul.mubr.msk.f32.vlgmr.msra.gmra.mrb[48].mxu0 %vm291_vm2, %v4993_v22  ;;  %8223 = vmatprep.subr.bf16.mxu1 %v8663_v13 }
0x41a6   :  { %7905 = vmatpush3.msra.mxu0 %v9098_v26  ;;  %7906 = vmatprep.mubr.msk.f32.mxu0 %vm8664_vm3, %v8665_v40 }
0x41a7   :  { %8229 = vmatprep.subr.bf16.mxu0 %v8663_v13 }
0x4276   :  { %v4984_v54 = vpop.f32.mrb[46].mxu1 }
0x4277   :  { %v7893_v5 = vpop.f32.mrb[47].mxu1 }
0x4278   :  { %v5062_v23 = vpop.f32.mrb[48].mxu0 }
0x4279   :  { %v5069_v29 = vrot.slane %v5062_v23, 7  ;;  %v7898_v24 = vpop.f32.mrb[49].mxu0 }
0x427b   :  { %v5070_v46 = vsel %vm1073_vm6, %v5069_v29, %v4984_v54 }
0x427c   :  { %v5072_v56 = vsel %vm5066_vm10, %v5070_v46, -1e+09 }
0x427d   :  { %v5113_v1 = vadd.f32 %v5111_v60, %v5072_v56  ;;  %v5081_v36 = vrot.slane %v5072_v56, %v9085_v10 }
0x427f   :  { %v5114_v27 = vsel %vm263_vm1, %v5113_v1, -inf  ;;  %v5082_v52 = vcombine.high %v5081_v36, %v5081_v36  ;;  %v5089_v34 = vrot.slane %v5081_v36, %v9085_v10 }
0x4280   :  { %5115 = vmax.xlane.f32.xlu1 %v5114_v27 }
0x4281   :  { %v5096_v44 = vrot.slane %v5082_v52, %v9085_v10  ;;  %v5100_v4 = vrot.slane %v5089_v34, %v8905_v21 }
0x4283   :  { %v5104_v30 = vrot.slane %v5096_v44, %v8905_v21  ;;  %v9759_v42 = vsel %vm5073_vm12, %v5100_v4, %v9637_v18 }
0x4285   :  { %v9762_v16 = vsel %vm5073_vm12, %v5104_v30, %v9640_v48  ;;  %vm5933_vm12 = vcmp.eq.s32.totalorder %v9133_v49, 6 }
0x430d   :  { %v5116_v62 = vpop.xlane.xlu1 %5115 }
0x430e   :  { %vm5117_vm13 = vcmp.ge.f32.partialorder %v5113_v1, %v5116_v62 }
0x430f   :  { %v5118_v25 = vsel %vm5117_vm13, %v9133_v49, 8 }
0x4310   :  { %v5119_v8 = vsel %vm263_vm1, %v5118_v25, 2147483647 }
0x4311   :  { %v5121_v19 = vshra.s32 %v5119_v8, 16  ;;  %v5120_v37 = vand.u32 65535, %v5119_v8 }
0x4313   :  { %v5123_v11 = vcvt.s32.f32 %v5121_v19  ;;  %v5122_v50 = vcvt.s32.f32 %v5120_v37 }
0x4315   :  { %5124 = vmin.xlane.f32.xlu0 %v5123_v11 }
0x43a2   :  { %v5125_v53 = vpop.xlane.xlu0 %5124 }
0x43a3   :  { %vm5126_vm14 = vcmp.eq.f32.partialorder %v5123_v11, %v5125_v53  ;;  %v5131_v18 = vcvt.f32.s32 %v5125_v53 }
0x43a4   :  { %v5127_v43 = vsel %vm5126_vm14, %v5122_v50, inf  ;;  %vm6671_vm14 = vcmp.eq.s32.totalorder %v8902_v20, 7 }
0x43a5   :  { %5128 = vmin.xlane.f32.xlu1 %v5127_v43  ;;  %v5132_v22 = vshll.u32 %v5131_v18, 16 }
0x43b6   :  { %5549 = vrot.lane.b32.xlu1 %v4886_v7, %s8667_s8 }
0x4432   :  { %v5129_v48 = vpop.xlane.xlu1 %5128 }
0x4433   :  { %v5130_v15 = vcvt.f32.s32 %v5129_v48 }
0x4435   :  { %v5133_v54 = vadd.s32 %v5132_v22, %v5130_v15 }
0x4436   :  { %v5550_v44 = vpop.permute.xlu1 %5549 }
0x4437   :  { %v9769_v31 = vsel %vm5134_vm15, %v5133_v54, %v9647_v14  ;;  %vm5136_vm0 = vcmp.eq.s32.totalorder %v9133_v49, %v5133_v54 }
0x4438   :  { %v9773_v45 = vsel %vm5136_vm0, 1.0, %v8665_v40 }
0x4439   :  { %v5148_v5 = vrot.slane %v9773_v45, %v9085_v10 }
0x443b   :  { %v5149_v23 = vcombine.high %v5148_v5, %v5148_v5  ;;  %v5156_v7 = vrot.slane %v5148_v5, %v9085_v10 }
0x443d   :  { %v5163_v29 = vrot.slane %v5149_v23, %v9085_v10  ;;  %7902 = vmatmul.mubr.msk.f32.vlgmr.msra.gmra.mrb[48].mxu1 %vm1169_vm11, %v5156_v7 }
0x443e   :  { %8225 = vmatpush3.bf16.msra.mxu1 %v8924_v35  ;;  %7917 = vmatprep.mubr.msk.f32.mxu1 %vm8664_vm3, %v8665_v40 }
0x443f   :  { %7907 = vmatmul.mubr.msk.f32.vlgmr.msra.gmra.mrb[50].mxu0 %vm1169_vm11, %v5163_v29  ;;  %8226 = vmatprep.subr.bf16.mxu1 %v8663_v13 }
0x4440   :  { %8231 = vmatpush3.bf16.msra.mxu0 %v8963_v57  ;;  %7928 = vmatprep.mubr.msk.f32.mxu0 %vm8664_vm3, %v8665_v40 }
0x4441   :  { %8232 = vmatprep.subr.bf16.mxu0 %v8663_v13 }
0x4442   :  { %8228 = vmatpush3.bf16.msra.mxu1 %v8930_v39 }
0x4443   :  { %8235 = vmatprep.subr.bf16.mxu1 %v8663_v13 }
0x4444   :  { %8234 = vmatpush3.bf16.msra.mxu0 %v8973_v63 }
0x4445   :  { %8241 = vmatprep.subr.bf16.mxu0 %v8663_v13 }
0x4510   :  { %v5232_v14 = vpop.f32.mrb[48].mxu1 }
0x4511   :  { %v7903_v24 = vpop.f32.mrb[49].mxu1 }
0x4512   :  { %v5304_v60 = vpop.f32.mrb[50].mxu0 }
0x4513   :  { %v5310_v46 = vrot.slane %v5304_v60, 7  ;;  %v7908_v56 = vpop.f32.mrb[51].mxu0 }
0x4515   :  { %v5311_v1 = vsel %vm1073_vm6, %v5310_v46, %v5232_v14 }
0x4516   :  { %v9795_v36 = vadd.f32 %v5311_v1, %v9673_v38 }
0x4518   :  { %7918 = vmatmul.mubr.msk.f32.vlgmr.msra.gmra.mrb[50].mxu1 %vm291_vm2, %v9795_v36 }
0x4519   :  { %8237 = vmatpush3.bf16.msra.mxu1 %v8956_v47  ;;  %7939 = vmatprep.mubr.msk.f32.mxu1 %vm8664_vm3, %v8665_v40 }
0x451a   :  { %8238 = vmatprep.subr.bf16.mxu1 %v8663_v13 }
0x451d   :  { %8240 = vmatpush3.bf16.msra.mxu1 %v9016_v12 }
0x451e   :  { %7953 = vmatprep.subr.mxu1 %v8665_v40 }
0x45eb   :  { %v5383_v27 = vpop.f32.mrb[50].mxu1 }
0x45ec   :  { %v5384_v52 = vadd.f32 %v5383_v27, %v8968_v58  ;;  %v7919_v34 = vpop.f32.mrb[51].mxu1 }
0x45ee   :  { %v5387_v38 = vmax.f32 %v5384_v52, 0.0 }
0x45f0   :  { %7929 = vmatmul.mubr.msk.f32.vlgmr.msra.gmra.mrb[52].mxu0 %vm291_vm2, %v5387_v38 }
0x45f1   :  { %8243 = vmatpush3.bf16.msra.mxu0 %v8986_v6  ;;  %7950 = vmatprep.mubr.msk.f32.mxu0 %vm8664_vm3, %v8665_v40 }
0x45f2   :  { %8244 = vmatprep.subr.bf16.mxu0 %v8663_v13 }
0x45f5   :  { %8246 = vmatpush3.bf16.msra.mxu0 %v8997_v9 }
0x45f6   :  { %7958 = vmatprep.subr.mxu0 %v8665_v40 }
0x45f8   :  { %7951 = vmatmul.mubr.msk.f32.vlgmr.msra.gmra.mrb[54].mxu0 %vm291_vm2, %v5550_v44 }
0x45f9   :  { %7960 = vmatprep.mubr.msk.f32.mxu0 %vm8664_vm3, %v8665_v40 }
0x45fe   :  { %7959 = vmatpush3.xpose.msk.msra.mxu0 %vm291_vm2, %v8918_v28 }
0x45ff   :  { %7968 = vmatprep.subr.mxu0 %v8665_v40 }
0x46c3   :  { %v5457_v4 = vpop.f32.mrb[52].mxu0 }
0x46c4   :  { %v5458_v30 = vadd.f32 %v5457_v4, %v9026_v17  ;;  %v7930_v62 = vpop.f32.mrb[53].mxu0 }
0x46c6   :  { %7940 = vmatmul.mubr.msk.f32.vlgmr.msra.gmra.mrb[52].mxu1 %vm291_vm2, %v5458_v30 }
0x46c7   :  { %7954 = vmatpush3.xpose.msk.msra.mxu1 %vm291_vm2, %v8921_v33  ;;  %7955 = vmatprep.mubr.msk.f32.mxu1 %vm8664_vm3, %v8665_v40 }
0x46c8   :  { %7963 = vmatprep.subr.mxu1 %v8665_v40 }
0x46cb   :  { %v5619_v25 = vpop.f32.mrb[54].mxu0 }
0x46cc   :  { %v7952_v8 = vpop.f32.mrb[55].mxu0  ;;  %v5623_v53 = vsel %vm697_vm4, %v5619_v25, 0.0 }
0x4799   :  { %v5530_v19 = vpop.f32.mrb[52].mxu1 }
0x479a   :  { %v7941_v11 = vpop.f32.mrb[53].mxu1  ;;  %v5534_v37 = vsel %vm697_vm4, %v5530_v19, 0.0 }
0x479b   :  { %5535 = vadd.xlane.f32.xlu0 %v5534_v37 }
0x479f   :  { %5624 = vadd.xlane.f32.xlu0 %v5623_v53 }
0x4828   :  { %v5536_v50 = vpop.xlane.xlu0 %5535 }
0x4829   :  { %v5537_v43 = vmul.f32 0.0078125, %v5536_v50 }
0x482b   :  { %v5538_v18 = vsub.f32 %v5530_v19, %v5537_v43 }
0x482c   :  { %v5625_v48 = vpop.xlane.xlu0 %5624 }
0x482d   :  { %v5626_v22 = vmul.f32 0.0078125, %v5625_v48  ;;  %v5539_v15 = vmul.f32 %v5538_v18, %v5538_v18 }
0x482f   :  { %v5627_v54 = vsub.f32 %v5619_v25, %v5626_v22  ;;  %v5540_v5 = vsel %vm697_vm4, %v5539_v15, 0.0 }
0x4830   :  { %5541 = vadd.xlane.f32.xlu1 %v5540_v5 }
0x4831   :  { %v5628_v23 = vmul.f32 %v5627_v54, %v5627_v54 }
0x4833   :  { %v5629_v7 = vsel %vm697_vm4, %v5628_v23, 0.0 }
0x4834   :  { %5630 = vadd.xlane.f32.xlu0 %v5629_v7 }
0x48bd   :  { %v5542_v29 = vpop.xlane.xlu1 %5541 }
0x48be   :  { %v5543_v14 = vmul.f32 0.0078125, %v5542_v29 }
0x48c0   :  { %v5544_v24 = vadd.f32 1e-05, %v5543_v14 }
0x48c1   :  { %v5631_v60 = vpop.xlane.xlu0 %5630 }
0x48c2   :  { %8389 = vrsqrt.f32 %v5544_v24  ;;  %v5632_v46 = vmul.f32 0.0078125, %v5631_v60 }
0x48c4   :  { %v5633_v56 = vadd.f32 1e-05, %v5632_v46 }
0x48c6   :  { %8391 = vrsqrt.f32 %v5633_v56 }
0x48cc   :  { %v8390_v1 = vpop.eup %8389 }
0x48cd   :  { %v5546_v27 = vmul.f32 %v8390_v1, %v5538_v18 }
0x48cf   :  { %v5547_v34 = vmul.f32 %v5546_v27, %v9048_v0 }
0x48d0   :  { %v8392_v52 = vpop.eup %8391 }
0x48d1   :  { %v5635_v38 = vmul.f32 %v8392_v52, %v5627_v54  ;;  %v5548_v4 = vadd.f32 %v5547_v34, %v9051_v2 }
0x48d3   :  { %v5636_v44 = vmul.f32 %v5635_v38, %v9045_v61 }
0x48d5   :  { %v5637_v30 = vadd.f32 %v5636_v44, %v9055_v3 }
0x48d7   :  { %v5638_v62 = vadd.f32 %v5637_v30, %v5548_v4 }
0x48d9   :  { %8393 = vtanh.f32 %v5638_v62  ;;  %v7223_v8 = vmul.f32 -1.442695, %v5638_v62 }
0x48db   :  { %8395 = vpow2.f32 %v7223_v8 }
0x48e3   :  { %v8394_v25 = vpop.eup %8393 }
0x48e4   :  { %5648 = vrot.lane.b32.xlu0 %v8394_v25, %s8666_s10 }
0x48e5   :  { %v8396_v19 = vpop.eup %8395 }
0x48e6   :  { %v5642_v11 = vadd.f32 1.0, %v8396_v19 }
0x48e8   :  { %8397 = vrcp.f32 %v5642_v11 }
0x48f2   :  { %v8398_v37 = vpop.eup %8397 }
0x48f3   :  { %v5646_v43 = vmul.f32 %v8398_v37, %v9721_v41 }
0x4956   :  { %v5649_v53 = vpop.permute.xlu0 %5648 }
0x4957   :  { %v5651_v50 = vmul.f32 %v8398_v37, %v5649_v53 }
0x4959   :  { %5653 = vrot.lane.b32.xlu0 %v5651_v50, %s8667_s8  ;;  %v9868_v50 = vld [vmem:[%s10135_s3] sm:$0xff] }
0x49cb   :  { %v5654_v18 = vpop.permute.xlu0 %5653 }
0x49cc   :  { %v5656_v48 = vadd.f32 %v5654_v18, %v5646_v43  ;;  %v5908_v43 = vrot.slane %v9868_v50, 6  ;;  %v9874_v18 = vld [vmem:[%s10135_s3 + $0x8] sm:$0xff] }
0x49ce   :  { %5658 = vrot.lane.b32.xlu0 %v5656_v48, %s8668_s26 }
0x4a40   :  { %v5659_v22 = vpop.permute.xlu0 %5658 }
0x4a41   :  { %v5661_v15 = vsel %vm841_vm5, %v5659_v22, 0.0 }
0x4a42   :  { %5662 = vadd.xlane.f32.xlu1 %v5661_v15 }
0x4acf   :  { %v5663_v54 = vpop.xlane.xlu1 %5662 }
0x4ad0   :  { %v5664_v5 = vmul.f32 0.03125, %v5663_v54 }
0x4ad2   :  { %v5665_v23 = vsub.f32 %v5656_v48, %v5664_v5  ;;  %v5909_v48 = vrot.slane %v9874_v18, 5 }
0x4ad4   :  { %v5666_v7 = vmul.f32 %v5665_v23, %v5665_v23 }
0x4ad6   :  { %5668 = vrot.lane.b32.xlu0 %v5666_v7, %s8668_s26 }
0x4b48   :  { %v5669_v29 = vpop.permute.xlu0 %5668 }
0x4b49   :  { %v5671_v14 = vsel %vm841_vm5, %v5669_v29, 0.0 }
0x4b4a   :  { %5672 = vadd.xlane.f32.xlu1 %v5671_v14 }
0x4bd7   :  { %v5673_v24 = vpop.xlane.xlu1 %5672 }
0x4bd8   :  { %v5674_v41 = vmul.f32 0.03125, %v5673_v24 }
0x4bda   :  { %v5675_v60 = vadd.f32 1e-05, %v5674_v41 }
0x4bdc   :  { %8399 = vrsqrt.f32 %v5675_v60 }
0x4be6   :  { %v8400_v46 = vpop.eup %8399 }
0x4be7   :  { %v5677_v56 = vmul.f32 %v8400_v46, %v5665_v23  ;;  %v5910_v23 = vsel %vm1073_vm6, %v5909_v48, %v5908_v43 }
0x4be9   :  { %v5678_v1 = vmul.f32 %v5677_v56, %v9074_v55 }
0x4beb   :  { %v9843_v27 = vadd.f32 %v5678_v1, %v9076_v59 }
0x4bed   :  { %8401 = vtanh.f32 %v9843_v27 }
0x4bf7   :  { %v8402_v52 = vpop.eup %8401 }
0x4bf8   :  { %5682 = vrot.lane.b32.xlu0 %v8402_v52, %s8666_s10 }
0x4c6a   :  { %v5683_v34 = vpop.permute.xlu0 %5682 }
0x4c6b   :  { %v5685_v38 = vmul.f32 %v8398_v37, %v5683_v34  ;;  %v5139_v37 = vsub.f32 1.0, %v9773_v45 }
0x4c6d   :  { %v5693_v44 = vrot.slane %v5685_v38, %v9085_v10  ;;  %v9878_v15 = vmul.f32 %v5139_v37, %v9746_v51 }
0x4c6f   :  { %v5694_v4 = vcombine.high %v5693_v44, %v5693_v44  ;;  %v5701_v30 = vrot.slane %v5693_v44, %v9085_v10  ;;  %vm5865_vm7 = vcmp.gt.f32.partialorder %v9878_v15, 0.5 }
0x4c71   :  { %v5708_v62 = vrot.slane %v5694_v4, %v9085_v10  ;;  %v5712_v25 = vrot.slane %v5701_v30, %v8905_v21 }
0x4c73   :  { %5713 = vrot.lane.b32.xlu0 %v5712_v25, %s8667_s8  ;;  %v5790_v8 = vrot.slane %v5708_v62, %v8905_v21 }
0x4c75   :  { %5791 = vrot.lane.b32.xlu1 %v5790_v8, %s8667_s8 }
0x4ce5   :  { %v5714_v19 = vpop.permute.xlu0 %5713 }
0x4ce6   :  { %7956 = vmatmul.mubr.msk.f32.vlgmr.msra.gmra.mrb[54].mxu1 %vm291_vm2, %v5714_v19 }
0x4ce7   :  { %7964 = vmatpush3.msra.mxu1 %v9106_v32  ;;  %v5792_v11 = vpop.permute.xlu1 %5791  ;;  %7965 = vmatprep.mubr.msk.f32.mxu1 %vm8664_vm3, %v8665_v40 }
0x4ce8   :  { %7961 = vmatmul.mubr.msk.f32.vlgmr.msra.gmra.mrb[56].mxu0 %vm291_vm2, %v5792_v11  ;;  %8247 = vmatprep.subr.bf16.mxu1 %v8663_v13 }
0x4ce9   :  { %7969 = vmatpush3.msra.mxu0 %v9098_v26  ;;  %7970 = vmatprep.mubr.msk.f32.mxu0 %vm8664_vm3, %v8665_v40 }
0x4cea   :  { %8253 = vmatprep.subr.bf16.mxu0 %v8663_v13 }
0x4db9   :  { %v5783_v53 = vpop.f32.mrb[54].mxu1 }
0x4dba   :  { %v7957_v22 = vpop.f32.mrb[55].mxu1 }
0x4dbb   :  { %v5861_v45 = vpop.f32.mrb[56].mxu0 }
0x4dbc   :  { %v5868_v54 = vrot.slane %v5861_v45, 7  ;;  %v7962_v5 = vpop.f32.mrb[57].mxu0 }
0x4dbe   :  { %v5869_v7 = vsel %vm1073_vm6, %v5868_v54, %v5783_v53 }
0x4dbf   :  { %v5871_v29 = vsel %vm5865_vm7, %v5869_v7, -1e+09  ;;  %vm6732_vm7 = vcmp.eq.s32.totalorder %v9133_v49, 7 }
0x4dc0   :  { %v5912_v14 = vadd.f32 %v5910_v23, %v5871_v29  ;;  %v5880_v24 = vrot.slane %v5871_v29, %v9085_v10 }
0x4dc2   :  { %v5913_v41 = vsel %vm263_vm1, %v5912_v14, -inf  ;;  %v5881_v60 = vcombine.high %v5880_v24, %v5880_v24  ;;  %v5888_v46 = vrot.slane %v5880_v24, %v9085_v10 }
0x4dc3   :  { %5914 = vmax.xlane.f32.xlu0 %v5913_v41 }
0x4dc4   :  { %v5895_v51 = vrot.slane %v5881_v60, %v9085_v10  ;;  %v5899_v56 = vrot.slane %v5888_v46, %v8905_v21 }
0x4dc6   :  { %v5903_v1 = vrot.slane %v5895_v51, %v8905_v21  ;;  %v9891_v52 = vsel %vm5872_vm8, %v5899_v56, %v9759_v42 }
0x4dc8   :  { %v9894_v34 = vsel %vm5872_vm8, %v5903_v1, %v9762_v16 }
0x4e50   :  { %v5915_v44 = vpop.xlane.xlu0 %5914 }
0x4e51   :  { %vm5916_vm9 = vcmp.ge.f32.partialorder %v5912_v14, %v5915_v44 }
0x4e52   :  { %v5917_v4 = vsel %vm5916_vm9, %v9133_v49, 8 }
0x4e53   :  { %v5918_v30 = vsel %vm263_vm1, %v5917_v4, 2147483647 }
0x4e54   :  { %v5920_v62 = vshra.s32 %v5918_v30, 16  ;;  %v5919_v8 = vand.u32 65535, %v5918_v30 }
0x4e56   :  { %v5922_v25 = vcvt.s32.f32 %v5920_v62  ;;  %v5921_v11 = vcvt.s32.f32 %v5919_v8 }
0x4e58   :  { %5923 = vmin.xlane.f32.xlu1 %v5922_v25 }
0x4ee5   :  { %v5924_v19 = vpop.xlane.xlu1 %5923 }
0x4ee6   :  { %vm5925_vm10 = vcmp.eq.f32.partialorder %v5922_v25, %v5924_v19  ;;  %v5930_v42 = vcvt.f32.s32 %v5924_v19 }
0x4ee7   :  { %v5926_v37 = vsel %vm5925_vm10, %v5921_v11, inf }
0x4ee8   :  { %5927 = vmin.xlane.f32.xlu0 %v5926_v37  ;;  %v5931_v53 = vshll.u32 %v5930_v42, 16 }
0x4efe   :  { %6348 = vrot.lane.b32.xlu0 %v5685_v38, %s8667_s8 }
0x4f75   :  { %v5928_v16 = vpop.xlane.xlu0 %5927 }
0x4f76   :  { %v5929_v43 = vcvt.f32.s32 %v5928_v16 }
0x4f78   :  { %v5932_v48 = vadd.s32 %v5931_v53, %v5929_v43 }
0x4f7a   :  { %vm5935_vm13 = vcmp.eq.s32.totalorder %v9133_v49, %v5932_v48  ;;  %v9902_v22 = vsel %vm5933_vm12, %v5932_v48, %v9769_v31 }
0x4f7b   :  { %v9905_v45 = vsel %vm5935_vm13, 1.0, %v8665_v40 }
0x4f7c   :  { %v5947_v54 = vrot.slane %v9905_v45, %v9085_v10 }
0x4f7e   :  { %v5948_v5 = vcombine.high %v5947_v54, %v5947_v54  ;;  %v5955_v38 = vrot.slane %v5947_v54, %v9085_v10 }
0x4f80   :  { %v5962_v23 = vrot.slane %v5948_v5, %v9085_v10  ;;  %7966 = vmatmul.mubr.msk.f32.vlgmr.msra.gmra.mrb[56].mxu1 %vm1169_vm11, %v5955_v38 }
0x4f81   :  { %8249 = vmatpush3.bf16.msra.mxu1 %v8924_v35  ;;  %7981 = vmatprep.mubr.msk.f32.mxu1 %vm8664_vm3, %v8665_v40 }
0x4f82   :  { %7971 = vmatmul.mubr.msk.f32.vlgmr.msra.gmra.mrb[58].mxu0 %vm1169_vm11, %v5962_v23  ;;  %8250 = vmatprep.subr.bf16.mxu1 %v8663_v13 }
0x4f83   :  { %8255 = vmatpush3.bf16.msra.mxu0 %v8963_v57  ;;  %7992 = vmatprep.mubr.msk.f32.mxu0 %vm8664_vm3, %v8665_v40 }
0x4f84   :  { %8256 = vmatprep.subr.bf16.mxu0 %v8663_v13 }
0x4f85   :  { %8252 = vmatpush3.bf16.msra.mxu1 %v8930_v39 }
0x4f86   :  { %8259 = vmatprep.subr.bf16.mxu1 %v8663_v13 }
0x4f87   :  { %8258 = vmatpush3.bf16.msra.mxu0 %v8973_v63 }
0x4f88   :  { %8265 = vmatprep.subr.bf16.mxu0 %v8663_v13 }
0x5053   :  { %v6031_v35 = vpop.f32.mrb[56].mxu1 }
0x5054   :  { %v7967_v31 = vpop.f32.mrb[57].mxu1 }
0x5055   :  { %v6103_v7 = vpop.f32.mrb[58].mxu0 }
0x5056   :  { %v6109_v29 = vrot.slane %v6103_v7, 7  ;;  %v7972_v14 = vpop.f32.mrb[59].mxu0 }
0x5058   :  { %v6110_v57 = vsel %vm1073_vm6, %v6109_v29, %v6031_v35 }
0x5059   :  { %v9927_v24 = vadd.f32 %v6110_v57, %v9795_v36 }
0x505b   :  { %7982 = vmatmul.mubr.msk.f32.vlgmr.msra.gmra.mrb[58].mxu1 %vm291_vm2, %v9927_v24 }
0x505c   :  { %8261 = vmatpush3.bf16.msra.mxu1 %v8956_v47  ;;  %8003 = vmatprep.mubr.msk.f32.mxu1 %vm8664_vm3, %v8665_v40  ;;  %v6349_v47 = vpop.permute.xlu0 %6348 }
0x505d   :  { %8262 = vmatprep.subr.bf16.mxu1 %v8663_v13 }
0x5060   :  { %8264 = vmatpush3.bf16.msra.mxu1 %v9016_v12 }
0x5061   :  { %8017 = vmatprep.subr.mxu1 %v8665_v40 }
0x512e   :  { %v6182_v39 = vpop.f32.mrb[58].mxu1 }
0x512f   :  { %v6183_v63 = vadd.f32 %v6182_v39, %v8968_v58  ;;  %v7983_v41 = vpop.f32.mrb[59].mxu1 }
0x5131   :  { %v6186_v36 = vmax.f32 %v6183_v63, 0.0 }
0x5133   :  { %7993 = vmatmul.mubr.msk.f32.vlgmr.msra.gmra.mrb[60].mxu0 %vm291_vm2, %v6186_v36 }
0x5134   :  { %8267 = vmatpush3.bf16.msra.mxu0 %v8986_v6  ;;  %8014 = vmatprep.mubr.msk.f32.mxu0 %vm8664_vm3, %v8665_v40 }
0x5135   :  { %8268 = vmatprep.subr.bf16.mxu0 %v8663_v13 }
0x5138   :  { %8270 = vmatpush3.bf16.msra.mxu0 %v8997_v9 }
0x5139   :  { %8022 = vmatprep.subr.mxu0 %v8665_v40 }
0x513b   :  { %8015 = vmatmul.mubr.msk.f32.vlgmr.msra.gmra.mrb[62].mxu0 %vm291_vm2, %v6349_v47 }
0x513c   :  { %8024 = vmatprep.mubr.msk.f32.mxu0 %vm8664_vm3, %v8665_v40 }
0x5141   :  { %8023 = vmatpush3.xpose.msk.msra.mxu0 %vm291_vm2, %v8918_v28 }
0x5142   :  { %8032 = vmatprep.subr.mxu0 %v8665_v40 }
0x5206   :  { %v6256_v58 = vpop.f32.mrb[60].mxu0 }
0x5207   :  { %v6257_v6 = vadd.f32 %v6256_v58, %v9026_v17  ;;  %v7994_v12 = vpop.f32.mrb[61].mxu0 }
0x5209   :  { %8004 = vmatmul.mubr.msk.f32.vlgmr.msra.gmra.mrb[60].mxu1 %vm291_vm2, %v6257_v6 }
0x520a   :  { %8018 = vmatpush3.xpose.msk.msra.mxu1 %vm291_vm2, %v8921_v33  ;;  %8019 = vmatprep.mubr.msk.f32.mxu1 %vm8664_vm3, %v8665_v40 }
0x520b   :  { %8027 = vmatprep.subr.mxu1 %v8665_v40 }
0x520e   :  { %v6418_v9 = vpop.f32.mrb[62].mxu0 }
0x520f   :  { %v8016_v60 = vpop.f32.mrb[63].mxu0  ;;  %v6422_v17 = vsel %vm697_vm4, %v6418_v9, 0.0 }
0x52dc   :  { %v6329_v46 = vpop.f32.mrb[60].mxu1 }
0x52dd   :  { %v8005_v28 = vpop.f32.mrb[61].mxu1  ;;  %v6333_v51 = vsel %vm697_vm4, %v6329_v46, 0.0 }
0x52de   :  { %6334 = vadd.xlane.f32.xlu1 %v6333_v51 }
0x52e2   :  { %6423 = vadd.xlane.f32.xlu1 %v6422_v17 }
0x536b   :  { %v6335_v56 = vpop.xlane.xlu1 %6334 }
0x536c   :  { %v6336_v1 = vmul.f32 0.0078125, %v6335_v56 }
0x536e   :  { %v6337_v44 = vsub.f32 %v6329_v46, %v6336_v1 }
0x536f   :  { %v6424_v4 = vpop.xlane.xlu1 %6423 }
0x5370   :  { %v6425_v33 = vmul.f32 0.0078125, %v6424_v4  ;;  %v6338_v30 = vmul.f32 %v6337_v44, %v6337_v44 }
0x5372   :  { %v6426_v62 = vsub.f32 %v6418_v9, %v6425_v33  ;;  %v6339_v25 = vsel %vm697_vm4, %v6338_v30, 0.0 }
0x5373   :  { %6340 = vadd.xlane.f32.xlu1 %v6339_v25 }
0x5374   :  { %v6427_v8 = vmul.f32 %v6426_v62, %v6426_v62 }
0x5376   :  { %v6428_v19 = vsel %vm697_vm4, %v6427_v8, 0.0 }
0x5377   :  { %6429 = vadd.xlane.f32.xlu0 %v6428_v19 }
0x5400   :  { %v6341_v11 = vpop.xlane.xlu1 %6340 }
0x5401   :  { %v6342_v37 = vmul.f32 0.0078125, %v6341_v11 }
0x5403   :  { %v6343_v42 = vadd.f32 1e-05, %v6342_v37 }
0x5404   :  { %v6430_v16 = vpop.xlane.xlu0 %6429 }
0x5405   :  { %8403 = vrsqrt.f32 %v6343_v42  ;;  %v6431_v53 = vmul.f32 0.0078125, %v6430_v16  ;;  %v5938_v16 = vsub.f32 1.0, %v9905_v45 }
0x5407   :  { %v6432_v43 = vadd.f32 1e-05, %v6431_v53 }
0x5409   :  { %8405 = vrsqrt.f32 %v6432_v43  ;;  %v6708_v43 = vrot.slane %v9874_v18, 6 }
0x540f   :  { %v8404_v48 = vpop.eup %8403 }
0x5410   :  { %v6345_v54 = vmul.f32 %v8404_v48, %v6337_v44 }
0x5412   :  { %v6346_v38 = vmul.f32 %v6345_v54, %v9048_v0  ;;  %v5939_v54 = vmul.f32 %v5938_v16, %v9878_v15 }
0x5413   :  { %v8406_v5 = vpop.eup %8405 }
0x5414   :  { %v6434_v23 = vmul.f32 %v8406_v5, %v6426_v62  ;;  %v6347_v31 = vadd.f32 %v6346_v38, %v9051_v2  ;;  %vm6664_vm4 = vcmp.gt.f32.partialorder %v5939_v54, 0.5 }
0x5416   :  { %v6435_v35 = vmul.f32 %v6434_v23, %v9045_v61 }
0x5418   :  { %v6436_v7 = vadd.f32 %v6435_v35, %v9055_v3 }
0x541a   :  { %v6437_v29 = vadd.f32 %v6436_v7, %v6347_v31 }
0x541c   :  { %8407 = vtanh.f32 %v6437_v29  ;;  %v7235_v57 = vmul.f32 -1.442695, %v6437_v29 }
0x541e   :  { %8409 = vpow2.f32 %v7235_v57 }
0x5426   :  { %v8408_v14 = vpop.eup %8407 }
0x5427   :  { %6447 = vrot.lane.b32.xlu1 %v8408_v14, %s8666_s10 }
0x5428   :  { %v8410_v39 = vpop.eup %8409 }
0x5429   :  { %v6441_v63 = vadd.f32 1.0, %v8410_v39 }
0x542b   :  { %8411 = vrcp.f32 %v6441_v63 }
0x5435   :  { %v8412_v41 = vpop.eup %8411 }
0x5436   :  { %v6445_v61 = vmul.f32 %v8412_v41, %v9843_v27 }
0x5499   :  { %v6448_v36 = vpop.permute.xlu1 %6447 }
0x549a   :  { %v6450_v0 = vmul.f32 %v8412_v41, %v6448_v36 }
0x549c   :  { %6452 = vrot.lane.b32.xlu1 %v6450_v0, %s8667_s8 }
0x550e   :  { %v6453_v2 = vpop.permute.xlu1 %6452 }
0x550f   :  { %v6455_v47 = vadd.f32 %v6453_v2, %v6445_v61 }
0x5511   :  { %6457 = vrot.lane.b32.xlu1 %v6455_v47, %s8668_s26 }
0x5583   :  { %v6458_v3 = vpop.permute.xlu1 %6457 }
0x5584   :  { %v6460_v58 = vsel %vm841_vm5, %v6458_v3, 0.0 }
0x5585   :  { %6461 = vadd.xlane.f32.xlu1 %v6460_v58 }
0x5612   :  { %v6462_v6 = vpop.xlane.xlu1 %6461 }
0x5613   :  { %v6463_v12 = vmul.f32 0.03125, %v6462_v6 }
0x5615   :  { %v6464_v9 = vsub.f32 %v6455_v47, %v6463_v12 }
0x5617   :  { %v6465_v60 = vmul.f32 %v6464_v9, %v6464_v9 }
0x5619   :  { %6467 = vrot.lane.b32.xlu0 %v6465_v60, %s8668_s26 }
0x568b   :  { %v6468_v46 = vpop.permute.xlu0 %6467 }
0x568c   :  { %v6470_v28 = vsel %vm841_vm5, %v6468_v46, 0.0 }
0x568d   :  { %6471 = vadd.xlane.f32.xlu0 %v6470_v28 }
0x571a   :  { %v6472_v51 = vpop.xlane.xlu0 %6471 }
0x571b   :  { %v6473_v27 = vmul.f32 0.03125, %v6472_v51 }
0x571d   :  { %v6474_v17 = vadd.f32 1e-05, %v6473_v27 }
0x571f   :  { %8413 = vrsqrt.f32 %v6474_v17 }
0x5729   :  { %v8414_v56 = vpop.eup %8413 }
0x572a   :  { %v6476_v1 = vmul.f32 %v8414_v56, %v6464_v9 }
0x572c   :  { %v6477_v44 = vmul.f32 %v6476_v1, %v9074_v55  ;;  %v6916_v1 = vld [vmem:[#allocation13 + $0x10] sm:$0xff] }
0x572e   :  { %v6478_v4 = vadd.f32 %v6477_v44, %v9076_v59  ;;  %v6917_v44 = vld [vmem:[#allocation13 + $0x18] sm:$0xff] }
0x5730   :  { %8415 = vtanh.f32 %v6478_v4  ;;  %v8275_v4 = vpack.c.bf16 %v6917_v44, %v6916_v1 }
0x573a   :  { %v8416_v33 = vpop.eup %8415 }
0x573b   :  { %6481 = vrot.lane.b32.xlu1 %v8416_v33, %s8666_s10  ;;  %v6997_v33 = vld [vmem:[%s10110_s13 + $0x8] sm:$0xff] }
0x57ad   :  { %v6482_v30 = vpop.permute.xlu1 %6481 }
0x57ae   :  { %v6484_v62 = vmul.f32 %v8412_v41, %v6482_v30 }
0x57b0   :  { %v6492_v25 = vrot.slane %v6484_v62, %v9085_v10 }
0x57b2   :  { %v6493_v8 = vcombine.high %v6492_v25, %v6492_v25  ;;  %v6500_v19 = vrot.slane %v6492_v25, %v9085_v10 }
0x57b4   :  { %v6507_v11 = vrot.slane %v6493_v8, %v9085_v10  ;;  %v6511_v37 = vrot.slane %v6500_v19, %v8905_v21 }
0x57b6   :  { %6512 = vrot.lane.b32.xlu0 %v6511_v37, %s8667_s8  ;;  %v6589_v55 = vrot.slane %v6507_v11, %v8905_v21 }
0x57b8   :  { %6590 = vrot.lane.b32.xlu1 %v6589_v55, %s8667_s8  ;;  %v6998_v55 = vld [vmem:[%s10110_s13 + $0x10] sm:$0xff] }
0x5828   :  { %v6513_v59 = vpop.permute.xlu0 %6512 }
0x5829   :  { %8020 = vmatmul.mubr.msk.f32.vlgmr.msra.gmra.mrb[62].mxu1 %vm291_vm2, %v6513_v59 }
0x582a   :  { %8028 = vmatpush3.msra.mxu1 %v9106_v32  ;;  %v6591_v42 = vpop.permute.xlu1 %6590  ;;  %8029 = vmatprep.mubr.msk.f32.mxu1 %vm8664_vm3, %v8665_v40  ;;  %v6707_v32 = vrot.slane %v9868_v50, 7 }
0x582b   :  { %8025 = vmatmul.mubr.msk.f32.vlgmr.msra.gmra.mrb[64].mxu0 %vm291_vm2, %v6591_v42  ;;  %8271 = vmatprep.subr.bf16.mxu1 %v8663_v13  ;;  %v6920_v42 = vsub.s32 5, %v8902_v20 }
0x582c   :  { %8033 = vmatpush3.msra.mxu0 %v9098_v26  ;;  %8034 = vmatprep.mubr.msk.f32.mxu0 %vm8664_vm3, %v8665_v40  ;;  %v6709_v26 = vsel %vm1073_vm6, %v6708_v43, %v6707_v32 }
0x582d   :  { %8277 = vmatprep.subr.bf16.mxu0 %v8663_v13 }
0x58fc   :  { %v6582_v53 = vpop.f32.mrb[62].mxu1 }
0x58fd   :  { %v8021_v48 = vpop.f32.mrb[63].mxu1 }
0x58fe   :  { %v6660_v5 = vpop.f32.mrb[64].mxu0 }
0x58ff   :  { %v6667_v38 = vrot.slane %v6660_v5, 7  ;;  %v8026_v23 = vpop.f32.mrb[65].mxu0 }
0x5901   :  { %v6668_v35 = vsel %vm1073_vm6, %v6667_v38, %v6582_v53 }
0x5902   :  { %v6670_v31 = vsel %vm6664_vm4, %v6668_v35, -1e+09 }
0x5903   :  { %v6711_v7 = vadd.f32 %v6709_v26, %v6670_v31  ;;  %v6679_v45 = vrot.slane %v6670_v31, %v9085_v10 }
0x5905   :  { %v6712_v29 = vsel %vm263_vm1, %v6711_v7, -inf  ;;  %v6680_v50 = vcombine.high %v6679_v45, %v6679_v45  ;;  %v6687_v18 = vrot.slane %v6679_v45, %v9085_v10 }
0x5906   :  { %6713 = vmax.xlane.f32.xlu1 %v6712_v29 }
0x5907   :  { %v6694_v15 = vrot.slane %v6680_v50, %v9085_v10  ;;  %v6698_v14 = vrot.slane %v6687_v18, %v8905_v21 }
0x5909   :  { %v6702_v57 = vrot.slane %v6694_v15, %v8905_v21  ;;  %v6705_v39 = vsel %vm6671_vm14, %v6698_v14, %v9891_v52 }
0x590a   :  { %6910 = vst.msk [vmem:[#allocation14] sm:$0xff] %vm1169_vm11, %v6705_v39 }
0x590b   :  { %v6706_v63 = vsel %vm6671_vm14, %v6702_v57, %v9894_v34 }
0x590c   :  { %6911 = vst.msk [vmem:[#allocation14 + $0x8] sm:$0xff] %vm1169_vm11, %v6706_v63 }
0x5993   :  { %v6714_v41 = vpop.xlane.xlu1 %6713 }
0x5994   :  { %vm6715_vm15 = vcmp.ge.f32.partialorder %v6711_v7, %v6714_v41 }
0x5995   :  { %v6716_v36 = vsel %vm6715_vm15, %v9133_v49, 8 }
0x5996   :  { %v6717_v0 = vsel %vm263_vm1, %v6716_v36, 2147483647 }
0x5997   :  { %v6719_v61 = vshra.s32 %v6717_v0, 16  ;;  %v6718_v47 = vand.u32 65535, %v6717_v0 }
0x5999   :  { %v6721_v2 = vcvt.s32.f32 %v6719_v61  ;;  %v6720_v21 = vcvt.s32.f32 %v6718_v47 }
0x599b   :  { %6722 = vmin.xlane.f32.xlu0 %v6721_v2 }
0x5a28   :  { %v6723_v3 = vpop.xlane.xlu0 %6722 }
0x5a29   :  { %vm6724_vm0 = vcmp.eq.f32.partialorder %v6721_v2, %v6723_v3  ;;  %v6729_v58 = vcvt.f32.s32 %v6723_v3 }
0x5a2a   :  { %v6725_v52 = vsel %vm6724_vm0, %v6720_v21, inf }
0x5a2b   :  { %6726 = vmin.xlane.f32.xlu1 %v6725_v52  ;;  %v6730_v34 = vshll.u32 %v6729_v58, 16 }
0x5ab8   :  { %v6727_v6 = vpop.xlane.xlu1 %6726 }
0x5ab9   :  { %v6728_v12 = vcvt.f32.s32 %v6727_v6 }
0x5abb   :  { %v6731_v9 = vadd.s32 %v6730_v34, %v6728_v12 }
0x5abd   :  { %vm6734_vm8 = vcmp.eq.s32.totalorder %v9133_v49, %v6731_v9  ;;  %v6733_v60 = vsel %vm6732_vm7, %v6731_v9, %v9902_v22  ;;  %v6914_v49 = vld [vmem:[#allocation13] sm:$0xff]  ;;  %v6915_v22 = vld [vmem:[#allocation13 + $0x8] sm:$0xff] }
0x5abe   :  { %v7240_v46 = vsel %vm6734_vm8, 1.0, %v8665_v40  ;;  %6912 = vst.msk [vmem:[#allocation15] sm:$0x3] %vm263_vm1, %v6733_v60  ;;  %v8272_v56 = vpack.c.bf16 %v6915_v22, %v6914_v49 }
0x5abf   :  { %v6744_v28 = vrot.slane %v7240_v46, %v9085_v10 }
0x5ac1   :  { %v6745_v51 = vcombine.high %v6744_v28, %v6744_v28  ;;  %v6752_v27 = vrot.slane %v6744_v28, %v9085_v10 }
0x5ac3   :  { %v6759_v17 = vrot.slane %v6745_v51, %v9085_v10  ;;  %8030 = vmatmul.mubr.msk.f32.vlgmr.msra.gmra.mrb[64].mxu1 %vm1169_vm11, %v6752_v27  ;;  %v6996_v10 = vld [vmem:[%s10110_s13] sm:$0xff] }
0x5ac4   :  { %8045 = vmatprep.mubr.msk.f32.mxu1 %vm8664_vm3, %v8665_v40  ;;  %8273 = vmatpush3.bf16.msra.mxu1 %v8272_v56  ;;  %v8278_v30 = vpack.c.bf16 %v6997_v33, %v6996_v10 }
0x5ac5   :  { %8035 = vmatmul.mubr.msk.f32.vlgmr.msra.gmra.mrb[66].mxu0 %vm1169_vm11, %v6759_v17  ;;  %8274 = vmatprep.subr.bf16.mxu1 %v8663_v13 }
0x5ac6   :  { %8056 = vmatprep.mubr.msk.f32.mxu0 %vm8664_vm3, %v8665_v40  ;;  %8279 = vmatpush3.bf16.msra.mxu0 %v8278_v30 }
0x5ac7   :  { %8280 = vmatprep.subr.bf16.mxu0 %v8663_v13  ;;  %v6999_v13 = vld [vmem:[%s10110_s13 + $0x18] sm:$0xff] }
0x5ac8   :  { %8276 = vmatpush3.bf16.msra.mxu1 %v8275_v4  ;;  %v8281_v59 = vpack.c.bf16 %v6999_v13, %v6998_v55 }
0x5aca   :  { %8282 = vmatpush3.bf16.msra.mxu0 %v8281_v59 }
0x5b96   :  { %v6828_v40 = vpop.f32.mrb[64].mxu1 }
0x5b97   :  { %v8031_v62 = vpop.f32.mrb[65].mxu1 }
0x5b98   :  { %v6900_v25 = vpop.f32.mrb[66].mxu0 }
0x5b99   :  { %v6906_v8 = vrot.slane %v6900_v25, 7  ;;  %v8036_v19 = vpop.f32.mrb[67].mxu0 }
0x5b9b   :  { %v6907_v11 = vsel %vm1073_vm6, %v6906_v8, %v6828_v40 }
0x5b9c   :  { %v6909_v37 = vadd.f32 %v6907_v11, %v9927_v24  ;;  %v8421_v24 = vld [vmem:[%s10111_s14] sm:$0x3f] }
0x5b9d   :  { %v6921_v16 = vrot.slane %v8421_v24, %v6920_v42 }
0x5b9e   :  { %6913 = vst.msk [vmem:[#allocation17] sm:$0x3] %vm841_vm5, %v6909_v37  ;;  %8046 = vmatmul.mubr.msk.f32.vlgmr.msra.gmra.mrb[66].mxu1 %vm291_vm2, %v6909_v37 }
0x5c71   :  { %v6991_v53 = vpop.f32.mrb[66].mxu1 }
0x5c72   :  { %v6992_v32 = vadd.f32 %v6991_v53, %v6921_v16  ;;  %v8047_v43 = vpop.f32.mrb[67].mxu1 }
0x5c74   :  { %v6995_v48 = vmax.f32 %v6992_v32, 0.0 }
0x5c76   :  { %8057 = vmatmul.mubr.msk.f32.vlgmr.msra.gmra.mrb[68].mxu0 %vm291_vm2, %v6995_v48 }
0x5c77   :  { %8587 = shalt.err (!%p8584_p4)
}
0x5c78   :  { %s8588_s14 = scalar_lea.hbm %s10114_s17, 32 }
0x5c79   :  { %p8589_p5 = scmp.ne.s32.totalorder %s10114_s17, %s8588_s14  ;;  %p8592_p6 = scmp.lt.u32.totalorder %s8588_s14, %s10114_s17 }
0x5c7b   :  { %p8594_p7 = pnand %p8592_p6, %p8589_p5 }
0x5c7d   :  { %8597 = shalt.err (!%p8594_p7)
}
0x5c7e   :  { %7108 = dma.vmem_to_hbm [thread:$0]  %s7106_s11, 32, %s10114_s17, [#allocation16]  }
0x5c7f   :  { %s8671_s19 = smov [#allocation14]   ;;  %s8672_s28 = smov [#allocation17]  }
0x5c80   :  { %s7092_s2 = sshll.u32 %s8671_s19, 4  ;;  %s7115_s21 = sshll.u32 %s8672_s28, 4  ;;  %s7093_s2 = int_to_ptr.vmem [resolvable:$true] %s7092_s2  ;;  %s7116_s21 = int_to_ptr.vmem [resolvable:$true] %s7115_s21 }
0x5c81   :  { %s8598_s1 = scalar_lea.vmem %s7093_s2, 256  ;;  %p8603_p9 = scmp.lt.s32.totalorder %s7093_s2, %s7093_s2 }
0x5c82   :  { %p8599_p8 = scmp.ne.s32.totalorder %s7093_s2, %s8598_s1  ;;  %p8604_p10 = scmp.lt.s32.totalorder %s8598_s1, %s8598_s1 }
0x5c84   :  { %p8605_p11 = por %p8604_p10, %p8603_p9 }
0x5c86   :  { %p8606_p12 = pnand %p8605_p11, %p8599_p8 }
0x5c88   :  { %8609 = shalt.err (!%p8606_p12)
}
0x5c89   :  { %s8610_s5 = scalar_lea.hbm %s10113_s16, 256 }
0x5c8a   :  { %p8611_p13 = scmp.ne.s32.totalorder %s10113_s16, %s8610_s5  ;;  %p8614_p0 = scmp.lt.u32.totalorder %s8610_s5, %s10113_s16 }
0x5c8c   :  { %p8616_p1 = pnand %p8614_p0, %p8611_p13 }
0x5c8e   :  { %8619 = shalt.err (!%p8616_p1)
}
0x5c8f   :  { %7098 = dma.vmem_to_hbm [thread:$0]  %s7093_s2, 256, %s10113_s16, [#allocation4], %s8655_s29, %s8655_s29, %s8656_s30  }
0x5c90   :  { %s8620_s23 = scalar_lea.vmem %s7116_s21, 32  ;;  %p8625_p3 = scmp.lt.s32.totalorder %s7116_s21, %s7116_s21 }
0x5c91   :  { %p8621_p2 = scmp.ne.s32.totalorder %s7116_s21, %s8620_s23  ;;  %p8626_p4 = scmp.lt.s32.totalorder %s8620_s23, %s8620_s23 }
0x5c93   :  { %p8627_p5 = por %p8626_p4, %p8625_p3 }
0x5c95   :  { %p8628_p6 = pnand %p8627_p5, %p8621_p2 }
0x5c97   :  { %8631 = shalt.err (!%p8628_p6)
}
0x5c98   :  { %s8632_s7 = scalar_lea.hbm %s10115_s18, 32 }
0x5c99   :  { %p8633_p7 = scmp.ne.s32.totalorder %s10115_s18, %s8632_s7  ;;  %p8636_p8 = scmp.lt.u32.totalorder %s8632_s7, %s10115_s18 }
0x5c9b   :  { %p8638_p9 = pnand %p8636_p8, %p8633_p7 }
0x5c9d   :  { %8641 = shalt.err (!%p8638_p9)
}
0x5c9e   :  { %7118 = dma.vmem_to_hbm [thread:$0]  %s7116_s21, 32, %s10115_s18, [#allocation16]   ;;  %vm7080_vm1 = vcmask 1024  }
0x5c9f   :  { %s10136_s6 = sld [smem:[#allocation29_spill]]  ;;  %s8673_s22 = smov 127  }
0x5ca0   :  { %s10137_s19 = sld [smem:[#allocation30_spill]]  ;;  %s10138_s1 = sld [smem:[#allocation31_spill]] }
0x5ca5   :  { %v7244_v20 = vld [vmem:[%s10136_s6] ss:$0 sm:$0xff] }
0x5d49   :  { %v7076_v54 = vpop.f32.mrb[68].mxu0 }
0x5d4a   :  { %v7077_v5 = vadd.f32 %v7244_v20, %v7076_v54  ;;  %v8058_v38 = vpop.f32.mrb[69].mxu0 }
0x5d4c   :  { %7083 = vrot.lane.b32.xlu1 %v7077_v5, %s8673_s22  ;;  %7081 = vst.msk [vmem:[%s10137_s19] sm:$0x3] %vm7080_vm1, %v7077_v5 }
0x5dbe   :  { %v7084_v23 = vpop.permute.xlu1 %7083 }
0x5dbf   :  { %7086 = vst.msk [vmem:[%s10138_s1] sm:$0x3] %vm7080_vm1, %v7084_v23 }
0x5dc0   :  { %8650 = dma.done.wait [#allocation4], 256  }
0x5dc1   :  { %8651 = vsyncadd [#allocation4], 4294967040 }
0x5dc2   :  { %8652 = dma.done.wait [#allocation16], 64  }
0x5dc3   :  { %8653 = vsyncadd [#allocation16], 4294967232 }
0x5dc4   :  { %7136 = vsyncpa [#allocation3], 1 }
0x5dc5   :  { %7137 = vsyncpa [#allocation6], 1 }
0x5dc6   :  { %7138 = vsyncpa [#allocation9], 1 }
0x5dc7   :  { %7139 = vsyncpa [#allocation12], 1 }
0x5dc8   :  { %7140 = vsyncpa [#allocation4], 1 }
0x5dc9   :  { %7141 = vsyncpa [#allocation16], 1 }

</bundles_post_ra>
